<compile_context>
chip_gen: v7x
topology: tpu7x:2x2x1
jax: 0.10.0
libtpu: 0.0.40
codegen_flags: <defaults>
</compile_context>

<pallas_src>
import functools

import jax
import jax.numpy as jnp
from jax.experimental import pallas as pl
from jax.experimental.pallas import tpu as pltpu

N_GLOBAL = 27
N_LOCAL = 100
NUM_CLASSES = 1
HIDDEN = 26                      # real LSTM hidden size (as in torch)
HP = 32                          # padded hidden size  (4*HP = 128 lanes)
FEAT = 2 * HIDDEN + N_GLOBAL     # 79 real FC width
FEATP = 128                      # padded FC width
EPS = 1e-5


# --------------------------------------------------------------------------
# helpers: single-block pallas_call (everything fits VMEM trivially)
# --------------------------------------------------------------------------

def _zero_map(nd):
    return lambda i, _nd=nd: (0,) * _nd


def _full_specs(arrays):
    return [pl.BlockSpec(a.shape, _zero_map(a.ndim)) for a in arrays]


# --------------------------------------------------------------------------
# Kernel 1: fused Conv1d(k=3, s=2, p=1) + bias + ReLU + MaxPool1d(2, 2)
# --------------------------------------------------------------------------

def _conv_relu_pool_kernel(a0_ref, s0_ref, s1_ref, s2_ref, s3_ref,
                           w_ref, b_ref, o_ref):
    """Rows are (batch, pooled-time). Taps (u = virtually padded input):
         a0 = u[4p-1], s0 = u[4p], s1 = u[4p+1], s2 = u[4p+2], s3 = u[4p+3]
       conv outputs of pool window p:
         y_even = a0@W0 + s0@W1 + s1@W2 ;  y_odd = s1@W0 + s2@W1 + s3@W2
       pooled = relu(max(y_even, y_odd) + b)   (== pool(relu(conv + b)))
    """
    w0 = w_ref[0]
    w1 = w_ref[1]
    w2 = w_ref[2]
    acc_e = (jnp.dot(a0_ref[...], w0, preferred_element_type=jnp.float32)
             + jnp.dot(s0_ref[...], w1, preferred_element_type=jnp.float32)
             + jnp.dot(s1_ref[...], w2, preferred_element_type=jnp.float32))
    acc_o = (jnp.dot(s1_ref[...], w0, preferred_element_type=jnp.float32)
             + jnp.dot(s2_ref[...], w1, preferred_element_type=jnp.float32)
             + jnp.dot(s3_ref[...], w2, preferred_element_type=jnp.float32))
    o_ref[...] = jnp.maximum(jnp.maximum(acc_e, acc_o) + b_ref[...], 0.0)


def conv_relu_pool(x_blc, w_taps, bias, pad_row):
    """x_blc: (B, L, Cin) channels-last.  Returns (B, L//4, Cout)."""
    B, L, Cin = x_blc.shape
    assert L % 4 == 0 and L >= 4, "sequence length must be a multiple of 4"
    P = L // 4
    Cout = w_taps.shape[-1]

    s0 = x_blc[:, 0::4, :]
    s1 = x_blc[:, 1::4, :]
    s2 = x_blc[:, 2::4, :]
    s3 = x_blc[:, 3::4, :]
    # u[-1]: virtual left-pad row (-shift/scale of the folded BN) so that the
    # BN-folded conv matches zero padding of the BN'd activations exactly.
    first = jnp.broadcast_to(pad_row.astype(jnp.float32), (B, 1, Cin))
    a0 = jnp.concatenate([first, s3[:, :-1, :]], axis=1)

    flat = lambda t: t.reshape(B * P, Cin).astype(jnp.float32)
    args = (flat(a0), flat(s0), flat(s1), flat(s2), flat(s3),
            w_taps.astype(jnp.float32),
            bias.reshape(1, Cout).astype(jnp.float32))
    out = pl.pallas_call(
        _conv_relu_pool_kernel,
        out_shape=jax.ShapeDtypeStruct((B * P, Cout), jnp.float32),
        grid=(1,),
        in_specs=_full_specs(args),
        out_specs=pl.BlockSpec((B * P, Cout), _zero_map(2)),
    )(*args)
    return out.reshape(B, P, Cout)


# --------------------------------------------------------------------------
# Kernel 2: fused [rnn1, rnn2, rnn2-again, concat, fc1, fc2, fc3, sigmoid]
# --------------------------------------------------------------------------

def _lstm_cell(gates, c_prev, Hp):
    i = jax.nn.sigmoid(gates[:, 0 * Hp:1 * Hp])
    f = jax.nn.sigmoid(gates[:, 1 * Hp:2 * Hp])
    g = jnp.tanh(gates[:, 2 * Hp:3 * Hp])
    o = jax.nn.sigmoid(gates[:, 3 * Hp:4 * Hp])
    c_new = f * c_prev + i * g
    h_new = o * jnp.tanh(c_new)
    return h_new, c_new


def _tail_kernel(x_ref, g_ref,
                 wih1_ref, whh1f_ref, whh1b_ref, bg1_ref,
                 wih2_ref, whh2f_ref, whh2b_ref, bg2_ref,
                 w1a_ref, w1b_ref, w1g_ref, fb1_ref,
                 w2_ref, fb2_ref, w3_ref, fb3_ref,
                 o_ref,
                 xg_ref, seq_ref,
                 *, B, T, Hp):
    G = 4 * Hp  # 128: per-direction gate width (lane-aligned 32-wide gates)

    def run_layer(x_val, wih_ref, whhf_ref, whhb_ref, bg_ref, write_seq):
        # combined fwd+bwd input-gate matmul: (T*B, D) @ (D, 2G) -> 256 lanes
        xg_ref[...] = (jnp.dot(x_val, wih_ref[...],
                               preferred_element_type=jnp.float32)
                       + bg_ref[...])
        whf = whhf_ref[...]
        whb = whhb_ref[...]
        h_f = jnp.zeros((B, Hp), jnp.float32)
        c_f = jnp.zeros((B, Hp), jnp.float32)
        h_b = jnp.zeros((B, Hp), jnp.float32)
        c_b = jnp.zeros((B, Hp), jnp.float32)
        for s in range(T):  # statically unrolled (T == 4)
            gf = xg_ref[s * B:(s + 1) * B, 0:G]
            gb = xg_ref[(T - 1 - s) * B:(T - s) * B, G:2 * G]
            if s > 0:       # h == 0 at s == 0 -> skip dead recurrent matmuls
                gf = gf + jnp.dot(h_f, whf, preferred_element_type=jnp.float32)
                gb = gb + jnp.dot(h_b, whb, preferred_element_type=jnp.float32)
            h_f, c_f = _lstm_cell(gf, c_f, Hp)
            h_b, c_b = _lstm_cell(gb, c_b, Hp)
            if write_seq:
                # output row t holds [h_fwd(t) | h_bwd(t)]; bwd step s is time T-1-s
                seq_ref[s * B:(s + 1) * B, 0:Hp] = h_f
                seq_ref[(T - 1 - s) * B:(T - s) * B, Hp:2 * Hp] = h_b
        return h_f, h_b

    # rnn1
    run_layer(x_ref[...], wih1_ref, whh1f_ref, whh1b_ref, bg1_ref, True)
    # rnn2 (first pass)
    x2 = seq_ref[...]
    run_layer(x2, wih2_ref, whh2f_ref, whh2b_ref, bg2_ref, True)
    # rnn2 (second pass -- same module applied twice, exactly as in the torch code)
    x3 = seq_ref[...]
    h_f, h_b = run_layer(x3, wih2_ref, whh2f_ref, whh2b_ref, bg2_ref, False)

    # FC head: cat([h_fwd_last, h_bwd_last, global]) -> bn1(folded) -> fc1 -> relu
    #          -> fc2 -> relu -> fc3 -> sigmoid.  (feat padded 79 -> 128.)
    z = (jnp.dot(h_f, w1a_ref[...], preferred_element_type=jnp.float32)
         + jnp.dot(h_b, w1b_ref[...], preferred_element_type=jnp.float32)
         + jnp.dot(g_ref[...], w1g_ref[...], preferred_element_type=jnp.float32)
         + fb1_ref[...])
    z = jnp.maximum(z, 0.0)
    z = jnp.maximum(jnp.dot(z, w2_ref[...],
                            preferred_element_type=jnp.float32) + fb2_ref[...],
                    0.0)
    out = jax.nn.sigmoid(jnp.dot(z, w3_ref[...],
                                 preferred_element_type=jnp.float32)
                         + fb3_ref[...])
    o_ref[...] = out.astype(o_ref.dtype)


def fused_lstm_fc(x_tm, g, kp, B, T):
    r1, r2, fc = kp["rnn1"], kp["rnn2"], kp["fc"]
    args = (x_tm.astype(jnp.float32), g.astype(jnp.float32),
            r1["wih"], r1["whh_f"], r1["whh_b"], r1["bg"],
            r2["wih"], r2["whh_f"], r2["whh_b"], r2["bg"],
            fc["w1a"], fc["w1b"], fc["w1g"], fc["b1"],
            fc["w2"], fc["b2"], fc["w3"], fc["b3"])
    kernel = functools.partial(_tail_kernel, B=B, T=T, Hp=HP)
    return pl.pallas_call(
        kernel,
        out_shape=jax.ShapeDtypeStruct((B, NUM_CLASSES), jnp.float32),
        grid=(1,),
        in_specs=_full_specs(args),
        out_specs=pl.BlockSpec((B, NUM_CLASSES), _zero_map(2)),
        scratch_shapes=[pltpu.VMEM((T * B, 8 * HP), jnp.float32),   # xg
                        pltpu.VMEM((T * B, 2 * HP), jnp.float32)],  # layer seq
    )(*args)


# --------------------------------------------------------------------------
# Parameter preparation: BN folding + lane-friendly padding / layouts
# --------------------------------------------------------------------------

def _bn_fold(bn):
    scale = bn["gamma"] / jnp.sqrt(bn["var"] + EPS)
    shift = bn["beta"] - bn["mean"] * scale
    return scale, shift


def _pad_gate_cols(w_math):
    """(D, 4*HIDDEN) -> (D, 4*HP): each torch gate block [i|f|g|o] padded to HP."""
    H, Hp = HIDDEN, HP
    return jnp.concatenate(
        [jnp.pad(w_math[:, q * H:(q + 1) * H], ((0, 0), (0, Hp - H)))
         for q in range(4)], axis=1)


def _pad_gate_vec(b):
    H, Hp = HIDDEN, HP
    return jnp.concatenate(
        [jnp.pad(b[q * H:(q + 1) * H], (0, Hp - H)) for q in range(4)])


def _pad_rnn2_rows(w_math):
    """(2*HIDDEN, X) -> (2*HP, X): real inputs land at rows 0:26 and 32:58."""
    H, Hp = HIDDEN, HP
    top = jnp.pad(w_math[0:H, :], ((0, Hp - H), (0, 0)))
    bot = jnp.pad(w_math[H:2 * H, :], ((0, Hp - H), (0, 0)))
    return jnp.concatenate([top, bot], axis=0)


def _prep_lstm(module, in_scale=None, in_shift=None, rnn2_layout=False):
    wih_parts, bg_parts, whh = [], [], {}
    for d in ("fwd", "bwd"):
        w_ih, w_hh, b_ih, b_hh = module[d]
        b_eff = b_ih + b_hh
        if in_scale is not None:                 # fold preceding BN (eval)
            b_eff = b_eff + w_ih @ in_shift
            w_ih = w_ih * in_scale[None, :]
        wm = _pad_gate_cols(w_ih.T)              # (D, 128)
        if rnn2_layout:
            wm = _pad_rnn2_rows(wm)              # (2*HP, 128)
        wih_parts.append(wm)
        bg_parts.append(_pad_gate_vec(b_eff))
        whh[d] = jnp.pad(_pad_gate_cols(w_hh.T), ((0, HP - HIDDEN), (0, 0)))
    return dict(
        wih=jnp.concatenate(wih_parts, axis=1).astype(jnp.float32),       # (D, 256)
        bg=jnp.concatenate(bg_parts).reshape(1, 8 * HP).astype(jnp.float32),
        whh_f=whh["fwd"].astype(jnp.float32),                             # (32, 128)
        whh_b=whh["bwd"].astype(jnp.float32),
    )


def prepare_params(p):
    s0, t0 = _bn_fold(p["bn0"])
    s1, t1 = _bn_fold(p["conv1_bn"])
    s2, t2 = _bn_fold(p["conv2_bn"])
    s3, t3 = _bn_fold(p["bn1"])

    def fold_conv(w, b, scale, shift):
        wf = w * scale[None, :, None]                         # (Cout, Cin, 3)
        bf = b + jnp.einsum("oik,i->o", w, shift)
        return dict(w=jnp.transpose(wf, (2, 1, 0)).astype(jnp.float32),  # (3,Cin,Cout)
                    b=bf.astype(jnp.float32),
                    pad=(-shift / scale).astype(jnp.float32))

    conv1 = fold_conv(p["conv1_w"], p["conv1_b"], s0, t0)     # bn0 folded
    conv2 = fold_conv(p["conv2_w"], p["conv2_b"], s1, t1)     # conv1_bn folded

    rnn1 = _prep_lstm(p["rnn1"], in_scale=s2, in_shift=t2)    # conv2_bn folded
    rnn2 = _prep_lstm(p["rnn2"], rnn2_layout=True)

    H, Hp, F, Fp = HIDDEN, HP, FEAT, FEATP
    w1 = s3[:, None] * p["fc1_w"]                             # bn1 folded into fc1
    b1 = p["fc1_b"] + t3 @ p["fc1_w"]
    w1 = jnp.pad(w1, ((0, 0), (0, Fp - F)))                   # (79, 128)
    fc = dict(
        w1a=jnp.pad(w1[0:H, :], ((0, Hp - H), (0, 0))).astype(jnp.float32),
        w1b=jnp.pad(w1[H:2 * H, :], ((0, Hp - H), (0, 0))).astype(jnp.float32),
        w1g=w1[2 * H:F, :].astype(jnp.float32),
        b1=jnp.pad(b1, (0, Fp - F)).reshape(1, Fp).astype(jnp.float32),
        w2=jnp.pad(p["fc2_w"], ((0, Fp - F), (0, Fp - F))).astype(jnp.float32),
        b2=jnp.pad(p["fc2_b"], (0, Fp - F)).reshape(1, Fp).astype(jnp.float32),
        w3=jnp.pad(p["fc3_w"], ((0, Fp - F), (0, 0))).astype(jnp.float32),
        b3=p["fc3_b"].reshape(1, NUM_CLASSES).astype(jnp.float32),
    )
    return dict(conv1=conv1, conv2=conv2, rnn1=rnn1, rnn2=rnn2, fc=fc)


# --------------------------------------------------------------------------
# Raw (torch-layout) parameters
# --------------------------------------------------------------------------

def init_params(key):
    keys = iter(jax.random.split(key, 64))

    def u(shape, scale):
        return jax.random.uniform(next(keys), shape, jnp.float32, -scale, scale)

    def bn_init(c):
        return dict(gamma=1.0 + 0.1 * u((c,), 1.0),
                    beta=0.1 * u((c,), 1.0),
                    mean=0.1 * u((c,), 1.0),
                    var=1.0 + 0.1 * jnp.abs(u((c,), 1.0)))

    def lstm_dir(in_dim):
        s = 1.0 / jnp.sqrt(jnp.float32(HIDDEN))
        return (u((4 * HIDDEN, in_dim), s), u((4 * HIDDEN, HIDDEN), s),
                u((4 * HIDDEN,), s), u((4 * HIDDEN,), s))

    feat = FEAT
    return {
        "bn0": bn_init(N_LOCAL),
        "conv1_w": u((200, N_LOCAL, 3), (6.0 / (N_LOCAL * 3)) ** 0.5),
        "conv1_b": u((200,), 0.05),
        "conv1_bn": bn_init(200),
        "conv2_w": u((100, 200, 3), (6.0 / (200 * 3)) ** 0.5),
        "conv2_b": u((100,), 0.05),
        "conv2_bn": bn_init(100),
        "rnn1": {"fwd": lstm_dir(100), "bwd": lstm_dir(100)},
        "rnn2": {"fwd": lstm_dir(2 * HIDDEN), "bwd": lstm_dir(2 * HIDDEN)},
        "bn1": bn_init(feat),
        "fc1_w": u((feat, feat), (6.0 / feat) ** 0.5), "fc1_b": u((feat,), 0.05),
        "fc2_w": u((feat, feat), (6.0 / feat) ** 0.5), "fc2_b": u((feat,), 0.05),
        "fc3_w": u((feat, NUM_CLASSES), (6.0 / feat) ** 0.5),
        "fc3_b": u((NUM_CLASSES,), 0.05),
    }


# --------------------------------------------------------------------------
# Forward pass (3 pallas_call dispatches total)
# --------------------------------------------------------------------------

def net_forward(x_ncl, kp):
    # x_ncl: (B, 154, L) PyTorch NCL layout.
    B = x_ncl.shape[0]
    g = x_ncl[:, 27:54, 0]                                    # (B, 27)
    local = jnp.transpose(x_ncl[:, 54:, :], (0, 2, 1))        # (B, L, 100)

    h = conv_relu_pool(local, kp["conv1"]["w"], kp["conv1"]["b"],
                       kp["conv1"]["pad"])                    # (B, L/4, 200)
    h = conv_relu_pool(h, kp["conv2"]["w"], kp["conv2"]["b"],
                       kp["conv2"]["pad"])                    # (B, T, 100)
    T = h.shape[1]
    # time-major flatten so row block s of the LSTM kernel is time step s
    x_tm = jnp.transpose(h, (1, 0, 2)).reshape(T * B, h.shape[-1])
    return fused_lstm_fc(x_tm, g, kp, B, T)                   # (B, 1)


if __name__ == "__main__":
    key = jax.random.PRNGKey(0)
    pkey, xkey = jax.random.split(key)
    raw_params = init_params(pkey)
    kparams = prepare_params(raw_params)

    B, C, L = 4, 27 + N_GLOBAL + N_LOCAL, 64   # (4, 154, 64)
    x = jax.random.normal(xkey, (B, C, L), jnp.float32)

    out = jax.jit(net_forward)(x, kparams)
    out = jax.block_until_ready(out)
    assert out.shape == (B, NUM_CLASSES), out.shape
    assert bool(jnp.all(jnp.isfinite(out)))
    print("KERNEL_OK")
</pallas_src>

<mosaic_0001>
module attributes {stable_mosaic.version = 11 : i64} {
  func.func @_conv_relu_pool_kernel(%arg0: i32, %arg1: memref<64x100xf32, #tpu.memory_space<vmem>>, %arg2: memref<64x100xf32, #tpu.memory_space<vmem>>, %arg3: memref<64x100xf32, #tpu.memory_space<vmem>>, %arg4: memref<64x100xf32, #tpu.memory_space<vmem>>, %arg5: memref<64x100xf32, #tpu.memory_space<vmem>>, %arg6: memref<3x100x200xf32, #tpu.memory_space<vmem>>, %arg7: memref<1x200xf32, #tpu.memory_space<vmem>>, %arg8: memref<64x200xf32, #tpu.memory_space<vmem>>) attributes {dimension_semantics = [#tpu.dimension_semantics<arbitrary>], iteration_bounds = array<i64: 1>, scalar_prefetch = 0 : i64, scratch_operands = 0 : i64, tpu.core_type = #tpu.core_type<tc>, window_params = [{pipeline_mode = #tpu.pipeline_mode<synchronous>, transform_indices = @transform_0, window_bounds = array<i64: 64, 100>}, {pipeline_mode = #tpu.pipeline_mode<synchronous>, transform_indices = @transform_1, window_bounds = array<i64: 64, 100>}, {pipeline_mode = #tpu.pipeline_mode<synchronous>, transform_indices = @transform_2, window_bounds = array<i64: 64, 100>}, {pipeline_mode = #tpu.pipeline_mode<synchronous>, transform_indices = @transform_3, window_bounds = array<i64: 64, 100>}, {pipeline_mode = #tpu.pipeline_mode<synchronous>, transform_indices = @transform_4, window_bounds = array<i64: 64, 100>}, {pipeline_mode = #tpu.pipeline_mode<synchronous>, transform_indices = @transform_5, window_bounds = array<i64: 3, 100, 200>}, {pipeline_mode = #tpu.pipeline_mode<synchronous>, transform_indices = @transform_6, window_bounds = array<i64: 1, 200>}, {pipeline_mode = #tpu.pipeline_mode<synchronous>, transform_indices = @transform_7, window_bounds = array<i64: 64, 200>}]} {
    %c0 = arith.constant 0 : index
    %c0_0 = arith.constant 0 : index
    %c0_1 = arith.constant 0 : index
    %0 = vector.load %arg6[%c0, %c0_0, %c0_1] : memref<3x100x200xf32, #tpu.memory_space<vmem>>, vector<1x100x200xf32>
    %1 = vector.shape_cast %0 : vector<1x100x200xf32> to vector<100x200xf32>
    %c1 = arith.constant 1 : index
    %c0_2 = arith.constant 0 : index
    %c0_3 = arith.constant 0 : index
    %2 = vector.load %arg6[%c1, %c0_2, %c0_3] : memref<3x100x200xf32, #tpu.memory_space<vmem>>, vector<1x100x200xf32>
    %3 = vector.shape_cast %2 : vector<1x100x200xf32> to vector<100x200xf32>
    %c2 = arith.constant 2 : index
    %c0_4 = arith.constant 0 : index
    %c0_5 = arith.constant 0 : index
    %4 = vector.load %arg6[%c2, %c0_4, %c0_5] : memref<3x100x200xf32, #tpu.memory_space<vmem>>, vector<1x100x200xf32>
    %5 = vector.shape_cast %4 : vector<1x100x200xf32> to vector<100x200xf32>
    %c0_6 = arith.constant 0 : index
    %c0_7 = arith.constant 0 : index
    %6 = vector.load %arg1[%c0_6, %c0_7] : memref<64x100xf32, #tpu.memory_space<vmem>>, vector<64x100xf32>
    %cst = arith.constant dense<0.000000e+00> : vector<64x200xf32>
    %7 = tpu.matmul %6, %1, %cst {dimension_numbers = #tpu.dot_dimension_numbers<[1], [0], [0], [1], [0, 0, 1, 1], [], []>} : vector<64x100xf32>, vector<100x200xf32>, vector<64x200xf32> -> vector<64x200xf32>
    %c0_8 = arith.constant 0 : index
    %c0_9 = arith.constant 0 : index
    %8 = vector.load %arg2[%c0_8, %c0_9] : memref<64x100xf32, #tpu.memory_space<vmem>>, vector<64x100xf32>
    %cst_10 = arith.constant dense<0.000000e+00> : vector<64x200xf32>
    %9 = tpu.matmul %8, %3, %cst_10 {dimension_numbers = #tpu.dot_dimension_numbers<[1], [0], [0], [1], [0, 0, 1, 1], [], []>} : vector<64x100xf32>, vector<100x200xf32>, vector<64x200xf32> -> vector<64x200xf32>
    %10 = arith.addf %7, %9 : vector<64x200xf32>
    %c0_11 = arith.constant 0 : index
    %c0_12 = arith.constant 0 : index
    %11 = vector.load %arg3[%c0_11, %c0_12] : memref<64x100xf32, #tpu.memory_space<vmem>>, vector<64x100xf32>
    %cst_13 = arith.constant dense<0.000000e+00> : vector<64x200xf32>
    %12 = tpu.matmul %11, %5, %cst_13 {dimension_numbers = #tpu.dot_dimension_numbers<[1], [0], [0], [1], [0, 0, 1, 1], [], []>} : vector<64x100xf32>, vector<100x200xf32>, vector<64x200xf32> -> vector<64x200xf32>
    %13 = arith.addf %10, %12 : vector<64x200xf32>
    %c0_14 = arith.constant 0 : index
    %c0_15 = arith.constant 0 : index
    %14 = vector.load %arg3[%c0_14, %c0_15] : memref<64x100xf32, #tpu.memory_space<vmem>>, vector<64x100xf32>
    %cst_16 = arith.constant dense<0.000000e+00> : vector<64x200xf32>
    %15 = tpu.matmul %14, %1, %cst_16 {dimension_numbers = #tpu.dot_dimension_numbers<[1], [0], [0], [1], [0, 0, 1, 1], [], []>} : vector<64x100xf32>, vector<100x200xf32>, vector<64x200xf32> -> vector<64x200xf32>
    %c0_17 = arith.constant 0 : index
    %c0_18 = arith.constant 0 : index
    %16 = vector.load %arg4[%c0_17, %c0_18] : memref<64x100xf32, #tpu.memory_space<vmem>>, vector<64x100xf32>
    %cst_19 = arith.constant dense<0.000000e+00> : vector<64x200xf32>
    %17 = tpu.matmul %16, %3, %cst_19 {dimension_numbers = #tpu.dot_dimension_numbers<[1], [0], [0], [1], [0, 0, 1, 1], [], []>} : vector<64x100xf32>, vector<100x200xf32>, vector<64x200xf32> -> vector<64x200xf32>
    %18 = arith.addf %15, %17 : vector<64x200xf32>
    %c0_20 = arith.constant 0 : index
    %c0_21 = arith.constant 0 : index
    %19 = vector.load %arg5[%c0_20, %c0_21] : memref<64x100xf32, #tpu.memory_space<vmem>>, vector<64x100xf32>
    %cst_22 = arith.constant dense<0.000000e+00> : vector<64x200xf32>
    %20 = tpu.matmul %19, %5, %cst_22 {dimension_numbers = #tpu.dot_dimension_numbers<[1], [0], [0], [1], [0, 0, 1, 1], [], []>} : vector<64x100xf32>, vector<100x200xf32>, vector<64x200xf32> -> vector<64x200xf32>
    %21 = arith.addf %18, %20 : vector<64x200xf32>
    %22 = arith.maximumf %13, %21 : vector<64x200xf32>
    %c0_23 = arith.constant 0 : index
    %c0_24 = arith.constant 0 : index
    %23 = vector.load %arg7[%c0_23, %c0_24] : memref<1x200xf32, #tpu.memory_space<vmem>>, vector<1x200xf32>
    %24 = vector.broadcast %23 : vector<1x200xf32> to vector<64x200xf32>
    %25 = arith.addf %22, %24 : vector<64x200xf32>
    %cst_25 = arith.constant 0.000000e+00 : f32
    %26 = vector.broadcast %cst_25 : f32 to vector<64x200xf32>
    %27 = arith.maximumf %25, %26 : vector<64x200xf32>
    %c0_26 = arith.constant 0 : index
    %c0_27 = arith.constant 0 : index
    %28 = vector.load %arg8[%c0_26, %c0_27] : memref<64x200xf32, #tpu.memory_space<vmem>>, vector<64x200xf32>
    tpu.vector_store %arg8[%c0_26, %c0_27], %27 {strides = array<i32>} : memref<64x200xf32, #tpu.memory_space<vmem>>, vector<64x200xf32>,
    return
  }
  func.func @transform_0(%arg0: i32) -> (i32, i32) {
    %c0_i32 = arith.constant 0 : i32
    %c0_i32_0 = arith.constant 0 : i32
    %c0_i32_1 = arith.constant 0 : i32
    return %c0_i32, %c0_i32_0 : i32, i32
  }
  func.func @transform_1(%arg0: i32) -> (i32, i32) {
    %c0_i32 = arith.constant 0 : i32
    %c0_i32_0 = arith.constant 0 : i32
    %c0_i32_1 = arith.constant 0 : i32
    return %c0_i32, %c0_i32_0 : i32, i32
  }
  func.func @transform_2(%arg0: i32) -> (i32, i32) {
    %c0_i32 = arith.constant 0 : i32
    %c0_i32_0 = arith.constant 0 : i32
    %c0_i32_1 = arith.constant 0 : i32
    return %c0_i32, %c0_i32_0 : i32, i32
  }
  func.func @transform_3(%arg0: i32) -> (i32, i32) {
    %c0_i32 = arith.constant 0 : i32
    %c0_i32_0 = arith.constant 0 : i32
    %c0_i32_1 = arith.constant 0 : i32
    return %c0_i32, %c0_i32_0 : i32, i32
  }
  func.func @transform_4(%arg0: i32) -> (i32, i32) {
    %c0_i32 = arith.constant 0 : i32
    %c0_i32_0 = arith.constant 0 : i32
    %c0_i32_1 = arith.constant 0 : i32
    return %c0_i32, %c0_i32_0 : i32, i32
  }
  func.func @transform_5(%arg0: i32) -> (i32, i32, i32) {
    %c0_i32 = arith.constant 0 : i32
    %c0_i32_0 = arith.constant 0 : i32
    %c0_i32_1 = arith.constant 0 : i32
    %c0_i32_2 = arith.constant 0 : i32
    return %c0_i32, %c0_i32_0, %c0_i32_1 : i32, i32, i32
  }
  func.func @transform_6(%arg0: i32) -> (i32, i32) {
    %c0_i32 = arith.constant 0 : i32
    %c0_i32_0 = arith.constant 0 : i32
    %c0_i32_1 = arith.constant 0 : i32
    return %c0_i32, %c0_i32_0 : i32, i32
  }
  func.func @transform_7(%arg0: i32) -> (i32, i32) {
    %c0_i32 = arith.constant 0 : i32
    %c0_i32_0 = arith.constant 0 : i32
    %c0_i32_1 = arith.constant 0 : i32
    return %c0_i32, %c0_i32_0 : i32, i32
  }
}

module attributes {stable_mosaic.version = 11 : i64} {
  func.func @_conv_relu_pool_kernel(%arg0: i32, %arg1: memref<16x200xf32, #tpu.memory_space<vmem>>, %arg2: memref<16x200xf32, #tpu.memory_space<vmem>>, %arg3: memref<16x200xf32, #tpu.memory_space<vmem>>, %arg4: memref<16x200xf32, #tpu.memory_space<vmem>>, %arg5: memref<16x200xf32, #tpu.memory_space<vmem>>, %arg6: memref<3x200x100xf32, #tpu.memory_space<vmem>>, %arg7: memref<1x100xf32, #tpu.memory_space<vmem>>, %arg8: memref<16x100xf32, #tpu.memory_space<vmem>>) attributes {dimension_semantics = [#tpu.dimension_semantics<arbitrary>], iteration_bounds = array<i64: 1>, scalar_prefetch = 0 : i64, scratch_operands = 0 : i64, tpu.core_type = #tpu.core_type<tc>, window_params = [{pipeline_mode = #tpu.pipeline_mode<synchronous>, transform_indices = @transform_0, window_bounds = array<i64: 16, 200>}, {pipeline_mode = #tpu.pipeline_mode<synchronous>, transform_indices = @transform_1, window_bounds = array<i64: 16, 200>}, {pipeline_mode = #tpu.pipeline_mode<synchronous>, transform_indices = @transform_2, window_bounds = array<i64: 16, 200>}, {pipeline_mode = #tpu.pipeline_mode<synchronous>, transform_indices = @transform_3, window_bounds = array<i64: 16, 200>}, {pipeline_mode = #tpu.pipeline_mode<synchronous>, transform_indices = @transform_4, window_bounds = array<i64: 16, 200>}, {pipeline_mode = #tpu.pipeline_mode<synchronous>, transform_indices = @transform_5, window_bounds = array<i64: 3, 200, 100>}, {pipeline_mode = #tpu.pipeline_mode<synchronous>, transform_indices = @transform_6, window_bounds = array<i64: 1, 100>}, {pipeline_mode = #tpu.pipeline_mode<synchronous>, transform_indices = @transform_7, window_bounds = array<i64: 16, 100>}]} {
    %c0 = arith.constant 0 : index
    %c0_0 = arith.constant 0 : index
    %c0_1 = arith.constant 0 : index
    %0 = vector.load %arg6[%c0, %c0_0, %c0_1] : memref<3x200x100xf32, #tpu.memory_space<vmem>>, vector<1x200x100xf32>
    %1 = vector.shape_cast %0 : vector<1x200x100xf32> to vector<200x100xf32>
    %c1 = arith.constant 1 : index
    %c0_2 = arith.constant 0 : index
    %c0_3 = arith.constant 0 : index
    %2 = vector.load %arg6[%c1, %c0_2, %c0_3] : memref<3x200x100xf32, #tpu.memory_space<vmem>>, vector<1x200x100xf32>
    %3 = vector.shape_cast %2 : vector<1x200x100xf32> to vector<200x100xf32>
    %c2 = arith.constant 2 : index
    %c0_4 = arith.constant 0 : index
    %c0_5 = arith.constant 0 : index
    %4 = vector.load %arg6[%c2, %c0_4, %c0_5] : memref<3x200x100xf32, #tpu.memory_space<vmem>>, vector<1x200x100xf32>
    %5 = vector.shape_cast %4 : vector<1x200x100xf32> to vector<200x100xf32>
    %c0_6 = arith.constant 0 : index
    %c0_7 = arith.constant 0 : index
    %6 = vector.load %arg1[%c0_6, %c0_7] : memref<16x200xf32, #tpu.memory_space<vmem>>, vector<16x200xf32>
    %cst = arith.constant dense<0.000000e+00> : vector<16x100xf32>
    %7 = tpu.matmul %6, %1, %cst {dimension_numbers = #tpu.dot_dimension_numbers<[1], [0], [0], [1], [0, 0, 1, 1], [], []>} : vector<16x200xf32>, vector<200x100xf32>, vector<16x100xf32> -> vector<16x100xf32>
    %c0_8 = arith.constant 0 : index
    %c0_9 = arith.constant 0 : index
    %8 = vector.load %arg2[%c0_8, %c0_9] : memref<16x200xf32, #tpu.memory_space<vmem>>, vector<16x200xf32>
    %cst_10 = arith.constant dense<0.000000e+00> : vector<16x100xf32>
    %9 = tpu.matmul %8, %3, %cst_10 {dimension_numbers = #tpu.dot_dimension_numbers<[1], [0], [0], [1], [0, 0, 1, 1], [], []>} : vector<16x200xf32>, vector<200x100xf32>, vector<16x100xf32> -> vector<16x100xf32>
    %10 = arith.addf %7, %9 : vector<16x100xf32>
    %c0_11 = arith.constant 0 : index
    %c0_12 = arith.constant 0 : index
    %11 = vector.load %arg3[%c0_11, %c0_12] : memref<16x200xf32, #tpu.memory_space<vmem>>, vector<16x200xf32>
    %cst_13 = arith.constant dense<0.000000e+00> : vector<16x100xf32>
    %12 = tpu.matmul %11, %5, %cst_13 {dimension_numbers = #tpu.dot_dimension_numbers<[1], [0], [0], [1], [0, 0, 1, 1], [], []>} : vector<16x200xf32>, vector<200x100xf32>, vector<16x100xf32> -> vector<16x100xf32>
    %13 = arith.addf %10, %12 : vector<16x100xf32>
    %c0_14 = arith.constant 0 : index
    %c0_15 = arith.constant 0 : index
    %14 = vector.load %arg3[%c0_14, %c0_15] : memref<16x200xf32, #tpu.memory_space<vmem>>, vector<16x200xf32>
    %cst_16 = arith.constant dense<0.000000e+00> : vector<16x100xf32>
    %15 = tpu.matmul %14, %1, %cst_16 {dimension_numbers = #tpu.dot_dimension_numbers<[1], [0], [0], [1], [0, 0, 1, 1], [], []>} : vector<16x200xf32>, vector<200x100xf32>, vector<16x100xf32> -> vector<16x100xf32>
    %c0_17 = arith.constant 0 : index
    %c0_18 = arith.constant 0 : index
    %16 = vector.load %arg4[%c0_17, %c0_18] : memref<16x200xf32, #tpu.memory_space<vmem>>, vector<16x200xf32>
    %cst_19 = arith.constant dense<0.000000e+00> : vector<16x100xf32>
    %17 = tpu.matmul %16, %3, %cst_19 {dimension_numbers = #tpu.dot_dimension_numbers<[1], [0], [0], [1], [0, 0, 1, 1], [], []>} : vector<16x200xf32>, vector<200x100xf32>, vector<16x100xf32> -> vector<16x100xf32>
    %18 = arith.addf %15, %17 : vector<16x100xf32>
    %c0_20 = arith.constant 0 : index
    %c0_21 = arith.constant 0 : index
    %19 = vector.load %arg5[%c0_20, %c0_21] : memref<16x200xf32, #tpu.memory_space<vmem>>, vector<16x200xf32>
    %cst_22 = arith.constant dense<0.000000e+00> : vector<16x100xf32>
    %20 = tpu.matmul %19, %5, %cst_22 {dimension_numbers = #tpu.dot_dimension_numbers<[1], [0], [0], [1], [0, 0, 1, 1], [], []>} : vector<16x200xf32>, vector<200x100xf32>, vector<16x100xf32> -> vector<16x100xf32>
    %21 = arith.addf %18, %20 : vector<16x100xf32>
    %22 = arith.maximumf %13, %21 : vector<16x100xf32>
    %c0_23 = arith.constant 0 : index
    %c0_24 = arith.constant 0 : index
    %23 = vector.load %arg7[%c0_23, %c0_24] : memref<1x100xf32, #tpu.memory_space<vmem>>, vector<1x100xf32>
    %24 = vector.broadcast %23 : vector<1x100xf32> to vector<16x100xf32>
    %25 = arith.addf %22, %24 : vector<16x100xf32>
    %cst_25 = arith.constant 0.000000e+00 : f32
    %26 = vector.broadcast %cst_25 : f32 to vector<16x100xf32>
    %27 = arith.maximumf %25, %26 : vector<16x100xf32>
    %c0_26 = arith.constant 0 : index
    %c0_27 = arith.constant 0 : index
    %28 = vector.load %arg8[%c0_26, %c0_27] : memref<16x100xf32, #tpu.memory_space<vmem>>, vector<16x100xf32>
    tpu.vector_store %arg8[%c0_26, %c0_27], %27 {strides = array<i32>} : memref<16x100xf32, #tpu.memory_space<vmem>>, vector<16x100xf32>,
    return
  }
  func.func @transform_0(%arg0: i32) -> (i32, i32) {
    %c0_i32 = arith.constant 0 : i32
    %c0_i32_0 = arith.constant 0 : i32
    %c0_i32_1 = arith.constant 0 : i32
    return %c0_i32, %c0_i32_0 : i32, i32
  }
  func.func @transform_1(%arg0: i32) -> (i32, i32) {
    %c0_i32 = arith.constant 0 : i32
    %c0_i32_0 = arith.constant 0 : i32
    %c0_i32_1 = arith.constant 0 : i32
    return %c0_i32, %c0_i32_0 : i32, i32
  }
  func.func @transform_2(%arg0: i32) -> (i32, i32) {
    %c0_i32 = arith.constant 0 : i32
    %c0_i32_0 = arith.constant 0 : i32
    %c0_i32_1 = arith.constant 0 : i32
    return %c0_i32, %c0_i32_0 : i32, i32
  }
  func.func @transform_3(%arg0: i32) -> (i32, i32) {
    %c0_i32 = arith.constant 0 : i32
    %c0_i32_0 = arith.constant 0 : i32
    %c0_i32_1 = arith.constant 0 : i32
    return %c0_i32, %c0_i32_0 : i32, i32
  }
  func.func @transform_4(%arg0: i32) -> (i32, i32) {
    %c0_i32 = arith.constant 0 : i32
    %c0_i32_0 = arith.constant 0 : i32
    %c0_i32_1 = arith.constant 0 : i32
    return %c0_i32, %c0_i32_0 : i32, i32
  }
  func.func @transform_5(%arg0: i32) -> (i32, i32, i32) {
    %c0_i32 = arith.constant 0 : i32
    %c0_i32_0 = arith.constant 0 : i32
    %c0_i32_1 = arith.constant 0 : i32
    %c0_i32_2 = arith.constant 0 : i32
    return %c0_i32, %c0_i32_0, %c0_i32_1 : i32, i32, i32
  }
  func.func @transform_6(%arg0: i32) -> (i32, i32) {
    %c0_i32 = arith.constant 0 : i32
    %c0_i32_0 = arith.constant 0 : i32
    %c0_i32_1 = arith.constant 0 : i32
    return %c0_i32, %c0_i32_0 : i32, i32
  }
  func.func @transform_7(%arg0: i32) -> (i32, i32) {
    %c0_i32 = arith.constant 0 : i32
    %c0_i32_0 = arith.constant 0 : i32
    %c0_i32_1 = arith.constant 0 : i32
    return %c0_i32, %c0_i32_0 : i32, i32
  }
}

module attributes {stable_mosaic.version = 11 : i64} {
  func.func @_tail_kernel(%arg0: i32, %arg1: memref<16x100xf32, #tpu.memory_space<vmem>>, %arg2: memref<4x27xf32, #tpu.memory_space<vmem>>, %arg3: memref<100x256xf32, #tpu.memory_space<vmem>>, %arg4: memref<32x128xf32, #tpu.memory_space<vmem>>, %arg5: memref<32x128xf32, #tpu.memory_space<vmem>>, %arg6: memref<1x256xf32, #tpu.memory_space<vmem>>, %arg7: memref<64x256xf32, #tpu.memory_space<vmem>>, %arg8: memref<32x128xf32, #tpu.memory_space<vmem>>, %arg9: memref<32x128xf32, #tpu.memory_space<vmem>>, %arg10: memref<1x256xf32, #tpu.memory_space<vmem>>, %arg11: memref<32x128xf32, #tpu.memory_space<vmem>>, %arg12: memref<32x128xf32, #tpu.memory_space<vmem>>, %arg13: memref<27x128xf32, #tpu.memory_space<vmem>>, %arg14: memref<1x128xf32, #tpu.memory_space<vmem>>, %arg15: memref<128x128xf32, #tpu.memory_space<vmem>>, %arg16: memref<1x128xf32, #tpu.memory_space<vmem>>, %arg17: memref<128x1xf32, #tpu.memory_space<vmem>>, %arg18: memref<1x1xf32, #tpu.memory_space<vmem>>, %arg19: memref<4x1xf32, #tpu.memory_space<vmem>>, %arg20: memref<16x256xf32, #tpu.memory_space<vmem>>, %arg21: memref<16x64xf32, #tpu.memory_space<vmem>>) attributes {dimension_semantics = [#tpu.dimension_semantics<arbitrary>], iteration_bounds = array<i64: 1>, scalar_prefetch = 0 : i64, scratch_operands = 2 : i64, tpu.core_type = #tpu.core_type<tc>, window_params = [{pipeline_mode = #tpu.pipeline_mode<synchronous>, transform_indices = @transform_0, window_bounds = array<i64: 16, 100>}, {pipeline_mode = #tpu.pipeline_mode<synchronous>, transform_indices = @transform_1, window_bounds = array<i64: 4, 27>}, {pipeline_mode = #tpu.pipeline_mode<synchronous>, transform_indices = @transform_2, window_bounds = array<i64: 100, 256>}, {pipeline_mode = #tpu.pipeline_mode<synchronous>, transform_indices = @transform_3, window_bounds = array<i64: 32, 128>}, {pipeline_mode = #tpu.pipeline_mode<synchronous>, transform_indices = @transform_4, window_bounds = array<i64: 32, 128>}, {pipeline_mode = #tpu.pipeline_mode<synchronous>, transform_indices = @transform_5, window_bounds = array<i64: 1, 256>}, {pipeline_mode = #tpu.pipeline_mode<synchronous>, transform_indices = @transform_6, window_bounds = array<i64: 64, 256>}, {pipeline_mode = #tpu.pipeline_mode<synchronous>, transform_indices = @transform_7, window_bounds = array<i64: 32, 128>}, {pipeline_mode = #tpu.pipeline_mode<synchronous>, transform_indices = @transform_8, window_bounds = array<i64: 32, 128>}, {pipeline_mode = #tpu.pipeline_mode<synchronous>, transform_indices = @transform_9, window_bounds = array<i64: 1, 256>}, {pipeline_mode = #tpu.pipeline_mode<synchronous>, transform_indices = @transform_10, window_bounds = array<i64: 32, 128>}, {pipeline_mode = #tpu.pipeline_mode<synchronous>, transform_indices = @transform_11, window_bounds = array<i64: 32, 128>}, {pipeline_mode = #tpu.pipeline_mode<synchronous>, transform_indices = @transform_12, window_bounds = array<i64: 27, 128>}, {pipeline_mode = #tpu.pipeline_mode<synchronous>, transform_indices = @transform_13, window_bounds = array<i64: 1, 128>}, {pipeline_mode = #tpu.pipeline_mode<synchronous>, transform_indices = @transform_14, window_bounds = array<i64: 128, 128>}, {pipeline_mode = #tpu.pipeline_mode<synchronous>, transform_indices = @transform_15, window_bounds = array<i64: 1, 128>}, {pipeline_mode = #tpu.pipeline_mode<synchronous>, transform_indices = @transform_16, window_bounds = array<i64: 128, 1>}, {pipeline_mode = #tpu.pipeline_mode<synchronous>, transform_indices = @transform_17, window_bounds = array<i64: 1, 1>}, {pipeline_mode = #tpu.pipeline_mode<synchronous>, transform_indices = @transform_18, window_bounds = array<i64: 4, 1>}]} {
    %c0 = arith.constant 0 : index
    %c0_0 = arith.constant 0 : index
    %0 = vector.load %arg1[%c0, %c0_0] : memref<16x100xf32, #tpu.memory_space<vmem>>, vector<16x100xf32>
    %c0_1 = arith.constant 0 : index
    %c0_2 = arith.constant 0 : index
    %1 = vector.load %arg3[%c0_1, %c0_2] : memref<100x256xf32, #tpu.memory_space<vmem>>, vector<100x256xf32>
    %cst = arith.constant dense<0.000000e+00> : vector<16x256xf32>
    %2 = tpu.matmul %0, %1, %cst {dimension_numbers = #tpu.dot_dimension_numbers<[1], [0], [0], [1], [0, 0, 1, 1], [], []>} : vector<16x100xf32>, vector<100x256xf32>, vector<16x256xf32> -> vector<16x256xf32>
    %c0_3 = arith.constant 0 : index
    %c0_4 = arith.constant 0 : index
    %3 = vector.load %arg6[%c0_3, %c0_4] : memref<1x256xf32, #tpu.memory_space<vmem>>, vector<1x256xf32>
    %4 = vector.broadcast %3 : vector<1x256xf32> to vector<16x256xf32>
    %5 = arith.addf %2, %4 : vector<16x256xf32>
    %c0_5 = arith.constant 0 : index
    %c0_6 = arith.constant 0 : index
    %6 = vector.load %arg20[%c0_5, %c0_6] : memref<16x256xf32, #tpu.memory_space<vmem>>, vector<16x256xf32>
    tpu.vector_store %arg20[%c0_5, %c0_6], %5 {strides = array<i32>} : memref<16x256xf32, #tpu.memory_space<vmem>>, vector<16x256xf32>,
    %c0_7 = arith.constant 0 : index
    %c0_8 = arith.constant 0 : index
    %7 = vector.load %arg4[%c0_7, %c0_8] : memref<32x128xf32, #tpu.memory_space<vmem>>, vector<32x128xf32>
    %c0_9 = arith.constant 0 : index
    %c0_10 = arith.constant 0 : index
    %8 = vector.load %arg5[%c0_9, %c0_10] : memref<32x128xf32, #tpu.memory_space<vmem>>, vector<32x128xf32>
    %cst_11 = arith.constant 0.000000e+00 : f32
    %9 = vector.broadcast %cst_11 : f32 to vector<4x32xf32>
    %cst_12 = arith.constant 0.000000e+00 : f32
    %10 = vector.broadcast %cst_12 : f32 to vector<4x32xf32>
    %c0_13 = arith.constant 0 : index
    %c0_14 = arith.constant 0 : index
    %11 = vector.load %arg20[%c0_13, %c0_14] : memref<16x256xf32, #tpu.memory_space<vmem>>, vector<4x128xf32>
    %c12 = arith.constant 12 : index
    %c128 = arith.constant 128 : index
    %12 = vector.load %arg20[%c12, %c128] : memref<16x256xf32, #tpu.memory_space<vmem>>, vector<4x128xf32>
    %13 = vector.extract_strided_slice %11 {offsets = [0, 0], sizes = [4, 32], strides = [1, 1]} : vector<4x128xf32> to vector<4x32xf32>
    %14 = arith.negf %13 : vector<4x32xf32>
    %15 = math.exp %14 : vector<4x32xf32>
    %cst_15 = arith.constant 1.000000e+00 : f32
    %16 = vector.broadcast %cst_15 : f32 to vector<4x32xf32>
    %17 = arith.addf %16, %15 : vector<4x32xf32>
    %18 = arith.divf %16, %17 : vector<4x32xf32>
    %19 = vector.extract_strided_slice %11 {offsets = [0, 32], sizes = [4, 32], strides = [1, 1]} : vector<4x128xf32> to vector<4x32xf32>
    %20 = arith.negf %19 : vector<4x32xf32>
    %21 = math.exp %20 : vector<4x32xf32>
    %cst_16 = arith.constant 1.000000e+00 : f32
    %22 = vector.broadcast %cst_16 : f32 to vector<4x32xf32>
    %23 = arith.addf %22, %21 : vector<4x32xf32>
    %24 = arith.divf %22, %23 : vector<4x32xf32>
    %25 = vector.extract_strided_slice %11 {offsets = [0, 64], sizes = [4, 32], strides = [1, 1]} : vector<4x128xf32> to vector<4x32xf32>
    %26 = math.tanh %25 : vector<4x32xf32>
    %27 = vector.extract_strided_slice %11 {offsets = [0, 96], sizes = [4, 32], strides = [1, 1]} : vector<4x128xf32> to vector<4x32xf32>
    %28 = arith.negf %27 : vector<4x32xf32>
    %29 = math.exp %28 : vector<4x32xf32>
    %cst_17 = arith.constant 1.000000e+00 : f32
    %30 = vector.broadcast %cst_17 : f32 to vector<4x32xf32>
    %31 = arith.addf %30, %29 : vector<4x32xf32>
    %32 = arith.divf %30, %31 : vector<4x32xf32>
    %33 = arith.mulf %24, %9 : vector<4x32xf32>
    %34 = arith.mulf %18, %26 : vector<4x32xf32>
    %35 = arith.addf %33, %34 : vector<4x32xf32>
    %36 = math.tanh %35 : vector<4x32xf32>
    %37 = arith.mulf %32, %36 : vector<4x32xf32>
    %38 = vector.extract_strided_slice %12 {offsets = [0, 0], sizes = [4, 32], strides = [1, 1]} : vector<4x128xf32> to vector<4x32xf32>
    %39 = arith.negf %38 : vector<4x32xf32>
    %40 = math.exp %39 : vector<4x32xf32>
    %cst_18 = arith.constant 1.000000e+00 : f32
    %41 = vector.broadcast %cst_18 : f32 to vector<4x32xf32>
    %42 = arith.addf %41, %40 : vector<4x32xf32>
    %43 = arith.divf %41, %42 : vector<4x32xf32>
    %44 = vector.extract_strided_slice %12 {offsets = [0, 32], sizes = [4, 32], strides = [1, 1]} : vector<4x128xf32> to vector<4x32xf32>
    %45 = arith.negf %44 : vector<4x32xf32>
    %46 = math.exp %45 : vector<4x32xf32>
    %cst_19 = arith.constant 1.000000e+00 : f32
    %47 = vector.broadcast %cst_19 : f32 to vector<4x32xf32>
    %48 = arith.addf %47, %46 : vector<4x32xf32>
    %49 = arith.divf %47, %48 : vector<4x32xf32>
    %50 = vector.extract_strided_slice %12 {offsets = [0, 64], sizes = [4, 32], strides = [1, 1]} : vector<4x128xf32> to vector<4x32xf32>
    %51 = math.tanh %50 : vector<4x32xf32>
    %52 = vector.extract_strided_slice %12 {offsets = [0, 96], sizes = [4, 32], strides = [1, 1]} : vector<4x128xf32> to vector<4x32xf32>
    %53 = arith.negf %52 : vector<4x32xf32>
    %54 = math.exp %53 : vector<4x32xf32>
    %cst_20 = arith.constant 1.000000e+00 : f32
    %55 = vector.broadcast %cst_20 : f32 to vector<4x32xf32>
    %56 = arith.addf %55, %54 : vector<4x32xf32>
    %57 = arith.divf %55, %56 : vector<4x32xf32>
    %58 = arith.mulf %49, %10 : vector<4x32xf32>
    %59 = arith.mulf %43, %51 : vector<4x32xf32>
    %60 = arith.addf %58, %59 : vector<4x32xf32>
    %61 = math.tanh %60 : vector<4x32xf32>
    %62 = arith.mulf %57, %61 : vector<4x32xf32>
    %c0_21 = arith.constant 0 : index
    %c0_22 = arith.constant 0 : index
    %63 = vector.load %arg21[%c0_21, %c0_22] : memref<16x64xf32, #tpu.memory_space<vmem>>, vector<4x32xf32>
    tpu.vector_store %arg21[%c0_21, %c0_22], %37 {strides = array<i32>} : memref<16x64xf32, #tpu.memory_space<vmem>>, vector<4x32xf32>,
    %c12_23 = arith.constant 12 : index
    %c32 = arith.constant 32 : index
    %64 = vector.load %arg21[%c12_23, %c32] : memref<16x64xf32, #tpu.memory_space<vmem>>, vector<4x32xf32>
    tpu.vector_store %arg21[%c12_23, %c32], %62 {strides = array<i32>} : memref<16x64xf32, #tpu.memory_space<vmem>>, vector<4x32xf32>,
    %c4 = arith.constant 4 : index
    %c0_24 = arith.constant 0 : index
    %65 = vector.load %arg20[%c4, %c0_24] : memref<16x256xf32, #tpu.memory_space<vmem>>, vector<4x128xf32>
    %c8 = arith.constant 8 : index
    %c128_25 = arith.constant 128 : index
    %66 = vector.load %arg20[%c8, %c128_25] : memref<16x256xf32, #tpu.memory_space<vmem>>, vector<4x128xf32>
    %cst_26 = arith.constant dense<0.000000e+00> : vector<4x128xf32>
    %67 = tpu.matmul %37, %7, %cst_26 {dimension_numbers = #tpu.dot_dimension_numbers<[1], [0], [0], [1], [0, 0, 1, 1], [], []>} : vector<4x32xf32>, vector<32x128xf32>, vector<4x128xf32> -> vector<4x128xf32>
    %68 = arith.addf %65, %67 : vector<4x128xf32>
    %cst_27 = arith.constant dense<0.000000e+00> : vector<4x128xf32>
    %69 = tpu.matmul %62, %8, %cst_27 {dimension_numbers = #tpu.dot_dimension_numbers<[1], [0], [0], [1], [0, 0, 1, 1], [], []>} : vector<4x32xf32>, vector<32x128xf32>, vector<4x128xf32> -> vector<4x128xf32>
    %70 = arith.addf %66, %69 : vector<4x128xf32>
    %71 = vector.extract_strided_slice %68 {offsets = [0, 0], sizes = [4, 32], strides = [1, 1]} : vector<4x128xf32> to vector<4x32xf32>
    %72 = arith.negf %71 : vector<4x32xf32>
    %73 = math.exp %72 : vector<4x32xf32>
    %cst_28 = arith.constant 1.000000e+00 : f32
    %74 = vector.broadcast %cst_28 : f32 to vector<4x32xf32>
    %75 = arith.addf %74, %73 : vector<4x32xf32>
    %76 = arith.divf %74, %75 : vector<4x32xf32>
    %77 = vector.extract_strided_slice %68 {offsets = [0, 32], sizes = [4, 32], strides = [1, 1]} : vector<4x128xf32> to vector<4x32xf32>
    %78 = arith.negf %77 : vector<4x32xf32>
    %79 = math.exp %78 : vector<4x32xf32>
    %cst_29 = arith.constant 1.000000e+00 : f32
    %80 = vector.broadcast %cst_29 : f32 to vector<4x32xf32>
    %81 = arith.addf %80, %79 : vector<4x32xf32>
    %82 = arith.divf %80, %81 : vector<4x32xf32>
    %83 = vector.extract_strided_slice %68 {offsets = [0, 64], sizes = [4, 32], strides = [1, 1]} : vector<4x128xf32> to vector<4x32xf32>
    %84 = math.tanh %83 : vector<4x32xf32>
    %85 = vector.extract_strided_slice %68 {offsets = [0, 96], sizes = [4, 32], strides = [1, 1]} : vector<4x128xf32> to vector<4x32xf32>
    %86 = arith.negf %85 : vector<4x32xf32>
    %87 = math.exp %86 : vector<4x32xf32>
    %cst_30 = arith.constant 1.000000e+00 : f32
    %88 = vector.broadcast %cst_30 : f32 to vector<4x32xf32>
    %89 = arith.addf %88, %87 : vector<4x32xf32>
    %90 = arith.divf %88, %89 : vector<4x32xf32>
    %91 = arith.mulf %82, %35 : vector<4x32xf32>
    %92 = arith.mulf %76, %84 : vector<4x32xf32>
    %93 = arith.addf %91, %92 : vector<4x32xf32>
    %94 = math.tanh %93 : vector<4x32xf32>
    %95 = arith.mulf %90, %94 : vector<4x32xf32>
    %96 = vector.extract_strided_slice %70 {offsets = [0, 0], sizes = [4, 32], strides = [1, 1]} : vector<4x128xf32> to vector<4x32xf32>
    %97 = arith.negf %96 : vector<4x32xf32>
    %98 = math.exp %97 : vector<4x32xf32>
    %cst_31 = arith.constant 1.000000e+00 : f32
    %99 = vector.broadcast %cst_31 : f32 to vector<4x32xf32>
    %100 = arith.addf %99, %98 : vector<4x32xf32>
    %101 = arith.divf %99, %100 : vector<4x32xf32>
    %102 = vector.extract_strided_slice %70 {offsets = [0, 32], sizes = [4, 32], strides = [1, 1]} : vector<4x128xf32> to vector<4x32xf32>
    %103 = arith.negf %102 : vector<4x32xf32>
    %104 = math.exp %103 : vector<4x32xf32>
    %cst_32 = arith.constant 1.000000e+00 : f32
    %105 = vector.broadcast %cst_32 : f32 to vector<4x32xf32>
    %106 = arith.addf %105, %104 : vector<4x32xf32>
    %107 = arith.divf %105, %106 : vector<4x32xf32>
    %108 = vector.extract_strided_slice %70 {offsets = [0, 64], sizes = [4, 32], strides = [1, 1]} : vector<4x128xf32> to vector<4x32xf32>
    %109 = math.tanh %108 : vector<4x32xf32>
    %110 = vector.extract_strided_slice %70 {offsets = [0, 96], sizes = [4, 32], strides = [1, 1]} : vector<4x128xf32> to vector<4x32xf32>
    %111 = arith.negf %110 : vector<4x32xf32>
    %112 = math.exp %111 : vector<4x32xf32>
    %cst_33 = arith.constant 1.000000e+00 : f32
    %113 = vector.broadcast %cst_33 : f32 to vector<4x32xf32>
    %114 = arith.addf %113, %112 : vector<4x32xf32>
    %115 = arith.divf %113, %114 : vector<4x32xf32>
    %116 = arith.mulf %107, %60 : vector<4x32xf32>
    %117 = arith.mulf %101, %109 : vector<4x32xf32>
    %118 = arith.addf %116, %117 : vector<4x32xf32>
    %119 = math.tanh %118 : vector<4x32xf32>
    %120 = arith.mulf %115, %119 : vector<4x32xf32>
    %c4_34 = arith.constant 4 : index
    %c0_35 = arith.constant 0 : index
    %121 = vector.load %arg21[%c4_34, %c0_35] : memref<16x64xf32, #tpu.memory_space<vmem>>, vector<4x32xf32>
    tpu.vector_store %arg21[%c4_34, %c0_35], %95 {strides = array<i32>} : memref<16x64xf32, #tpu.memory_space<vmem>>, vector<4x32xf32>,
    %c8_36 = arith.constant 8 : index
    %c32_37 = arith.constant 32 : index
    %122 = vector.load %arg21[%c8_36, %c32_37] : memref<16x64xf32, #tpu.memory_space<vmem>>, vector<4x32xf32>
    tpu.vector_store %arg21[%c8_36, %c32_37], %120 {strides = array<i32>} : memref<16x64xf32, #tpu.memory_space<vmem>>, vector<4x32xf32>,
    %c8_38 = arith.constant 8 : index
    %c0_39 = arith.constant 0 : index
    %123 = vector.load %arg20[%c8_38, %c0_39] : memref<16x256xf32, #tpu.memory_space<vmem>>, vector<4x128xf32>
    %c4_40 = arith.constant 4 : index
    %c128_41 = arith.constant 128 : index
    %124 = vector.load %arg20[%c4_40, %c128_41] : memref<16x256xf32, #tpu.memory_space<vmem>>, vector<4x128xf32>
    %cst_42 = arith.constant dense<0.000000e+00> : vector<4x128xf32>
    %125 = tpu.matmul %95, %7, %cst_42 {dimension_numbers = #tpu.dot_dimension_numbers<[1], [0], [0], [1], [0, 0, 1, 1], [], []>} : vector<4x32xf32>, vector<32x128xf32>, vector<4x128xf32> -> vector<4x128xf32>
    %126 = arith.addf %123, %125 : vector<4x128xf32>
    %cst_43 = arith.constant dense<0.000000e+00> : vector<4x128xf32>
    %127 = tpu.matmul %120, %8, %cst_43 {dimension_numbers = #tpu.dot_dimension_numbers<[1], [0], [0], [1], [0, 0, 1, 1], [], []>} : vector<4x32xf32>, vector<32x128xf32>, vector<4x128xf32> -> vector<4x128xf32>
    %128 = arith.addf %124, %127 : vector<4x128xf32>
    %129 = vector.extract_strided_slice %126 {offsets = [0, 0], sizes = [4, 32], strides = [1, 1]} : vector<4x128xf32> to vector<4x32xf32>
    %130 = arith.negf %129 : vector<4x32xf32>
    %131 = math.exp %130 : vector<4x32xf32>
    %cst_44 = arith.constant 1.000000e+00 : f32
    %132 = vector.broadcast %cst_44 : f32 to vector<4x32xf32>
    %133 = arith.addf %132, %131 : vector<4x32xf32>
    %134 = arith.divf %132, %133 : vector<4x32xf32>
    %135 = vector.extract_strided_slice %126 {offsets = [0, 32], sizes = [4, 32], strides = [1, 1]} : vector<4x128xf32> to vector<4x32xf32>
    %136 = arith.negf %135 : vector<4x32xf32>
    %137 = math.exp %136 : vector<4x32xf32>
    %cst_45 = arith.constant 1.000000e+00 : f32
    %138 = vector.broadcast %cst_45 : f32 to vector<4x32xf32>
    %139 = arith.addf %138, %137 : vector<4x32xf32>
    %140 = arith.divf %138, %139 : vector<4x32xf32>
    %141 = vector.extract_strided_slice %126 {offsets = [0, 64], sizes = [4, 32], strides = [1, 1]} : vector<4x128xf32> to vector<4x32xf32>
    %142 = math.tanh %141 : vector<4x32xf32>
    %143 = vector.extract_strided_slice %126 {offsets = [0, 96], sizes = [4, 32], strides = [1, 1]} : vector<4x128xf32> to vector<4x32xf32>
    %144 = arith.negf %143 : vector<4x32xf32>
    %145 = math.exp %144 : vector<4x32xf32>
    %cst_46 = arith.constant 1.000000e+00 : f32
    %146 = vector.broadcast %cst_46 : f32 to vector<4x32xf32>
    %147 = arith.addf %146, %145 : vector<4x32xf32>
    %148 = arith.divf %146, %147 : vector<4x32xf32>
    %149 = arith.mulf %140, %93 : vector<4x32xf32>
    %150 = arith.mulf %134, %142 : vector<4x32xf32>
    %151 = arith.addf %149, %150 : vector<4x32xf32>
    %152 = math.tanh %151 : vector<4x32xf32>
    %153 = arith.mulf %148, %152 : vector<4x32xf32>
    %154 = vector.extract_strided_slice %128 {offsets = [0, 0], sizes = [4, 32], strides = [1, 1]} : vector<4x128xf32> to vector<4x32xf32>
    %155 = arith.negf %154 : vector<4x32xf32>
    %156 = math.exp %155 : vector<4x32xf32>
    %cst_47 = arith.constant 1.000000e+00 : f32
    %157 = vector.broadcast %cst_47 : f32 to vector<4x32xf32>
    %158 = arith.addf %157, %156 : vector<4x32xf32>
    %159 = arith.divf %157, %158 : vector<4x32xf32>
    %160 = vector.extract_strided_slice %128 {offsets = [0, 32], sizes = [4, 32], strides = [1, 1]} : vector<4x128xf32> to vector<4x32xf32>
    %161 = arith.negf %160 : vector<4x32xf32>
    %162 = math.exp %161 : vector<4x32xf32>
    %cst_48 = arith.constant 1.000000e+00 : f32
    %163 = vector.broadcast %cst_48 : f32 to vector<4x32xf32>
    %164 = arith.addf %163, %162 : vector<4x32xf32>
    %165 = arith.divf %163, %164 : vector<4x32xf32>
    %166 = vector.extract_strided_slice %128 {offsets = [0, 64], sizes = [4, 32], strides = [1, 1]} : vector<4x128xf32> to vector<4x32xf32>
    %167 = math.tanh %166 : vector<4x32xf32>
    %168 = vector.extract_strided_slice %128 {offsets = [0, 96], sizes = [4, 32], strides = [1, 1]} : vector<4x128xf32> to vector<4x32xf32>
    %169 = arith.negf %168 : vector<4x32xf32>
    %170 = math.exp %169 : vector<4x32xf32>
    %cst_49 = arith.constant 1.000000e+00 : f32
    %171 = vector.broadcast %cst_49 : f32 to vector<4x32xf32>
    %172 = arith.addf %171, %170 : vector<4x32xf32>
    %173 = arith.divf %171, %172 : vector<4x32xf32>
    %174 = arith.mulf %165, %118 : vector<4x32xf32>
    %175 = arith.mulf %159, %167 : vector<4x32xf32>
    %176 = arith.addf %174, %175 : vector<4x32xf32>
    %177 = math.tanh %176 : vector<4x32xf32>
    %178 = arith.mulf %173, %177 : vector<4x32xf32>
    %c8_50 = arith.constant 8 : index
    %c0_51 = arith.constant 0 : index
    %179 = vector.load %arg21[%c8_50, %c0_51] : memref<16x64xf32, #tpu.memory_space<vmem>>, vector<4x32xf32>
    tpu.vector_store %arg21[%c8_50, %c0_51], %153 {strides = array<i32>} : memref<16x64xf32, #tpu.memory_space<vmem>>, vector<4x32xf32>,
    %c4_52 = arith.constant 4 : index
    %c32_53 = arith.constant 32 : index
    %180 = vector.load %arg21[%c4_52, %c32_53] : memref<16x64xf32, #tpu.memory_space<vmem>>, vector<4x32xf32>
    tpu.vector_store %arg21[%c4_52, %c32_53], %178 {strides = array<i32>} : memref<16x64xf32, #tpu.memory_space<vmem>>, vector<4x32xf32>,
    %c12_54 = arith.constant 12 : index
    %c0_55 = arith.constant 0 : index
    %181 = vector.load %arg20[%c12_54, %c0_55] : memref<16x256xf32, #tpu.memory_space<vmem>>, vector<4x128xf32>
    %c0_56 = arith.constant 0 : index
    %c128_57 = arith.constant 128 : index
    %182 = vector.load %arg20[%c0_56, %c128_57] : memref<16x256xf32, #tpu.memory_space<vmem>>, vector<4x128xf32>
    %cst_58 = arith.constant dense<0.000000e+00> : vector<4x128xf32>
    %183 = tpu.matmul %153, %7, %cst_58 {dimension_numbers = #tpu.dot_dimension_numbers<[1], [0], [0], [1], [0, 0, 1, 1], [], []>} : vector<4x32xf32>, vector<32x128xf32>, vector<4x128xf32> -> vector<4x128xf32>
    %184 = arith.addf %181, %183 : vector<4x128xf32>
    %cst_59 = arith.constant dense<0.000000e+00> : vector<4x128xf32>
    %185 = tpu.matmul %178, %8, %cst_59 {dimension_numbers = #tpu.dot_dimension_numbers<[1], [0], [0], [1], [0, 0, 1, 1], [], []>} : vector<4x32xf32>, vector<32x128xf32>, vector<4x128xf32> -> vector<4x128xf32>
    %186 = arith.addf %182, %185 : vector<4x128xf32>
    %187 = vector.extract_strided_slice %184 {offsets = [0, 0], sizes = [4, 32], strides = [1, 1]} : vector<4x128xf32> to vector<4x32xf32>
    %188 = arith.negf %187 : vector<4x32xf32>
    %189 = math.exp %188 : vector<4x32xf32>
    %cst_60 = arith.constant 1.000000e+00 : f32
    %190 = vector.broadcast %cst_60 : f32 to vector<4x32xf32>
    %191 = arith.addf %190, %189 : vector<4x32xf32>
    %192 = arith.divf %190, %191 : vector<4x32xf32>
    %193 = vector.extract_strided_slice %184 {offsets = [0, 32], sizes = [4, 32], strides = [1, 1]} : vector<4x128xf32> to vector<4x32xf32>
    %194 = arith.negf %193 : vector<4x32xf32>
    %195 = math.exp %194 : vector<4x32xf32>
    %cst_61 = arith.constant 1.000000e+00 : f32
    %196 = vector.broadcast %cst_61 : f32 to vector<4x32xf32>
    %197 = arith.addf %196, %195 : vector<4x32xf32>
    %198 = arith.divf %196, %197 : vector<4x32xf32>
    %199 = vector.extract_strided_slice %184 {offsets = [0, 64], sizes = [4, 32], strides = [1, 1]} : vector<4x128xf32> to vector<4x32xf32>
    %200 = math.tanh %199 : vector<4x32xf32>
    %201 = vector.extract_strided_slice %184 {offsets = [0, 96], sizes = [4, 32], strides = [1, 1]} : vector<4x128xf32> to vector<4x32xf32>
    %202 = arith.negf %201 : vector<4x32xf32>
    %203 = math.exp %202 : vector<4x32xf32>
    %cst_62 = arith.constant 1.000000e+00 : f32
    %204 = vector.broadcast %cst_62 : f32 to vector<4x32xf32>
    %205 = arith.addf %204, %203 : vector<4x32xf32>
    %206 = arith.divf %204, %205 : vector<4x32xf32>
    %207 = arith.mulf %198, %151 : vector<4x32xf32>
    %208 = arith.mulf %192, %200 : vector<4x32xf32>
    %209 = arith.addf %207, %208 : vector<4x32xf32>
    %210 = math.tanh %209 : vector<4x32xf32>
    %211 = arith.mulf %206, %210 : vector<4x32xf32>
    %212 = vector.extract_strided_slice %186 {offsets = [0, 0], sizes = [4, 32], strides = [1, 1]} : vector<4x128xf32> to vector<4x32xf32>
    %213 = arith.negf %212 : vector<4x32xf32>
    %214 = math.exp %213 : vector<4x32xf32>
    %cst_63 = arith.constant 1.000000e+00 : f32
    %215 = vector.broadcast %cst_63 : f32 to vector<4x32xf32>
    %216 = arith.addf %215, %214 : vector<4x32xf32>
    %217 = arith.divf %215, %216 : vector<4x32xf32>
    %218 = vector.extract_strided_slice %186 {offsets = [0, 32], sizes = [4, 32], strides = [1, 1]} : vector<4x128xf32> to vector<4x32xf32>
    %219 = arith.negf %218 : vector<4x32xf32>
    %220 = math.exp %219 : vector<4x32xf32>
    %cst_64 = arith.constant 1.000000e+00 : f32
    %221 = vector.broadcast %cst_64 : f32 to vector<4x32xf32>
    %222 = arith.addf %221, %220 : vector<4x32xf32>
    %223 = arith.divf %221, %222 : vector<4x32xf32>
    %224 = vector.extract_strided_slice %186 {offsets = [0, 64], sizes = [4, 32], strides = [1, 1]} : vector<4x128xf32> to vector<4x32xf32>
    %225 = math.tanh %224 : vector<4x32xf32>
    %226 = vector.extract_strided_slice %186 {offsets = [0, 96], sizes = [4, 32], strides = [1, 1]} : vector<4x128xf32> to vector<4x32xf32>
    %227 = arith.negf %226 : vector<4x32xf32>
    %228 = math.exp %227 : vector<4x32xf32>
    %cst_65 = arith.constant 1.000000e+00 : f32
    %229 = vector.broadcast %cst_65 : f32 to vector<4x32xf32>
    %230 = arith.addf %229, %228 : vector<4x32xf32>
    %231 = arith.divf %229, %230 : vector<4x32xf32>
    %232 = arith.mulf %223, %176 : vector<4x32xf32>
    %233 = arith.mulf %217, %225 : vector<4x32xf32>
    %234 = arith.addf %232, %233 : vector<4x32xf32>
    %235 = math.tanh %234 : vector<4x32xf32>
    %236 = arith.mulf %231, %235 : vector<4x32xf32>
    %c12_66 = arith.constant 12 : index
    %c0_67 = arith.constant 0 : index
    %237 = vector.load %arg21[%c12_66, %c0_67] : memref<16x64xf32, #tpu.memory_space<vmem>>, vector<4x32xf32>
    tpu.vector_store %arg21[%c12_66, %c0_67], %211 {strides = array<i32>} : memref<16x64xf32, #tpu.memory_space<vmem>>, vector<4x32xf32>,
    %c0_68 = arith.constant 0 : index
    %c32_69 = arith.constant 32 : index
    %238 = vector.load %arg21[%c0_68, %c32_69] : memref<16x64xf32, #tpu.memory_space<vmem>>, vector<4x32xf32>
    tpu.vector_store %arg21[%c0_68, %c32_69], %236 {strides = array<i32>} : memref<16x64xf32, #tpu.memory_space<vmem>>, vector<4x32xf32>,
    %c0_70 = arith.constant 0 : index
    %c0_71 = arith.constant 0 : index
    %239 = vector.load %arg21[%c0_70, %c0_71] : memref<16x64xf32, #tpu.memory_space<vmem>>, vector<16x64xf32>
    %c0_72 = arith.constant 0 : index
    %c0_73 = arith.constant 0 : index
    %240 = vector.load %arg7[%c0_72, %c0_73] : memref<64x256xf32, #tpu.memory_space<vmem>>, vector<64x256xf32>
    %cst_74 = arith.constant dense<0.000000e+00> : vector<16x256xf32>
    %241 = tpu.matmul %239, %240, %cst_74 {dimension_numbers = #tpu.dot_dimension_numbers<[1], [0], [0], [1], [0, 0, 1, 1], [], []>} : vector<16x64xf32>, vector<64x256xf32>, vector<16x256xf32> -> vector<16x256xf32>
    %c0_75 = arith.constant 0 : index
    %c0_76 = arith.constant 0 : index
    %242 = vector.load %arg10[%c0_75, %c0_76] : memref<1x256xf32, #tpu.memory_space<vmem>>, vector<1x256xf32>
    %243 = vector.broadcast %242 : vector<1x256xf32> to vector<16x256xf32>
    %244 = arith.addf %241, %243 : vector<16x256xf32>
    %c0_77 = arith.constant 0 : index
    %c0_78 = arith.constant 0 : index
    %245 = vector.load %arg20[%c0_77, %c0_78] : memref<16x256xf32, #tpu.memory_space<vmem>>, vector<16x256xf32>
    tpu.vector_store %arg20[%c0_77, %c0_78], %244 {strides = array<i32>} : memref<16x256xf32, #tpu.memory_space<vmem>>, vector<16x256xf32>,
    %c0_79 = arith.constant 0 : index
    %c0_80 = arith.constant 0 : index
    %246 = vector.load %arg8[%c0_79, %c0_80] : memref<32x128xf32, #tpu.memory_space<vmem>>, vector<32x128xf32>
    %c0_81 = arith.constant 0 : index
    %c0_82 = arith.constant 0 : index
    %247 = vector.load %arg9[%c0_81, %c0_82] : memref<32x128xf32, #tpu.memory_space<vmem>>, vector<32x128xf32>
    %cst_83 = arith.constant 0.000000e+00 : f32
    %248 = vector.broadcast %cst_83 : f32 to vector<4x32xf32>
    %cst_84 = arith.constant 0.000000e+00 : f32
    %249 = vector.broadcast %cst_84 : f32 to vector<4x32xf32>
    %c0_85 = arith.constant 0 : index
    %c0_86 = arith.constant 0 : index
    %250 = vector.load %arg20[%c0_85, %c0_86] : memref<16x256xf32, #tpu.memory_space<vmem>>, vector<4x128xf32>
    %c12_87 = arith.constant 12 : index
    %c128_88 = arith.constant 128 : index
    %251 = vector.load %arg20[%c12_87, %c128_88] : memref<16x256xf32, #tpu.memory_space<vmem>>, vector<4x128xf32>
    %252 = vector.extract_strided_slice %250 {offsets = [0, 0], sizes = [4, 32], strides = [1, 1]} : vector<4x128xf32> to vector<4x32xf32>
    %253 = arith.negf %252 : vector<4x32xf32>
    %254 = math.exp %253 : vector<4x32xf32>
    %cst_89 = arith.constant 1.000000e+00 : f32
    %255 = vector.broadcast %cst_89 : f32 to vector<4x32xf32>
    %256 = arith.addf %255, %254 : vector<4x32xf32>
    %257 = arith.divf %255, %256 : vector<4x32xf32>
    %258 = vector.extract_strided_slice %250 {offsets = [0, 32], sizes = [4, 32], strides = [1, 1]} : vector<4x128xf32> to vector<4x32xf32>
    %259 = arith.negf %258 : vector<4x32xf32>
    %260 = math.exp %259 : vector<4x32xf32>
    %cst_90 = arith.constant 1.000000e+00 : f32
    %261 = vector.broadcast %cst_90 : f32 to vector<4x32xf32>
    %262 = arith.addf %261, %260 : vector<4x32xf32>
    %263 = arith.divf %261, %262 : vector<4x32xf32>
    %264 = vector.extract_strided_slice %250 {offsets = [0, 64], sizes = [4, 32], strides = [1, 1]} : vector<4x128xf32> to vector<4x32xf32>
    %265 = math.tanh %264 : vector<4x32xf32>
    %266 = vector.extract_strided_slice %250 {offsets = [0, 96], sizes = [4, 32], strides = [1, 1]} : vector<4x128xf32> to vector<4x32xf32>
    %267 = arith.negf %266 : vector<4x32xf32>
    %268 = math.exp %267 : vector<4x32xf32>
    %cst_91 = arith.constant 1.000000e+00 : f32
    %269 = vector.broadcast %cst_91 : f32 to vector<4x32xf32>
    %270 = arith.addf %269, %268 : vector<4x32xf32>
    %271 = arith.divf %269, %270 : vector<4x32xf32>
    %272 = arith.mulf %263, %248 : vector<4x32xf32>
    %273 = arith.mulf %257, %265 : vector<4x32xf32>
    %274 = arith.addf %272, %273 : vector<4x32xf32>
    %275 = math.tanh %274 : vector<4x32xf32>
    %276 = arith.mulf %271, %275 : vector<4x32xf32>
    %277 = vector.extract_strided_slice %251 {offsets = [0, 0], sizes = [4, 32], strides = [1, 1]} : vector<4x128xf32> to vector<4x32xf32>
    %278 = arith.negf %277 : vector<4x32xf32>
    %279 = math.exp %278 : vector<4x32xf32>
    %cst_92 = arith.constant 1.000000e+00 : f32
    %280 = vector.broadcast %cst_92 : f32 to vector<4x32xf32>
    %281 = arith.addf %280, %279 : vector<4x32xf32>
    %282 = arith.divf %280, %281 : vector<4x32xf32>
    %283 = vector.extract_strided_slice %251 {offsets = [0, 32], sizes = [4, 32], strides = [1, 1]} : vector<4x128xf32> to vector<4x32xf32>
    %284 = arith.negf %283 : vector<4x32xf32>
    %285 = math.exp %284 : vector<4x32xf32>
    %cst_93 = arith.constant 1.000000e+00 : f32
    %286 = vector.broadcast %cst_93 : f32 to vector<4x32xf32>
    %287 = arith.addf %286, %285 : vector<4x32xf32>
    %288 = arith.divf %286, %287 : vector<4x32xf32>
    %289 = vector.extract_strided_slice %251 {offsets = [0, 64], sizes = [4, 32], strides = [1, 1]} : vector<4x128xf32> to vector<4x32xf32>
    %290 = math.tanh %289 : vector<4x32xf32>
    %291 = vector.extract_strided_slice %251 {offsets = [0, 96], sizes = [4, 32], strides = [1, 1]} : vector<4x128xf32> to vector<4x32xf32>
    %292 = arith.negf %291 : vector<4x32xf32>
    %293 = math.exp %292 : vector<4x32xf32>
    %cst_94 = arith.constant 1.000000e+00 : f32
    %294 = vector.broadcast %cst_94 : f32 to vector<4x32xf32>
    %295 = arith.addf %294, %293 : vector<4x32xf32>
    %296 = arith.divf %294, %295 : vector<4x32xf32>
    %297 = arith.mulf %288, %249 : vector<4x32xf32>
    %298 = arith.mulf %282, %290 : vector<4x32xf32>
    %299 = arith.addf %297, %298 : vector<4x32xf32>
    %300 = math.tanh %299 : vector<4x32xf32>
    %301 = arith.mulf %296, %300 : vector<4x32xf32>
    %c0_95 = arith.constant 0 : index
    %c0_96 = arith.constant 0 : index
    %302 = vector.load %arg21[%c0_95, %c0_96] : memref<16x64xf32, #tpu.memory_space<vmem>>, vector<4x32xf32>
    tpu.vector_store %arg21[%c0_95, %c0_96], %276 {strides = array<i32>} : memref<16x64xf32, #tpu.memory_space<vmem>>, vector<4x32xf32>,
    %c12_97 = arith.constant 12 : index
    %c32_98 = arith.constant 32 : index
    %303 = vector.load %arg21[%c12_97, %c32_98] : memref<16x64xf32, #tpu.memory_space<vmem>>, vector<4x32xf32>
    tpu.vector_store %arg21[%c12_97, %c32_98], %301 {strides = array<i32>} : memref<16x64xf32, #tpu.memory_space<vmem>>, vector<4x32xf32>,
    %c4_99 = arith.constant 4 : index
    %c0_100 = arith.constant 0 : index
    %304 = vector.load %arg20[%c4_99, %c0_100] : memref<16x256xf32, #tpu.memory_space<vmem>>, vector<4x128xf32>
    %c8_101 = arith.constant 8 : index
    %c128_102 = arith.constant 128 : index
    %305 = vector.load %arg20[%c8_101, %c128_102] : memref<16x256xf32, #tpu.memory_space<vmem>>, vector<4x128xf32>
    %cst_103 = arith.constant dense<0.000000e+00> : vector<4x128xf32>
    %306 = tpu.matmul %276, %246, %cst_103 {dimension_numbers = #tpu.dot_dimension_numbers<[1], [0], [0], [1], [0, 0, 1, 1], [], []>} : vector<4x32xf32>, vector<32x128xf32>, vector<4x128xf32> -> vector<4x128xf32>
    %307 = arith.addf %304, %306 : vector<4x128xf32>
    %cst_104 = arith.constant dense<0.000000e+00> : vector<4x128xf32>
    %308 = tpu.matmul %301, %247, %cst_104 {dimension_numbers = #tpu.dot_dimension_numbers<[1], [0], [0], [1], [0, 0, 1, 1], [], []>} : vector<4x32xf32>, vector<32x128xf32>, vector<4x128xf32> -> vector<4x128xf32>
    %309 = arith.addf %305, %308 : vector<4x128xf32>
    %310 = vector.extract_strided_slice %307 {offsets = [0, 0], sizes = [4, 32], strides = [1, 1]} : vector<4x128xf32> to vector<4x32xf32>
    %311 = arith.negf %310 : vector<4x32xf32>
    %312 = math.exp %311 : vector<4x32xf32>
    %cst_105 = arith.constant 1.000000e+00 : f32
    %313 = vector.broadcast %cst_105 : f32 to vector<4x32xf32>
    %314 = arith.addf %313, %312 : vector<4x32xf32>
    %315 = arith.divf %313, %314 : vector<4x32xf32>
    %316 = vector.extract_strided_slice %307 {offsets = [0, 32], sizes = [4, 32], strides = [1, 1]} : vector<4x128xf32> to vector<4x32xf32>
    %317 = arith.negf %316 : vector<4x32xf32>
    %318 = math.exp %317 : vector<4x32xf32>
    %cst_106 = arith.constant 1.000000e+00 : f32
    %319 = vector.broadcast %cst_106 : f32 to vector<4x32xf32>
    %320 = arith.addf %319, %318 : vector<4x32xf32>
    %321 = arith.divf %319, %320 : vector<4x32xf32>
    %322 = vector.extract_strided_slice %307 {offsets = [0, 64], sizes = [4, 32], strides = [1, 1]} : vector<4x128xf32> to vector<4x32xf32>
    %323 = math.tanh %322 : vector<4x32xf32>
    %324 = vector.extract_strided_slice %307 {offsets = [0, 96], sizes = [4, 32], strides = [1, 1]} : vector<4x128xf32> to vector<4x32xf32>
    %325 = arith.negf %324 : vector<4x32xf32>
    %326 = math.exp %325 : vector<4x32xf32>
    %cst_107 = arith.constant 1.000000e+00 : f32
    %327 = vector.broadcast %cst_107 : f32 to vector<4x32xf32>
    %328 = arith.addf %327, %326 : vector<4x32xf32>
    %329 = arith.divf %327, %328 : vector<4x32xf32>
    %330 = arith.mulf %321, %274 : vector<4x32xf32>
    %331 = arith.mulf %315, %323 : vector<4x32xf32>
    %332 = arith.addf %330, %331 : vector<4x32xf32>
    %333 = math.tanh %332 : vector<4x32xf32>
    %334 = arith.mulf %329, %333 : vector<4x32xf32>
    %335 = vector.extract_strided_slice %309 {offsets = [0, 0], sizes = [4, 32], strides = [1, 1]} : vector<4x128xf32> to vector<4x32xf32>
    %336 = arith.negf %335 : vector<4x32xf32>
    %337 = math.exp %336 : vector<4x32xf32>
    %cst_108 = arith.constant 1.000000e+00 : f32
    %338 = vector.broadcast %cst_108 : f32 to vector<4x32xf32>
    %339 = arith.addf %338, %337 : vector<4x32xf32>
    %340 = arith.divf %338, %339 : vector<4x32xf32>
    %341 = vector.extract_strided_slice %309 {offsets = [0, 32], sizes = [4, 32], strides = [1, 1]} : vector<4x128xf32> to vector<4x32xf32>
    %342 = arith.negf %341 : vector<4x32xf32>
    %343 = math.exp %342 : vector<4x32xf32>
    %cst_109 = arith.constant 1.000000e+00 : f32
    %344 = vector.broadcast %cst_109 : f32 to vector<4x32xf32>
    %345 = arith.addf %344, %343 : vector<4x32xf32>
    %346 = arith.divf %344, %345 : vector<4x32xf32>
    %347 = vector.extract_strided_slice %309 {offsets = [0, 64], sizes = [4, 32], strides = [1, 1]} : vector<4x128xf32> to vector<4x32xf32>
    %348 = math.tanh %347 : vector<4x32xf32>
    %349 = vector.extract_strided_slice %309 {offsets = [0, 96], sizes = [4, 32], strides = [1, 1]} : vector<4x128xf32> to vector<4x32xf32>
    %350 = arith.negf %349 : vector<4x32xf32>
    %351 = math.exp %350 : vector<4x32xf32>
    %cst_110 = arith.constant 1.000000e+00 : f32
    %352 = vector.broadcast %cst_110 : f32 to vector<4x32xf32>
    %353 = arith.addf %352, %351 : vector<4x32xf32>
    %354 = arith.divf %352, %353 : vector<4x32xf32>
    %355 = arith.mulf %346, %299 : vector<4x32xf32>
    %356 = arith.mulf %340, %348 : vector<4x32xf32>
    %357 = arith.addf %355, %356 : vector<4x32xf32>
    %358 = math.tanh %357 : vector<4x32xf32>
    %359 = arith.mulf %354, %358 : vector<4x32xf32>
    %c4_111 = arith.constant 4 : index
    %c0_112 = arith.constant 0 : index
    %360 = vector.load %arg21[%c4_111, %c0_112] : memref<16x64xf32, #tpu.memory_space<vmem>>, vector<4x32xf32>
    tpu.vector_store %arg21[%c4_111, %c0_112], %334 {strides = array<i32>} : memref<16x64xf32, #tpu.memory_space<vmem>>, vector<4x32xf32>,
    %c8_113 = arith.constant 8 : index
    %c32_114 = arith.constant 32 : index
    %361 = vector.load %arg21[%c8_113, %c32_114] : memref<16x64xf32, #tpu.memory_space<vmem>>, vector<4x32xf32>
    tpu.vector_store %arg21[%c8_113, %c32_114], %359 {strides = array<i32>} : memref<16x64xf32, #tpu.memory_space<vmem>>, vector<4x32xf32>,
    %c8_115 = arith.constant 8 : index
    %c0_116 = arith.constant 0 : index
    %362 = vector.load %arg20[%c8_115, %c0_116] : memref<16x256xf32, #tpu.memory_space<vmem>>, vector<4x128xf32>
    %c4_117 = arith.constant 4 : index
    %c128_118 = arith.constant 128 : index
    %363 = vector.load %arg20[%c4_117, %c128_118] : memref<16x256xf32, #tpu.memory_space<vmem>>, vector<4x128xf32>
    %cst_119 = arith.constant dense<0.000000e+00> : vector<4x128xf32>
    %364 = tpu.matmul %334, %246, %cst_119 {dimension_numbers = #tpu.dot_dimension_numbers<[1], [0], [0], [1], [0, 0, 1, 1], [], []>} : vector<4x32xf32>, vector<32x128xf32>, vector<4x128xf32> -> vector<4x128xf32>
    %365 = arith.addf %362, %364 : vector<4x128xf32>
    %cst_120 = arith.constant dense<0.000000e+00> : vector<4x128xf32>
    %366 = tpu.matmul %359, %247, %cst_120 {dimension_numbers = #tpu.dot_dimension_numbers<[1], [0], [0], [1], [0, 0, 1, 1], [], []>} : vector<4x32xf32>, vector<32x128xf32>, vector<4x128xf32> -> vector<4x128xf32>
    %367 = arith.addf %363, %366 : vector<4x128xf32>
    %368 = vector.extract_strided_slice %365 {offsets = [0, 0], sizes = [4, 32], strides = [1, 1]} : vector<4x128xf32> to vector<4x32xf32>
    %369 = arith.negf %368 : vector<4x32xf32>
    %370 = math.exp %369 : vector<4x32xf32>
    %cst_121 = arith.constant 1.000000e+00 : f32
    %371 = vector.broadcast %cst_121 : f32 to vector<4x32xf32>
    %372 = arith.addf %371, %370 : vector<4x32xf32>
    %373 = arith.divf %371, %372 : vector<4x32xf32>
    %374 = vector.extract_strided_slice %365 {offsets = [0, 32], sizes = [4, 32], strides = [1, 1]} : vector<4x128xf32> to vector<4x32xf32>
    %375 = arith.negf %374 : vector<4x32xf32>
    %376 = math.exp %375 : vector<4x32xf32>
    %cst_122 = arith.constant 1.000000e+00 : f32
    %377 = vector.broadcast %cst_122 : f32 to vector<4x32xf32>
    %378 = arith.addf %377, %376 : vector<4x32xf32>
    %379 = arith.divf %377, %378 : vector<4x32xf32>
    %380 = vector.extract_strided_slice %365 {offsets = [0, 64], sizes = [4, 32], strides = [1, 1]} : vector<4x128xf32> to vector<4x32xf32>
    %381 = math.tanh %380 : vector<4x32xf32>
    %382 = vector.extract_strided_slice %365 {offsets = [0, 96], sizes = [4, 32], strides = [1, 1]} : vector<4x128xf32> to vector<4x32xf32>
    %383 = arith.negf %382 : vector<4x32xf32>
    %384 = math.exp %383 : vector<4x32xf32>
    %cst_123 = arith.constant 1.000000e+00 : f32
    %385 = vector.broadcast %cst_123 : f32 to vector<4x32xf32>
    %386 = arith.addf %385, %384 : vector<4x32xf32>
    %387 = arith.divf %385, %386 : vector<4x32xf32>
    %388 = arith.mulf %379, %332 : vector<4x32xf32>
    %389 = arith.mulf %373, %381 : vector<4x32xf32>
    %390 = arith.addf %388, %389 : vector<4x32xf32>
    %391 = math.tanh %390 : vector<4x32xf32>
    %392 = arith.mulf %387, %391 : vector<4x32xf32>
    %393 = vector.extract_strided_slice %367 {offsets = [0, 0], sizes = [4, 32], strides = [1, 1]} : vector<4x128xf32> to vector<4x32xf32>
    %394 = arith.negf %393 : vector<4x32xf32>
    %395 = math.exp %394 : vector<4x32xf32>
    %cst_124 = arith.constant 1.000000e+00 : f32
    %396 = vector.broadcast %cst_124 : f32 to vector<4x32xf32>
    %397 = arith.addf %396, %395 : vector<4x32xf32>
    %398 = arith.divf %396, %397 : vector<4x32xf32>
    %399 = vector.extract_strided_slice %367 {offsets = [0, 32], sizes = [4, 32], strides = [1, 1]} : vector<4x128xf32> to vector<4x32xf32>
    %400 = arith.negf %399 : vector<4x32xf32>
    %401 = math.exp %400 : vector<4x32xf32>
    %cst_125 = arith.constant 1.000000e+00 : f32
    %402 = vector.broadcast %cst_125 : f32 to vector<4x32xf32>
    %403 = arith.addf %402, %401 : vector<4x32xf32>
    %404 = arith.divf %402, %403 : vector<4x32xf32>
    %405 = vector.extract_strided_slice %367 {offsets = [0, 64], sizes = [4, 32], strides = [1, 1]} : vector<4x128xf32> to vector<4x32xf32>
    %406 = math.tanh %405 : vector<4x32xf32>
    %407 = vector.extract_strided_slice %367 {offsets = [0, 96], sizes = [4, 32], strides = [1, 1]} : vector<4x128xf32> to vector<4x32xf32>
    %408 = arith.negf %407 : vector<4x32xf32>
    %409 = math.exp %408 : vector<4x32xf32>
    %cst_126 = arith.constant 1.000000e+00 : f32
    %410 = vector.broadcast %cst_126 : f32 to vector<4x32xf32>
    %411 = arith.addf %410, %409 : vector<4x32xf32>
    %412 = arith.divf %410, %411 : vector<4x32xf32>
    %413 = arith.mulf %404, %357 : vector<4x32xf32>
    %414 = arith.mulf %398, %406 : vector<4x32xf32>
    %415 = arith.addf %413, %414 : vector<4x32xf32>
    %416 = math.tanh %415 : vector<4x32xf32>
    %417 = arith.mulf %412, %416 : vector<4x32xf32>
    %c8_127 = arith.constant 8 : index
    %c0_128 = arith.constant 0 : index
    %418 = vector.load %arg21[%c8_127, %c0_128] : memref<16x64xf32, #tpu.memory_space<vmem>>, vector<4x32xf32>
    tpu.vector_store %arg21[%c8_127, %c0_128], %392 {strides = array<i32>} : memref<16x64xf32, #tpu.memory_space<vmem>>, vector<4x32xf32>,
    %c4_129 = arith.constant 4 : index
    %c32_130 = arith.constant 32 : index
    %419 = vector.load %arg21[%c4_129, %c32_130] : memref<16x64xf32, #tpu.memory_space<vmem>>, vector<4x32xf32>
    tpu.vector_store %arg21[%c4_129, %c32_130], %417 {strides = array<i32>} : memref<16x64xf32, #tpu.memory_space<vmem>>, vector<4x32xf32>,
    %c12_131 = arith.constant 12 : index
    %c0_132 = arith.constant 0 : index
    %420 = vector.load %arg20[%c12_131, %c0_132] : memref<16x256xf32, #tpu.memory_space<vmem>>, vector<4x128xf32>
    %c0_133 = arith.constant 0 : index
    %c128_134 = arith.constant 128 : index
    %421 = vector.load %arg20[%c0_133, %c128_134] : memref<16x256xf32, #tpu.memory_space<vmem>>, vector<4x128xf32>
    %cst_135 = arith.constant dense<0.000000e+00> : vector<4x128xf32>
    %422 = tpu.matmul %392, %246, %cst_135 {dimension_numbers = #tpu.dot_dimension_numbers<[1], [0], [0], [1], [0, 0, 1, 1], [], []>} : vector<4x32xf32>, vector<32x128xf32>, vector<4x128xf32> -> vector<4x128xf32>
    %423 = arith.addf %420, %422 : vector<4x128xf32>
    %cst_136 = arith.constant dense<0.000000e+00> : vector<4x128xf32>
    %424 = tpu.matmul %417, %247, %cst_136 {dimension_numbers = #tpu.dot_dimension_numbers<[1], [0], [0], [1], [0, 0, 1, 1], [], []>} : vector<4x32xf32>, vector<32x128xf32>, vector<4x128xf32> -> vector<4x128xf32>
    %425 = arith.addf %421, %424 : vector<4x128xf32>
    %426 = vector.extract_strided_slice %423 {offsets = [0, 0], sizes = [4, 32], strides = [1, 1]} : vector<4x128xf32> to vector<4x32xf32>
    %427 = arith.negf %426 : vector<4x32xf32>
    %428 = math.exp %427 : vector<4x32xf32>
    %cst_137 = arith.constant 1.000000e+00 : f32
    %429 = vector.broadcast %cst_137 : f32 to vector<4x32xf32>
    %430 = arith.addf %429, %428 : vector<4x32xf32>
    %431 = arith.divf %429, %430 : vector<4x32xf32>
    %432 = vector.extract_strided_slice %423 {offsets = [0, 32], sizes = [4, 32], strides = [1, 1]} : vector<4x128xf32> to vector<4x32xf32>
    %433 = arith.negf %432 : vector<4x32xf32>
    %434 = math.exp %433 : vector<4x32xf32>
    %cst_138 = arith.constant 1.000000e+00 : f32
    %435 = vector.broadcast %cst_138 : f32 to vector<4x32xf32>
    %436 = arith.addf %435, %434 : vector<4x32xf32>
    %437 = arith.divf %435, %436 : vector<4x32xf32>
    %438 = vector.extract_strided_slice %423 {offsets = [0, 64], sizes = [4, 32], strides = [1, 1]} : vector<4x128xf32> to vector<4x32xf32>
    %439 = math.tanh %438 : vector<4x32xf32>
    %440 = vector.extract_strided_slice %423 {offsets = [0, 96], sizes = [4, 32], strides = [1, 1]} : vector<4x128xf32> to vector<4x32xf32>
    %441 = arith.negf %440 : vector<4x32xf32>
    %442 = math.exp %441 : vector<4x32xf32>
    %cst_139 = arith.constant 1.000000e+00 : f32
    %443 = vector.broadcast %cst_139 : f32 to vector<4x32xf32>
    %444 = arith.addf %443, %442 : vector<4x32xf32>
    %445 = arith.divf %443, %444 : vector<4x32xf32>
    %446 = arith.mulf %437, %390 : vector<4x32xf32>
    %447 = arith.mulf %431, %439 : vector<4x32xf32>
    %448 = arith.addf %446, %447 : vector<4x32xf32>
    %449 = math.tanh %448 : vector<4x32xf32>
    %450 = arith.mulf %445, %449 : vector<4x32xf32>
    %451 = vector.extract_strided_slice %425 {offsets = [0, 0], sizes = [4, 32], strides = [1, 1]} : vector<4x128xf32> to vector<4x32xf32>
    %452 = arith.negf %451 : vector<4x32xf32>
    %453 = math.exp %452 : vector<4x32xf32>
    %cst_140 = arith.constant 1.000000e+00 : f32
    %454 = vector.broadcast %cst_140 : f32 to vector<4x32xf32>
    %455 = arith.addf %454, %453 : vector<4x32xf32>
    %456 = arith.divf %454, %455 : vector<4x32xf32>
    %457 = vector.extract_strided_slice %425 {offsets = [0, 32], sizes = [4, 32], strides = [1, 1]} : vector<4x128xf32> to vector<4x32xf32>
    %458 = arith.negf %457 : vector<4x32xf32>
    %459 = math.exp %458 : vector<4x32xf32>
    %cst_141 = arith.constant 1.000000e+00 : f32
    %460 = vector.broadcast %cst_141 : f32 to vector<4x32xf32>
    %461 = arith.addf %460, %459 : vector<4x32xf32>
    %462 = arith.divf %460, %461 : vector<4x32xf32>
    %463 = vector.extract_strided_slice %425 {offsets = [0, 64], sizes = [4, 32], strides = [1, 1]} : vector<4x128xf32> to vector<4x32xf32>
    %464 = math.tanh %463 : vector<4x32xf32>
    %465 = vector.extract_strided_slice %425 {offsets = [0, 96], sizes = [4, 32], strides = [1, 1]} : vector<4x128xf32> to vector<4x32xf32>
    %466 = arith.negf %465 : vector<4x32xf32>
    %467 = math.exp %466 : vector<4x32xf32>
    %cst_142 = arith.constant 1.000000e+00 : f32
    %468 = vector.broadcast %cst_142 : f32 to vector<4x32xf32>
    %469 = arith.addf %468, %467 : vector<4x32xf32>
    %470 = arith.divf %468, %469 : vector<4x32xf32>
    %471 = arith.mulf %462, %415 : vector<4x32xf32>
    %472 = arith.mulf %456, %464 : vector<4x32xf32>
    %473 = arith.addf %471, %472 : vector<4x32xf32>
    %474 = math.tanh %473 : vector<4x32xf32>
    %475 = arith.mulf %470, %474 : vector<4x32xf32>
    %c12_143 = arith.constant 12 : index
    %c0_144 = arith.constant 0 : index
    %476 = vector.load %arg21[%c12_143, %c0_144] : memref<16x64xf32, #tpu.memory_space<vmem>>, vector<4x32xf32>
    tpu.vector_store %arg21[%c12_143, %c0_144], %450 {strides = array<i32>} : memref<16x64xf32, #tpu.memory_space<vmem>>, vector<4x32xf32>,
    %c0_145 = arith.constant 0 : index
    %c32_146 = arith.constant 32 : index
    %477 = vector.load %arg21[%c0_145, %c32_146] : memref<16x64xf32, #tpu.memory_space<vmem>>, vector<4x32xf32>
    tpu.vector_store %arg21[%c0_145, %c32_146], %475 {strides = array<i32>} : memref<16x64xf32, #tpu.memory_space<vmem>>, vector<4x32xf32>,
    %c0_147 = arith.constant 0 : index
    %c0_148 = arith.constant 0 : index
    %478 = vector.load %arg21[%c0_147, %c0_148] : memref<16x64xf32, #tpu.memory_space<vmem>>, vector<16x64xf32>
    %c0_149 = arith.constant 0 : index
    %c0_150 = arith.constant 0 : index
    %479 = vector.load %arg7[%c0_149, %c0_150] : memref<64x256xf32, #tpu.memory_space<vmem>>, vector<64x256xf32>
    %cst_151 = arith.constant dense<0.000000e+00> : vector<16x256xf32>
    %480 = tpu.matmul %478, %479, %cst_151 {dimension_numbers = #tpu.dot_dimension_numbers<[1], [0], [0], [1], [0, 0, 1, 1], [], []>} : vector<16x64xf32>, vector<64x256xf32>, vector<16x256xf32> -> vector<16x256xf32>
    %c0_152 = arith.constant 0 : index
    %c0_153 = arith.constant 0 : index
    %481 = vector.load %arg10[%c0_152, %c0_153] : memref<1x256xf32, #tpu.memory_space<vmem>>, vector<1x256xf32>
    %482 = vector.broadcast %481 : vector<1x256xf32> to vector<16x256xf32>
    %483 = arith.addf %480, %482 : vector<16x256xf32>
    %c0_154 = arith.constant 0 : index
    %c0_155 = arith.constant 0 : index
    %484 = vector.load %arg20[%c0_154, %c0_155] : memref<16x256xf32, #tpu.memory_space<vmem>>, vector<16x256xf32>
    tpu.vector_store %arg20[%c0_154, %c0_155], %483 {strides = array<i32>} : memref<16x256xf32, #tpu.memory_space<vmem>>, vector<16x256xf32>,
    %c0_156 = arith.constant 0 : index
    %c0_157 = arith.constant 0 : index
    %485 = vector.load %arg8[%c0_156, %c0_157] : memref<32x128xf32, #tpu.memory_space<vmem>>, vector<32x128xf32>
    %c0_158 = arith.constant 0 : index
    %c0_159 = arith.constant 0 : index
    %486 = vector.load %arg9[%c0_158, %c0_159] : memref<32x128xf32, #tpu.memory_space<vmem>>, vector<32x128xf32>
    %cst_160 = arith.constant 0.000000e+00 : f32
    %487 = vector.broadcast %cst_160 : f32 to vector<4x32xf32>
    %cst_161 = arith.constant 0.000000e+00 : f32
    %488 = vector.broadcast %cst_161 : f32 to vector<4x32xf32>
    %c0_162 = arith.constant 0 : index
    %c0_163 = arith.constant 0 : index
    %489 = vector.load %arg20[%c0_162, %c0_163] : memref<16x256xf32, #tpu.memory_space<vmem>>, vector<4x128xf32>
    %c12_164 = arith.constant 12 : index
    %c128_165 = arith.constant 128 : index
    %490 = vector.load %arg20[%c12_164, %c128_165] : memref<16x256xf32, #tpu.memory_space<vmem>>, vector<4x128xf32>
    %491 = vector.extract_strided_slice %489 {offsets = [0, 0], sizes = [4, 32], strides = [1, 1]} : vector<4x128xf32> to vector<4x32xf32>
    %492 = arith.negf %491 : vector<4x32xf32>
    %493 = math.exp %492 : vector<4x32xf32>
    %cst_166 = arith.constant 1.000000e+00 : f32
    %494 = vector.broadcast %cst_166 : f32 to vector<4x32xf32>
    %495 = arith.addf %494, %493 : vector<4x32xf32>
    %496 = arith.divf %494, %495 : vector<4x32xf32>
    %497 = vector.extract_strided_slice %489 {offsets = [0, 32], sizes = [4, 32], strides = [1, 1]} : vector<4x128xf32> to vector<4x32xf32>
    %498 = arith.negf %497 : vector<4x32xf32>
    %499 = math.exp %498 : vector<4x32xf32>
    %cst_167 = arith.constant 1.000000e+00 : f32
    %500 = vector.broadcast %cst_167 : f32 to vector<4x32xf32>
    %501 = arith.addf %500, %499 : vector<4x32xf32>
    %502 = arith.divf %500, %501 : vector<4x32xf32>
    %503 = vector.extract_strided_slice %489 {offsets = [0, 64], sizes = [4, 32], strides = [1, 1]} : vector<4x128xf32> to vector<4x32xf32>
    %504 = math.tanh %503 : vector<4x32xf32>
    %505 = vector.extract_strided_slice %489 {offsets = [0, 96], sizes = [4, 32], strides = [1, 1]} : vector<4x128xf32> to vector<4x32xf32>
    %506 = arith.negf %505 : vector<4x32xf32>
    %507 = math.exp %506 : vector<4x32xf32>
    %cst_168 = arith.constant 1.000000e+00 : f32
    %508 = vector.broadcast %cst_168 : f32 to vector<4x32xf32>
    %509 = arith.addf %508, %507 : vector<4x32xf32>
    %510 = arith.divf %508, %509 : vector<4x32xf32>
    %511 = arith.mulf %502, %487 : vector<4x32xf32>
    %512 = arith.mulf %496, %504 : vector<4x32xf32>
    %513 = arith.addf %511, %512 : vector<4x32xf32>
    %514 = math.tanh %513 : vector<4x32xf32>
    %515 = arith.mulf %510, %514 : vector<4x32xf32>
    %516 = vector.extract_strided_slice %490 {offsets = [0, 0], sizes = [4, 32], strides = [1, 1]} : vector<4x128xf32> to vector<4x32xf32>
    %517 = arith.negf %516 : vector<4x32xf32>
    %518 = math.exp %517 : vector<4x32xf32>
    %cst_169 = arith.constant 1.000000e+00 : f32
    %519 = vector.broadcast %cst_169 : f32 to vector<4x32xf32>
    %520 = arith.addf %519, %518 : vector<4x32xf32>
    %521 = arith.divf %519, %520 : vector<4x32xf32>
    %522 = vector.extract_strided_slice %490 {offsets = [0, 32], sizes = [4, 32], strides = [1, 1]} : vector<4x128xf32> to vector<4x32xf32>
    %523 = arith.negf %522 : vector<4x32xf32>
    %524 = math.exp %523 : vector<4x32xf32>
    %cst_170 = arith.constant 1.000000e+00 : f32
    %525 = vector.broadcast %cst_170 : f32 to vector<4x32xf32>
    %526 = arith.addf %525, %524 : vector<4x32xf32>
    %527 = arith.divf %525, %526 : vector<4x32xf32>
    %528 = vector.extract_strided_slice %490 {offsets = [0, 64], sizes = [4, 32], strides = [1, 1]} : vector<4x128xf32> to vector<4x32xf32>
    %529 = math.tanh %528 : vector<4x32xf32>
    %530 = vector.extract_strided_slice %490 {offsets = [0, 96], sizes = [4, 32], strides = [1, 1]} : vector<4x128xf32> to vector<4x32xf32>
    %531 = arith.negf %530 : vector<4x32xf32>
    %532 = math.exp %531 : vector<4x32xf32>
    %cst_171 = arith.constant 1.000000e+00 : f32
    %533 = vector.broadcast %cst_171 : f32 to vector<4x32xf32>
    %534 = arith.addf %533, %532 : vector<4x32xf32>
    %535 = arith.divf %533, %534 : vector<4x32xf32>
    %536 = arith.mulf %527, %488 : vector<4x32xf32>
    %537 = arith.mulf %521, %529 : vector<4x32xf32>
    %538 = arith.addf %536, %537 : vector<4x32xf32>
    %539 = math.tanh %538 : vector<4x32xf32>
    %540 = arith.mulf %535, %539 : vector<4x32xf32>
    %c4_172 = arith.constant 4 : index
    %c0_173 = arith.constant 0 : index
    %541 = vector.load %arg20[%c4_172, %c0_173] : memref<16x256xf32, #tpu.memory_space<vmem>>, vector<4x128xf32>
    %c8_174 = arith.constant 8 : index
    %c128_175 = arith.constant 128 : index
    %542 = vector.load %arg20[%c8_174, %c128_175] : memref<16x256xf32, #tpu.memory_space<vmem>>, vector<4x128xf32>
    %cst_176 = arith.constant dense<0.000000e+00> : vector<4x128xf32>
    %543 = tpu.matmul %515, %485, %cst_176 {dimension_numbers = #tpu.dot_dimension_numbers<[1], [0], [0], [1], [0, 0, 1, 1], [], []>} : vector<4x32xf32>, vector<32x128xf32>, vector<4x128xf32> -> vector<4x128xf32>
    %544 = arith.addf %541, %543 : vector<4x128xf32>
    %cst_177 = arith.constant dense<0.000000e+00> : vector<4x128xf32>
    %545 = tpu.matmul %540, %486, %cst_177 {dimension_numbers = #tpu.dot_dimension_numbers<[1], [0], [0], [1], [0, 0, 1, 1], [], []>} : vector<4x32xf32>, vector<32x128xf32>, vector<4x128xf32> -> vector<4x128xf32>
    %546 = arith.addf %542, %545 : vector<4x128xf32>
    %547 = vector.extract_strided_slice %544 {offsets = [0, 0], sizes = [4, 32], strides = [1, 1]} : vector<4x128xf32> to vector<4x32xf32>
    %548 = arith.negf %547 : vector<4x32xf32>
    %549 = math.exp %548 : vector<4x32xf32>
    %cst_178 = arith.constant 1.000000e+00 : f32
    %550 = vector.broadcast %cst_178 : f32 to vector<4x32xf32>
    %551 = arith.addf %550, %549 : vector<4x32xf32>
    %552 = arith.divf %550, %551 : vector<4x32xf32>
    %553 = vector.extract_strided_slice %544 {offsets = [0, 32], sizes = [4, 32], strides = [1, 1]} : vector<4x128xf32> to vector<4x32xf32>
    %554 = arith.negf %553 : vector<4x32xf32>
    %555 = math.exp %554 : vector<4x32xf32>
    %cst_179 = arith.constant 1.000000e+00 : f32
    %556 = vector.broadcast %cst_179 : f32 to vector<4x32xf32>
    %557 = arith.addf %556, %555 : vector<4x32xf32>
    %558 = arith.divf %556, %557 : vector<4x32xf32>
    %559 = vector.extract_strided_slice %544 {offsets = [0, 64], sizes = [4, 32], strides = [1, 1]} : vector<4x128xf32> to vector<4x32xf32>
    %560 = math.tanh %559 : vector<4x32xf32>
    %561 = vector.extract_strided_slice %544 {offsets = [0, 96], sizes = [4, 32], strides = [1, 1]} : vector<4x128xf32> to vector<4x32xf32>
    %562 = arith.negf %561 : vector<4x32xf32>
    %563 = math.exp %562 : vector<4x32xf32>
    %cst_180 = arith.constant 1.000000e+00 : f32
    %564 = vector.broadcast %cst_180 : f32 to vector<4x32xf32>
    %565 = arith.addf %564, %563 : vector<4x32xf32>
    %566 = arith.divf %564, %565 : vector<4x32xf32>
    %567 = arith.mulf %558, %513 : vector<4x32xf32>
    %568 = arith.mulf %552, %560 : vector<4x32xf32>
    %569 = arith.addf %567, %568 : vector<4x32xf32>
    %570 = math.tanh %569 : vector<4x32xf32>
    %571 = arith.mulf %566, %570 : vector<4x32xf32>
    %572 = vector.extract_strided_slice %546 {offsets = [0, 0], sizes = [4, 32], strides = [1, 1]} : vector<4x128xf32> to vector<4x32xf32>
    %573 = arith.negf %572 : vector<4x32xf32>
    %574 = math.exp %573 : vector<4x32xf32>
    %cst_181 = arith.constant 1.000000e+00 : f32
    %575 = vector.broadcast %cst_181 : f32 to vector<4x32xf32>
    %576 = arith.addf %575, %574 : vector<4x32xf32>
    %577 = arith.divf %575, %576 : vector<4x32xf32>
    %578 = vector.extract_strided_slice %546 {offsets = [0, 32], sizes = [4, 32], strides = [1, 1]} : vector<4x128xf32> to vector<4x32xf32>
    %579 = arith.negf %578 : vector<4x32xf32>
    %580 = math.exp %579 : vector<4x32xf32>
    %cst_182 = arith.constant 1.000000e+00 : f32
    %581 = vector.broadcast %cst_182 : f32 to vector<4x32xf32>
    %582 = arith.addf %581, %580 : vector<4x32xf32>
    %583 = arith.divf %581, %582 : vector<4x32xf32>
    %584 = vector.extract_strided_slice %546 {offsets = [0, 64], sizes = [4, 32], strides = [1, 1]} : vector<4x128xf32> to vector<4x32xf32>
    %585 = math.tanh %584 : vector<4x32xf32>
    %586 = vector.extract_strided_slice %546 {offsets = [0, 96], sizes = [4, 32], strides = [1, 1]} : vector<4x128xf32> to vector<4x32xf32>
    %587 = arith.negf %586 : vector<4x32xf32>
    %588 = math.exp %587 : vector<4x32xf32>
    %cst_183 = arith.constant 1.000000e+00 : f32
    %589 = vector.broadcast %cst_183 : f32 to vector<4x32xf32>
    %590 = arith.addf %589, %588 : vector<4x32xf32>
    %591 = arith.divf %589, %590 : vector<4x32xf32>
    %592 = arith.mulf %583, %538 : vector<4x32xf32>
    %593 = arith.mulf %577, %585 : vector<4x32xf32>
    %594 = arith.addf %592, %593 : vector<4x32xf32>
    %595 = math.tanh %594 : vector<4x32xf32>
    %596 = arith.mulf %591, %595 : vector<4x32xf32>
    %c8_184 = arith.constant 8 : index
    %c0_185 = arith.constant 0 : index
    %597 = vector.load %arg20[%c8_184, %c0_185] : memref<16x256xf32, #tpu.memory_space<vmem>>, vector<4x128xf32>
    %c4_186 = arith.constant 4 : index
    %c128_187 = arith.constant 128 : index
    %598 = vector.load %arg20[%c4_186, %c128_187] : memref<16x256xf32, #tpu.memory_space<vmem>>, vector<4x128xf32>
    %cst_188 = arith.constant dense<0.000000e+00> : vector<4x128xf32>
    %599 = tpu.matmul %571, %485, %cst_188 {dimension_numbers = #tpu.dot_dimension_numbers<[1], [0], [0], [1], [0, 0, 1, 1], [], []>} : vector<4x32xf32>, vector<32x128xf32>, vector<4x128xf32> -> vector<4x128xf32>
    %600 = arith.addf %597, %599 : vector<4x128xf32>
    %cst_189 = arith.constant dense<0.000000e+00> : vector<4x128xf32>
    %601 = tpu.matmul %596, %486, %cst_189 {dimension_numbers = #tpu.dot_dimension_numbers<[1], [0], [0], [1], [0, 0, 1, 1], [], []>} : vector<4x32xf32>, vector<32x128xf32>, vector<4x128xf32> -> vector<4x128xf32>
    %602 = arith.addf %598, %601 : vector<4x128xf32>
    %603 = vector.extract_strided_slice %600 {offsets = [0, 0], sizes = [4, 32], strides = [1, 1]} : vector<4x128xf32> to vector<4x32xf32>
    %604 = arith.negf %603 : vector<4x32xf32>
    %605 = math.exp %604 : vector<4x32xf32>
    %cst_190 = arith.constant 1.000000e+00 : f32
    %606 = vector.broadcast %cst_190 : f32 to vector<4x32xf32>
    %607 = arith.addf %606, %605 : vector<4x32xf32>
    %608 = arith.divf %606, %607 : vector<4x32xf32>
    %609 = vector.extract_strided_slice %600 {offsets = [0, 32], sizes = [4, 32], strides = [1, 1]} : vector<4x128xf32> to vector<4x32xf32>
    %610 = arith.negf %609 : vector<4x32xf32>
    %611 = math.exp %610 : vector<4x32xf32>
    %cst_191 = arith.constant 1.000000e+00 : f32
    %612 = vector.broadcast %cst_191 : f32 to vector<4x32xf32>
    %613 = arith.addf %612, %611 : vector<4x32xf32>
    %614 = arith.divf %612, %613 : vector<4x32xf32>
    %615 = vector.extract_strided_slice %600 {offsets = [0, 64], sizes = [4, 32], strides = [1, 1]} : vector<4x128xf32> to vector<4x32xf32>
    %616 = math.tanh %615 : vector<4x32xf32>
    %617 = vector.extract_strided_slice %600 {offsets = [0, 96], sizes = [4, 32], strides = [1, 1]} : vector<4x128xf32> to vector<4x32xf32>
    %618 = arith.negf %617 : vector<4x32xf32>
    %619 = math.exp %618 : vector<4x32xf32>
    %cst_192 = arith.constant 1.000000e+00 : f32
    %620 = vector.broadcast %cst_192 : f32 to vector<4x32xf32>
    %621 = arith.addf %620, %619 : vector<4x32xf32>
    %622 = arith.divf %620, %621 : vector<4x32xf32>
    %623 = arith.mulf %614, %569 : vector<4x32xf32>
    %624 = arith.mulf %608, %616 : vector<4x32xf32>
    %625 = arith.addf %623, %624 : vector<4x32xf32>
    %626 = math.tanh %625 : vector<4x32xf32>
    %627 = arith.mulf %622, %626 : vector<4x32xf32>
    %628 = vector.extract_strided_slice %602 {offsets = [0, 0], sizes = [4, 32], strides = [1, 1]} : vector<4x128xf32> to vector<4x32xf32>
    %629 = arith.negf %628 : vector<4x32xf32>
    %630 = math.exp %629 : vector<4x32xf32>
    %cst_193 = arith.constant 1.000000e+00 : f32
    %631 = vector.broadcast %cst_193 : f32 to vector<4x32xf32>
    %632 = arith.addf %631, %630 : vector<4x32xf32>
    %633 = arith.divf %631, %632 : vector<4x32xf32>
    %634 = vector.extract_strided_slice %602 {offsets = [0, 32], sizes = [4, 32], strides = [1, 1]} : vector<4x128xf32> to vector<4x32xf32>
    %635 = arith.negf %634 : vector<4x32xf32>
    %636 = math.exp %635 : vector<4x32xf32>
    %cst_194 = arith.constant 1.000000e+00 : f32
    %637 = vector.broadcast %cst_194 : f32 to vector<4x32xf32>
    %638 = arith.addf %637, %636 : vector<4x32xf32>
    %639 = arith.divf %637, %638 : vector<4x32xf32>
    %640 = vector.extract_strided_slice %602 {offsets = [0, 64], sizes = [4, 32], strides = [1, 1]} : vector<4x128xf32> to vector<4x32xf32>
    %641 = math.tanh %640 : vector<4x32xf32>
    %642 = vector.extract_strided_slice %602 {offsets = [0, 96], sizes = [4, 32], strides = [1, 1]} : vector<4x128xf32> to vector<4x32xf32>
    %643 = arith.negf %642 : vector<4x32xf32>
    %644 = math.exp %643 : vector<4x32xf32>
    %cst_195 = arith.constant 1.000000e+00 : f32
    %645 = vector.broadcast %cst_195 : f32 to vector<4x32xf32>
    %646 = arith.addf %645, %644 : vector<4x32xf32>
    %647 = arith.divf %645, %646 : vector<4x32xf32>
    %648 = arith.mulf %639, %594 : vector<4x32xf32>
    %649 = arith.mulf %633, %641 : vector<4x32xf32>
    %650 = arith.addf %648, %649 : vector<4x32xf32>
    %651 = math.tanh %650 : vector<4x32xf32>
    %652 = arith.mulf %647, %651 : vector<4x32xf32>
    %c12_196 = arith.constant 12 : index
    %c0_197 = arith.constant 0 : index
    %653 = vector.load %arg20[%c12_196, %c0_197] : memref<16x256xf32, #tpu.memory_space<vmem>>, vector<4x128xf32>
    %c0_198 = arith.constant 0 : index
    %c128_199 = arith.constant 128 : index
    %654 = vector.load %arg20[%c0_198, %c128_199] : memref<16x256xf32, #tpu.memory_space<vmem>>, vector<4x128xf32>
    %cst_200 = arith.constant dense<0.000000e+00> : vector<4x128xf32>
    %655 = tpu.matmul %627, %485, %cst_200 {dimension_numbers = #tpu.dot_dimension_numbers<[1], [0], [0], [1], [0, 0, 1, 1], [], []>} : vector<4x32xf32>, vector<32x128xf32>, vector<4x128xf32> -> vector<4x128xf32>
    %656 = arith.addf %653, %655 : vector<4x128xf32>
    %cst_201 = arith.constant dense<0.000000e+00> : vector<4x128xf32>
    %657 = tpu.matmul %652, %486, %cst_201 {dimension_numbers = #tpu.dot_dimension_numbers<[1], [0], [0], [1], [0, 0, 1, 1], [], []>} : vector<4x32xf32>, vector<32x128xf32>, vector<4x128xf32> -> vector<4x128xf32>
    %658 = arith.addf %654, %657 : vector<4x128xf32>
    %659 = vector.extract_strided_slice %656 {offsets = [0, 0], sizes = [4, 32], strides = [1, 1]} : vector<4x128xf32> to vector<4x32xf32>
    %660 = arith.negf %659 : vector<4x32xf32>
    %661 = math.exp %660 : vector<4x32xf32>
    %cst_202 = arith.constant 1.000000e+00 : f32
    %662 = vector.broadcast %cst_202 : f32 to vector<4x32xf32>
    %663 = arith.addf %662, %661 : vector<4x32xf32>
    %664 = arith.divf %662, %663 : vector<4x32xf32>
    %665 = vector.extract_strided_slice %656 {offsets = [0, 32], sizes = [4, 32], strides = [1, 1]} : vector<4x128xf32> to vector<4x32xf32>
    %666 = arith.negf %665 : vector<4x32xf32>
    %667 = math.exp %666 : vector<4x32xf32>
    %cst_203 = arith.constant 1.000000e+00 : f32
    %668 = vector.broadcast %cst_203 : f32 to vector<4x32xf32>
    %669 = arith.addf %668, %667 : vector<4x32xf32>
    %670 = arith.divf %668, %669 : vector<4x32xf32>
    %671 = vector.extract_strided_slice %656 {offsets = [0, 64], sizes = [4, 32], strides = [1, 1]} : vector<4x128xf32> to vector<4x32xf32>
    %672 = math.tanh %671 : vector<4x32xf32>
    %673 = vector.extract_strided_slice %656 {offsets = [0, 96], sizes = [4, 32], strides = [1, 1]} : vector<4x128xf32> to vector<4x32xf32>
    %674 = arith.negf %673 : vector<4x32xf32>
    %675 = math.exp %674 : vector<4x32xf32>
    %cst_204 = arith.constant 1.000000e+00 : f32
    %676 = vector.broadcast %cst_204 : f32 to vector<4x32xf32>
    %677 = arith.addf %676, %675 : vector<4x32xf32>
    %678 = arith.divf %676, %677 : vector<4x32xf32>
    %679 = arith.mulf %670, %625 : vector<4x32xf32>
    %680 = arith.mulf %664, %672 : vector<4x32xf32>
    %681 = arith.addf %679, %680 : vector<4x32xf32>
    %682 = math.tanh %681 : vector<4x32xf32>
    %683 = arith.mulf %678, %682 : vector<4x32xf32>
    %684 = vector.extract_strided_slice %658 {offsets = [0, 0], sizes = [4, 32], strides = [1, 1]} : vector<4x128xf32> to vector<4x32xf32>
    %685 = arith.negf %684 : vector<4x32xf32>
    %686 = math.exp %685 : vector<4x32xf32>
    %cst_205 = arith.constant 1.000000e+00 : f32
    %687 = vector.broadcast %cst_205 : f32 to vector<4x32xf32>
    %688 = arith.addf %687, %686 : vector<4x32xf32>
    %689 = arith.divf %687, %688 : vector<4x32xf32>
    %690 = vector.extract_strided_slice %658 {offsets = [0, 32], sizes = [4, 32], strides = [1, 1]} : vector<4x128xf32> to vector<4x32xf32>
    %691 = arith.negf %690 : vector<4x32xf32>
    %692 = math.exp %691 : vector<4x32xf32>
    %cst_206 = arith.constant 1.000000e+00 : f32
    %693 = vector.broadcast %cst_206 : f32 to vector<4x32xf32>
    %694 = arith.addf %693, %692 : vector<4x32xf32>
    %695 = arith.divf %693, %694 : vector<4x32xf32>
    %696 = vector.extract_strided_slice %658 {offsets = [0, 64], sizes = [4, 32], strides = [1, 1]} : vector<4x128xf32> to vector<4x32xf32>
    %697 = math.tanh %696 : vector<4x32xf32>
    %698 = vector.extract_strided_slice %658 {offsets = [0, 96], sizes = [4, 32], strides = [1, 1]} : vector<4x128xf32> to vector<4x32xf32>
    %699 = arith.negf %698 : vector<4x32xf32>
    %700 = math.exp %699 : vector<4x32xf32>
    %cst_207 = arith.constant 1.000000e+00 : f32
    %701 = vector.broadcast %cst_207 : f32 to vector<4x32xf32>
    %702 = arith.addf %701, %700 : vector<4x32xf32>
    %703 = arith.divf %701, %702 : vector<4x32xf32>
    %704 = arith.mulf %695, %650 : vector<4x32xf32>
    %705 = arith.mulf %689, %697 : vector<4x32xf32>
    %706 = arith.addf %704, %705 : vector<4x32xf32>
    %707 = math.tanh %706 : vector<4x32xf32>
    %708 = arith.mulf %703, %707 : vector<4x32xf32>
    %c0_208 = arith.constant 0 : index
    %c0_209 = arith.constant 0 : index
    %709 = vector.load %arg11[%c0_208, %c0_209] : memref<32x128xf32, #tpu.memory_space<vmem>>, vector<32x128xf32>
    %cst_210 = arith.constant dense<0.000000e+00> : vector<4x128xf32>
    %710 = tpu.matmul %683, %709, %cst_210 {dimension_numbers = #tpu.dot_dimension_numbers<[1], [0], [0], [1], [0, 0, 1, 1], [], []>} : vector<4x32xf32>, vector<32x128xf32>, vector<4x128xf32> -> vector<4x128xf32>
    %c0_211 = arith.constant 0 : index
    %c0_212 = arith.constant 0 : index
    %711 = vector.load %arg12[%c0_211, %c0_212] : memref<32x128xf32, #tpu.memory_space<vmem>>, vector<32x128xf32>
    %cst_213 = arith.constant dense<0.000000e+00> : vector<4x128xf32>
    %712 = tpu.matmul %708, %711, %cst_213 {dimension_numbers = #tpu.dot_dimension_numbers<[1], [0], [0], [1], [0, 0, 1, 1], [], []>} : vector<4x32xf32>, vector<32x128xf32>, vector<4x128xf32> -> vector<4x128xf32>
    %713 = arith.addf %710, %712 : vector<4x128xf32>
    %c0_214 = arith.constant 0 : index
    %c0_215 = arith.constant 0 : index
    %714 = vector.load %arg2[%c0_214, %c0_215] : memref<4x27xf32, #tpu.memory_space<vmem>>, vector<4x27xf32>
    %c0_216 = arith.constant 0 : index
    %c0_217 = arith.constant 0 : index
    %715 = vector.load %arg13[%c0_216, %c0_217] : memref<27x128xf32, #tpu.memory_space<vmem>>, vector<27x128xf32>
    %cst_218 = arith.constant dense<0.000000e+00> : vector<4x128xf32>
    %716 = tpu.matmul %714, %715, %cst_218 {dimension_numbers = #tpu.dot_dimension_numbers<[1], [0], [0], [1], [0, 0, 1, 1], [], []>} : vector<4x27xf32>, vector<27x128xf32>, vector<4x128xf32> -> vector<4x128xf32>
    %717 = arith.addf %713, %716 : vector<4x128xf32>
    %c0_219 = arith.constant 0 : index
    %c0_220 = arith.constant 0 : index
    %718 = vector.load %arg14[%c0_219, %c0_220] : memref<1x128xf32, #tpu.memory_space<vmem>>, vector<1x128xf32>
    %719 = vector.broadcast %718 : vector<1x128xf32> to vector<4x128xf32>
    %720 = arith.addf %717, %719 : vector<4x128xf32>
    %cst_221 = arith.constant 0.000000e+00 : f32
    %721 = vector.broadcast %cst_221 : f32 to vector<4x128xf32>
    %722 = arith.maximumf %720, %721 : vector<4x128xf32>
    %c0_222 = arith.constant 0 : index
    %c0_223 = arith.constant 0 : index
    %723 = vector.load %arg15[%c0_222, %c0_223] : memref<128x128xf32, #tpu.memory_space<vmem>>, vector<128x128xf32>
    %cst_224 = arith.constant dense<0.000000e+00> : vector<4x128xf32>
    %724 = tpu.matmul %722, %723, %cst_224 {dimension_numbers = #tpu.dot_dimension_numbers<[1], [0], [0], [1], [0, 0, 1, 1], [], []>} : vector<4x128xf32>, vector<128x128xf32>, vector<4x128xf32> -> vector<4x128xf32>
    %c0_225 = arith.constant 0 : index
    %c0_226 = arith.constant 0 : index
    %725 = vector.load %arg16[%c0_225, %c0_226] : memref<1x128xf32, #tpu.memory_space<vmem>>, vector<1x128xf32>
    %726 = vector.broadcast %725 : vector<1x128xf32> to vector<4x128xf32>
    %727 = arith.addf %724, %726 : vector<4x128xf32>
    %cst_227 = arith.constant 0.000000e+00 : f32
    %728 = vector.broadcast %cst_227 : f32 to vector<4x128xf32>
    %729 = arith.maximumf %727, %728 : vector<4x128xf32>
    %c0_228 = arith.constant 0 : index
    %c0_229 = arith.constant 0 : index
    %730 = vector.load %arg17[%c0_228, %c0_229] : memref<128x1xf32, #tpu.memory_space<vmem>>, vector<128x1xf32>
    %cst_230 = arith.constant dense<0.000000e+00> : vector<4x1xf32>
    %731 = tpu.matmul %729, %730, %cst_230 {dimension_numbers = #tpu.dot_dimension_numbers<[1], [0], [0], [1], [0, 0, 1, 1], [], []>} : vector<4x128xf32>, vector<128x1xf32>, vector<4x1xf32> -> vector<4x1xf32>
    %c0_231 = arith.constant 0 : index
    %c0_232 = arith.constant 0 : index
    %732 = vector.load %arg18[%c0_231, %c0_232] : memref<1x1xf32, #tpu.memory_space<vmem>>, vector<1x1xf32>
    %733 = vector.broadcast %732 : vector<1x1xf32> to vector<4x1xf32>
    %734 = arith.addf %731, %733 : vector<4x1xf32>
    %735 = arith.negf %734 : vector<4x1xf32>
    %736 = math.exp %735 : vector<4x1xf32>
    %cst_233 = arith.constant 1.000000e+00 : f32
    %737 = vector.broadcast %cst_233 : f32 to vector<4x1xf32>
    %738 = arith.addf %737, %736 : vector<4x1xf32>
    %739 = arith.divf %737, %738 : vector<4x1xf32>
    %c0_234 = arith.constant 0 : index
    %c0_235 = arith.constant 0 : index
    %740 = vector.load %arg19[%c0_234, %c0_235] : memref<4x1xf32, #tpu.memory_space<vmem>>, vector<4x1xf32>
    tpu.vector_store %arg19[%c0_234, %c0_235], %739 {strides = array<i32>} : memref<4x1xf32, #tpu.memory_space<vmem>>, vector<4x1xf32>,
    return
  }
  func.func @transform_0(%arg0: i32) -> (i32, i32) {
    %c0_i32 = arith.constant 0 : i32
    %c0_i32_0 = arith.constant 0 : i32
    %c0_i32_1 = arith.constant 0 : i32
    return %c0_i32, %c0_i32_0 : i32, i32
  }
  func.func @transform_1(%arg0: i32) -> (i32, i32) {
    %c0_i32 = arith.constant 0 : i32
    %c0_i32_0 = arith.constant 0 : i32
    %c0_i32_1 = arith.constant 0 : i32
    return %c0_i32, %c0_i32_0 : i32, i32
  }
  func.func @transform_2(%arg0: i32) -> (i32, i32) {
    %c0_i32 = arith.constant 0 : i32
    %c0_i32_0 = arith.constant 0 : i32
    %c0_i32_1 = arith.constant 0 : i32
    return %c0_i32, %c0_i32_0 : i32, i32
  }
  func.func @transform_3(%arg0: i32) -> (i32, i32) {
    %c0_i32 = arith.constant 0 : i32
    %c0_i32_0 = arith.constant 0 : i32
    %c0_i32_1 = arith.constant 0 : i32
    return %c0_i32, %c0_i32_0 : i32, i32
  }
  func.func @transform_4(%arg0: i32) -> (i32, i32) {
    %c0_i32 = arith.constant 0 : i32
    %c0_i32_0 = arith.constant 0 : i32
    %c0_i32_1 = arith.constant 0 : i32
    return %c0_i32, %c0_i32_0 : i32, i32
  }
  func.func @transform_5(%arg0: i32) -> (i32, i32) {
    %c0_i32 = arith.constant 0 : i32
    %c0_i32_0 = arith.constant 0 : i32
    %c0_i32_1 = arith.constant 0 : i32
    return %c0_i32, %c0_i32_0 : i32, i32
  }
  func.func @transform_6(%arg0: i32) -> (i32, i32) {
    %c0_i32 = arith.constant 0 : i32
    %c0_i32_0 = arith.constant 0 : i32
    %c0_i32_1 = arith.constant 0 : i32
    return %c0_i32, %c0_i32_0 : i32, i32
  }
  func.func @transform_7(%arg0: i32) -> (i32, i32) {
    %c0_i32 = arith.constant 0 : i32
    %c0_i32_0 = arith.constant 0 : i32
    %c0_i32_1 = arith.constant 0 : i32
    return %c0_i32, %c0_i32_0 : i32, i32
  }
  func.func @transform_8(%arg0: i32) -> (i32, i32) {
    %c0_i32 = arith.constant 0 : i32
    %c0_i32_0 = arith.constant 0 : i32
    %c0_i32_1 = arith.constant 0 : i32
    return %c0_i32, %c0_i32_0 : i32, i32
  }
  func.func @transform_9(%arg0: i32) -> (i32, i32) {
    %c0_i32 = arith.constant 0 : i32
    %c0_i32_0 = arith.constant 0 : i32
    %c0_i32_1 = arith.constant 0 : i32
    return %c0_i32, %c0_i32_0 : i32, i32
  }
  func.func @transform_10(%arg0: i32) -> (i32, i32) {
    %c0_i32 = arith.constant 0 : i32
    %c0_i32_0 = arith.constant 0 : i32
    %c0_i32_1 = arith.constant 0 : i32
    return %c0_i32, %c0_i32_0 : i32, i32
  }
  func.func @transform_11(%arg0: i32) -> (i32, i32) {
    %c0_i32 = arith.constant 0 : i32
    %c0_i32_0 = arith.constant 0 : i32
    %c0_i32_1 = arith.constant 0 : i32
    return %c0_i32, %c0_i32_0 : i32, i32
  }
  func.func @transform_12(%arg0: i32) -> (i32, i32) {
    %c0_i32 = arith.constant 0 : i32
    %c0_i32_0 = arith.constant 0 : i32
    %c0_i32_1 = arith.constant 0 : i32
    return %c0_i32, %c0_i32_0 : i32, i32
  }
  func.func @transform_13(%arg0: i32) -> (i32, i32) {
    %c0_i32 = arith.constant 0 : i32
    %c0_i32_0 = arith.constant 0 : i32
    %c0_i32_1 = arith.constant 0 : i32
    return %c0_i32, %c0_i32_0 : i32, i32
  }
  func.func @transform_14(%arg0: i32) -> (i32, i32) {
    %c0_i32 = arith.constant 0 : i32
    %c0_i32_0 = arith.constant 0 : i32
    %c0_i32_1 = arith.constant 0 : i32
    return %c0_i32, %c0_i32_0 : i32, i32
  }
  func.func @transform_15(%arg0: i32) -> (i32, i32) {
    %c0_i32 = arith.constant 0 : i32
    %c0_i32_0 = arith.constant 0 : i32
    %c0_i32_1 = arith.constant 0 : i32
    return %c0_i32, %c0_i32_0 : i32, i32
  }
  func.func @transform_16(%arg0: i32) -> (i32, i32) {
    %c0_i32 = arith.constant 0 : i32
    %c0_i32_0 = arith.constant 0 : i32
    %c0_i32_1 = arith.constant 0 : i32
    return %c0_i32, %c0_i32_0 : i32, i32
  }
  func.func @transform_17(%arg0: i32) -> (i32, i32) {
    %c0_i32 = arith.constant 0 : i32
    %c0_i32_0 = arith.constant 0 : i32
    %c0_i32_1 = arith.constant 0 : i32
    return %c0_i32, %c0_i32_0 : i32, i32
  }
  func.func @transform_18(%arg0: i32) -> (i32, i32) {
    %c0_i32 = arith.constant 0 : i32
    %c0_i32_0 = arith.constant 0 : i32
    %c0_i32_1 = arith.constant 0 : i32
    return %c0_i32, %c0_i32_0 : i32, i32
  }
}

</mosaic_0001>

<bundles_post_ra>
// kernel: net_forward.3
= control target key start
LH: loop header
LB: loop body
LE: loop exit
PB: predicated region body
PF: predicated region fallthrough
CT: control target
= control target key end

     0   :  { %v1398_v3 = vmov 0.0   ;;  %vm147_vm0 = vcmask 1043456   ;;  %vm122_vm1 = vcmask 818176   ;;  %vm1057_vm2 = vcmask 588800   ;;  %s2000_s5 = inlined_call_operand.vmem [shape: f32[3,100,200], index: 5, kind: input, shape index: {}]   ;;  %s2001_s1 = inlined_call_operand.vmem [shape: f32[64,100], index: 1, kind: input, shape index: {}]   ;;  %s2002_s3 = inlined_call_operand.vmem [shape: f32[64,100], index: 3, kind: input, shape index: {}]   ;;  %s2003_s0 = inlined_call_operand.vmem [shape: f32[64,100], index: 0, kind: input, shape index: {}]   ;;  %s2004_s2 = inlined_call_operand.vmem [shape: f32[64,100], index: 2, kind: input, shape index: {}]   ;;  %s2005_s4 = inlined_call_operand.vmem [shape: f32[64,100], index: 4, kind: input, shape index: {}]   ;;  %s2006_s6 = inlined_call_operand.vmem [shape: f32[1,200], index: 6, kind: input, shape index: {}]   ;;  %s2007_s7 = inlined_call_operand.vmem [shape: f32[64,200], index: 7, kind: output, shape index: {}]  }
   0x1   :  { %v1078_v0 = vld [vmem:[%s2000_s5 + $0xd8] sm:$0xff]  ;;  %v1080_v1 = vld [vmem:[%s2000_s5 + $0xe8] sm:$0xff]  ;;  %v1077_v2 = vld [vmem:[%s2000_s5 + $0xd0] sm:$0xff]  ;;  %218 = vmatprep.mubr.f32.mxu0 %v1398_v3  ;;  %673 = vmatprep.mubr.f32.mxu1 %v1398_v3 }
   0x2   :  { %v1189_v4 = vpack.c.bf16 %v1080_v1, %v1078_v0  ;;  %v1079_v5 = vld [vmem:[%s2000_s5 + $0xe0] sm:$0xff]  ;;  %v1082_v6 = vld [vmem:[%s2000_s5 + $0xf8] sm:$0xff]  ;;  %v1084_v7 = vld [vmem:[%s2000_s5 + $0x108] sm:$0xff] }
   0x3   :  { %v1191_v8 = vpack.c.bf16 %v1079_v5, %v1077_v2  ;;  %v1193_v9 = vpack.c.bf16 %v1084_v7, %v1082_v6  ;;  %v1081_v10 = vld [vmem:[%s2000_s5 + $0xf0] sm:$0xff]  ;;  %v1083_v11 = vld [vmem:[%s2000_s5 + $0x100] sm:$0xff]  ;;  %v1086_v12 = vld [vmem:[%s2000_s5 + $0x118] sm:$0xff] }
   0x4   :  { %1190 = vmatprep.subr.bf16.mxu0 %v1189_v4  ;;  %1262 = vmatprep.subr.bf16.mxu1 %v1189_v4  ;;  %v1088_v13 = vld [vmem:[%s2000_s5 + $0x128] sm:$0xff]  ;;  %v1195_v14 = vpack.c.bf16 %v1083_v11, %v1081_v10  ;;  %v1085_v16 = vld [vmem:[%s2000_s5 + $0x110] sm:$0xff]  ;;  %v1087_v17 = vld [vmem:[%s2000_s5 + $0x120] sm:$0xff] }
   0x5   :  { %1192 = vmatpush1.bf16.msra.mxu0 %v1191_v8  ;;  %1264 = vmatpush1.bf16.msra.mxu1 %v1191_v8  ;;  %v1197_v15 = vpack.c.bf16 %v1088_v13, %v1086_v12  ;;  %v1090_v18 = vld [vmem:[%s2000_s5 + $0x138] sm:$0xff]  ;;  %v1092_v19 = vld [vmem:[%s2000_s5 + $0x148] sm:$0xff]  ;;  %v1199_v20 = vpack.c.bf16 %v1087_v17, %v1085_v16  ;;  %v1089_v22 = vld [vmem:[%s2000_s5 + $0x130] sm:$0xff] }
   0x6   :  { %1194 = vmatprep.subr.bf16.mxu0 %v1193_v9  ;;  %1266 = vmatprep.subr.bf16.mxu1 %v1193_v9  ;;  %v1201_v21 = vpack.c.bf16 %v1092_v19, %v1090_v18  ;;  %v1091_v23 = vld [vmem:[%s2000_s5 + $0x140] sm:$0xff]  ;;  %v1094_v24 = vld [vmem:[%s2000_s5 + $0x158] sm:$0xff]  ;;  %v1096_v25 = vld [vmem:[%s2000_s5 + $0x168] sm:$0xff] }
   0x7   :  { %v1203_v26 = vpack.c.bf16 %v1091_v23, %v1089_v22  ;;  %v1205_v27 = vpack.c.bf16 %v1096_v25, %v1094_v24  ;;  %v1093_v28 = vld [vmem:[%s2000_s5 + $0x150] sm:$0xff]  ;;  %v1095_v29 = vld [vmem:[%s2000_s5 + $0x160] sm:$0xff]  ;;  %v1098_v30 = vld [vmem:[%s2000_s5 + $0x178] sm:$0xff] }
   0x8   :  { %v1100_v31 = vld [vmem:[%s2000_s5 + $0x188] sm:$0xff]  ;;  %v1207_v32 = vpack.c.bf16 %v1095_v29, %v1093_v28  ;;  %v1097_v34 = vld [vmem:[%s2000_s5 + $0x170] sm:$0xff]  ;;  %v1099_v35 = vld [vmem:[%s2000_s5 + $0x180] sm:$0xff] }
   0x9   :  { %1196 = vmatpush1.bf16.msra.mxu0 %v1195_v14  ;;  %1268 = vmatpush1.bf16.msra.mxu1 %v1195_v14  ;;  %v1209_v33 = vpack.c.bf16 %v1100_v31, %v1098_v30  ;;  %v1211_v36 = vpack.c.bf16 %v1099_v35, %v1097_v34  ;;  %v1102_v37 = vld [vmem:[%s2000_s5 + $0x198] sm:$0xf]  ;;  %v27_v38 = vld [vmem:[%s2000_s5 + $0x8] sm:$0xff]  ;;  %v26_v40 = vld [vmem:[%s2000_s5] sm:$0xff] }
   0xa   :  { %1198 = vmatprep.subr.bf16.mxu0 %v1197_v15  ;;  %1270 = vmatprep.subr.bf16.mxu1 %v1197_v15  ;;  %v29_v39 = vld [vmem:[%s2000_s5 + $0x18] sm:$0xff]  ;;  %v28_v41 = vld [vmem:[%s2000_s5 + $0x10] sm:$0xff]  ;;  %v114_v44 = vld [vmem:[%s2001_s1] sm:$0xff] }
   0xb   :  { %v1101_v42 = vld [vmem:[%s2000_s5 + $0x190] sm:$0xf]  ;;  %v1213_v43 = vpack.c.bf16 %v29_v39, %v27_v38  ;;  %v31_v45 = vld [vmem:[%s2000_s5 + $0x28] sm:$0xff]  ;;  %v33_v46 = vld [vmem:[%s2000_s5 + $0x38] sm:$0xff]  ;;  %v1215_v48 = vpack.c.bf16 %v28_v41, %v26_v40 }
   0xc   :  { %v577_v47 = vld [vmem:[%s2002_s3] sm:$0xff]  ;;  %v32_v50 = vld [vmem:[%s2000_s5 + $0x30] sm:$0xff]  ;;  %v1217_v51 = vpack.c.bf16 %v33_v46, %v31_v45  ;;  %v115_v52 = vld [vmem:[%s2001_s1 + $0x8] sm:$0xff] }
   0xd   :  { %1200 = vmatpush1.bf16.msra.mxu0 %v1199_v20  ;;  %1272 = vmatpush1.bf16.msra.mxu1 %v1199_v20  ;;  %v30_v49 = vld [vmem:[%s2000_s5 + $0x20] sm:$0xff]  ;;  %v35_v53 = vld [vmem:[%s2000_s5 + $0x48] sm:$0xff]  ;;  %v37_v54 = vld [vmem:[%s2000_s5 + $0x58] sm:$0xff] }
   0xe   :  { %1202 = vmatprep.subr.bf16.mxu0 %v1201_v21  ;;  %1274 = vmatprep.subr.bf16.mxu1 %v1201_v21  ;;  %v578_v55 = vld [vmem:[%s2002_s3 + $0x8] sm:$0xff]  ;;  %v1219_v56 = vpack.c.bf16 %v32_v50, %v30_v49  ;;  %v34_v57 = vld [vmem:[%s2000_s5 + $0x40] sm:$0xff]  ;;  %v36_v58 = vld [vmem:[%s2000_s5 + $0x50] sm:$0xff]  ;;  %v1221_v59 = vpack.c.bf16 %v37_v54, %v35_v53 }
   0xf   :  { %v116_v60 = vld [vmem:[%s2001_s1 + $0x10] sm:$0xff]  ;;  %v39_v61 = vld [vmem:[%s2000_s5 + $0x68] sm:$0xff]  ;;  %v41_v62 = vld [vmem:[%s2000_s5 + $0x78] sm:$0xff]  ;;  %v1223_v0 = vpack.c.bf16 %v36_v58, %v34_v57 }
  0x10   :  { %v579_v63 = vld [vmem:[%s2002_s3 + $0x10] sm:$0xff]  ;;  %v38_v1 = vld [vmem:[%s2000_s5 + $0x60] sm:$0xff]  ;;  %v1225_v4 = vpack.c.bf16 %v41_v62, %v39_v61  ;;  %v117_v5 = vld [vmem:[%s2001_s1 + $0x18] sm:$0xff] }
  0x11   :  { %1204 = vmatpush1.bf16.msra.mxu0 %v1203_v26  ;;  %1276 = vmatpush1.bf16.msra.mxu1 %v1203_v26  ;;  %v40_v2 = vld [vmem:[%s2000_s5 + $0x70] sm:$0xff]  ;;  %v43_v6 = vld [vmem:[%s2000_s5 + $0x88] sm:$0xff]  ;;  %v45_v7 = vld [vmem:[%s2000_s5 + $0x98] sm:$0xff] }
  0x12   :  { %1206 = vmatprep.subr.bf16.mxu0 %v1205_v27  ;;  %1278 = vmatprep.subr.bf16.mxu1 %v1205_v27  ;;  %v580_v8 = vld [vmem:[%s2002_s3 + $0x18] sm:$0xff]  ;;  %v1227_v9 = vpack.c.bf16 %v40_v2, %v38_v1  ;;  %v1229_v10 = vpack.c.bf16 %v45_v7, %v43_v6  ;;  %v42_v11 = vld [vmem:[%s2000_s5 + $0x80] sm:$0xff]  ;;  %v44_v12 = vld [vmem:[%s2000_s5 + $0x90] sm:$0xff] }
  0x13   :  { %v118_v13 = vld [vmem:[%s2001_s1 + $0x20] sm:$0xff]  ;;  %v47_v14 = vld [vmem:[%s2000_s5 + $0xa8] sm:$0xff]  ;;  %v49_v15 = vld [vmem:[%s2000_s5 + $0xb8] sm:$0xff]  ;;  %v1231_v17 = vpack.c.bf16 %v44_v12, %v42_v11 }
  0x14   :  { %v581_v16 = vld [vmem:[%s2002_s3 + $0x20] sm:$0xff]  ;;  %v1233_v18 = vpack.c.bf16 %v49_v15, %v47_v14  ;;  %v48_v20 = vld [vmem:[%s2000_s5 + $0xb0] sm:$0xff]  ;;  %v119_v21 = vld [vmem:[%s2001_s1 + $0x28] sm:$0xff] }
  0x15   :  { %1208 = vmatpush1.bf16.msra.mxu0 %v1207_v32  ;;  %1280 = vmatpush1.bf16.msra.mxu1 %v1207_v32  ;;  %v46_v19 = vld [vmem:[%s2000_s5 + $0xa0] sm:$0xff]  ;;  %v582_v22 = vld [vmem:[%s2002_s3 + $0x28] sm:$0xff]  ;;  %v120_v24 = vld [vmem:[%s2001_s1 + $0x30] sm:$0xff] }
  0x16   :  { %1210 = vmatprep.subr.bf16.mxu0 %v1209_v33  ;;  %1282 = vmatprep.subr.bf16.mxu1 %v1209_v33  ;;  %v1235_v23 = vpack.c.bf16 %v48_v20, %v46_v19  ;;  %v51_v25 = vld [vmem:[%s2000_s5 + $0xc8] sm:$0xf]  ;;  %v1106_v27 = vld [vmem:[%s2000_s5 + $0x1b8] sm:$0xff]  ;;  %v583_v28 = vld [vmem:[%s2002_s3 + $0x30] sm:$0xff] }
  0x17   :  { %v1104_v26 = vld [vmem:[%s2000_s5 + $0x1a8] sm:$0xff]  ;;  %v50_v29 = vld [vmem:[%s2000_s5 + $0xc0] sm:$0xf]  ;;  %v121_v31 = vld [vmem:[%s2001_s1 + $0x38] sm:$0xff] }
  0x18   :  { %v1237_v30 = vpack.c.bf16 %v1106_v27, %v1104_v26  ;;  %v584_v32 = vld [vmem:[%s2002_s3 + $0x38] sm:$0xff]  ;;  %v1103_v33 = vld [vmem:[%s2000_s5 + $0x1a0] sm:$0xff]  ;;  %v1105_v34 = vld [vmem:[%s2000_s5 + $0x1b0] sm:$0xff] }
  0x19   :  { %1212 = vmatpush1.bf16.msra.mxu0 %v1211_v36  ;;  %1284 = vmatpush1.bf16.msra.mxu1 %v1211_v36  ;;  %v1108_v35 = vld [vmem:[%s2000_s5 + $0x1c8] sm:$0xff]  ;;  %v1110_v36 = vld [vmem:[%s2000_s5 + $0x1d8] sm:$0xff]  ;;  %v1239_v38 = vpack.c.bf16 %v1105_v34, %v1103_v33  ;;  %v1709_v39 = vld [vmem:[%s2004_s2] sm:$0xff] }
  0x1a   :  { %1129 = vmatprep.subr.msk.mxu0 %vm147_vm0, %v1102_v37  ;;  %1159 = vmatprep.subr.msk.mxu1 %vm147_vm0, %v1102_v37  ;;  %v106_v37 = vld [vmem:[%s2003_s0] sm:$0xff]  ;;  %v1109_v41 = vld [vmem:[%s2000_s5 + $0x1d0] sm:$0xff]  ;;  %v107_v45 = vld [vmem:[%s2003_s0 + $0x8] sm:$0xff] }
  0x1b   :  { %v1107_v40 = vld [vmem:[%s2000_s5 + $0x1c0] sm:$0xff]  ;;  %v1113_v50 = vld [vmem:[%s2000_s5 + $0x1f0] sm:$0xff]  ;;  %v109_v61 = vld [vmem:[%s2003_s0 + $0x18] sm:$0xff] }
  0x1c   :  { %v1243_v46 = vpack.c.bf16 %v1109_v41, %v1107_v40  ;;  %v1111_v49 = vld [vmem:[%s2000_s5 + $0x1e0] sm:$0xff]  ;;  %v108_v53 = vld [vmem:[%s2003_s0 + $0x10] sm:$0xff]  ;;  %v1784_v62 = vld [vmem:[%s2004_s2 + $0x18] sm:$0xff] }
  0x1d   :  { %1130 = vmatpush1.msk.msra.mxu0 %vm147_vm0, %v1101_v42  ;;  %1160 = vmatpush1.msk.msra.mxu1 %vm147_vm0, %v1101_v42  ;;  %v1241_v42 = vpack.c.bf16 %v1110_v36, %v1108_v35  ;;  %v1758_v54 = vld [vmem:[%s2004_s2 + $0x10] sm:$0xff]  ;;  %v1115_v57 = vld [vmem:[%s2000_s5 + $0x200] sm:$0xff]  ;;  %v111_v12 = vld [vmem:[%s2003_s0 + $0x28] sm:$0xff] }
  0x1e   :  { %1131 = vmatmul.mubr.msk.f32.vlgmr.msra.gmra.mrb[0].mxu0 %vm122_vm1, %v114_v44  ;;  %1214 = vmatprep.subr.bf16.mxu0 %v1213_v43  ;;  %v1114_v44 = vld [vmem:[%s2000_s5 + $0x1f8] sm:$0xff]  ;;  %v1117_v58 = vld [vmem:[%s2000_s5 + $0x210] sm:$0xff]  ;;  %v1119_v1 = vld [vmem:[%s2000_s5 + $0x220] sm:$0xff] }
  0x1f   :  { %1161 = vmatmul.mubr.msk.f32.vlgmr.msra.gmra.mrb[0].mxu1 %vm122_vm1, %v577_v47  ;;  %1286 = vmatprep.subr.bf16.mxu1 %v1213_v43  ;;  %v1112_v43 = vld [vmem:[%s2000_s5 + $0x1e8] sm:$0xff]  ;;  %v1121_v2 = vld [vmem:[%s2000_s5 + $0x230] sm:$0xff]  ;;  %v110_v6 = vld [vmem:[%s2003_s0 + $0x20] sm:$0xff] }
  0x20   :  { %1216 = vmatpush1.bf16.msra.mxu0 %v1215_v48  ;;  %1288 = vmatpush1.bf16.msra.mxu1 %v1215_v48  ;;  %v1733_v47 = vld [vmem:[%s2004_s2 + $0x8] sm:$0xff]  ;;  %v1245_v48 = vpack.c.bf16 %v1114_v44, %v1112_v43  ;;  %v1809_v7 = vld [vmem:[%s2004_s2 + $0x20] sm:$0xff]  ;;  %v1125_v11 = vld [vmem:[%s2000_s5 + $0x250] sm:$0xff] }
  0x21   :  { %224 = vmatprep.mubr.f32.mxu0 %v1398_v3  ;;  %679 = vmatprep.mubr.f32.mxu1 %v1398_v3  ;;  %v1128_v15 = vld [vmem:[%s2000_s5 + $0x268] sm:$0xf]  ;;  %v113_v19 = vld [vmem:[%s2003_s0 + $0x38] sm:$0xff]  ;;  %v841_v27 = vld [vmem:[%s2005_s4 + $0x30] sm:$0xff] }
  0x22   :  { %1132 = vmatmul.mubr.msk.f32.gmra.mrb[2].mxu0 %vm122_vm1, %v115_v52  ;;  %1218 = vmatprep.subr.bf16.mxu0 %v1217_v51  ;;  %v1118_v52 = vld [vmem:[%s2000_s5 + $0x218] sm:$0xff]  ;;  %v840_v26 = vld [vmem:[%s2005_s4 + $0x28] sm:$0xff] }
  0x23   :  { %1162 = vmatmul.mubr.msk.f32.gmra.mrb[2].mxu1 %vm122_vm1, %v578_v55  ;;  %1290 = vmatprep.subr.bf16.mxu1 %v1217_v51  ;;  %v1116_v51 = vld [vmem:[%s2000_s5 + $0x208] sm:$0xff]  ;;  %v1247_v55 = vpack.c.bf16 %v1113_v50, %v1111_v49  ;;  %v417_v20 = vld [vmem:[%s2004_s2 + $0x38] sm:$0xff] }
  0x24   :  { %1220 = vmatpush1.bf16.msra.mxu0 %v1219_v56  ;;  %1292 = vmatpush1.bf16.msra.mxu1 %v1219_v56  ;;  %v1249_v56 = vpack.c.bf16 %v1118_v52, %v1116_v51 }
  0x25   :  { %230 = vmatprep.mubr.f32.mxu0 %v1398_v3  ;;  %685 = vmatprep.mubr.f32.mxu1 %v1398_v3 }
  0x26   :  { %1133 = vmatmul.mubr.msk.f32.gmra.mrb[4].mxu0 %vm122_vm1, %v116_v60  ;;  %1222 = vmatprep.subr.bf16.mxu0 %v1221_v59  ;;  %v1122_v60 = vld [vmem:[%s2000_s5 + $0x238] sm:$0xff] }
  0x27   :  { %1163 = vmatmul.mubr.msk.f32.gmra.mrb[4].mxu1 %vm122_vm1, %v579_v63  ;;  %1294 = vmatprep.subr.bf16.mxu1 %v1221_v59  ;;  %v1120_v59 = vld [vmem:[%s2000_s5 + $0x228] sm:$0xff]  ;;  %v1251_v63 = vpack.c.bf16 %v1117_v58, %v1115_v57 }
  0x28   :  { %236 = vmatprep.mubr.f32.mxu0 %v1398_v3  ;;  %1224 = vmatpush1.bf16.msra.mxu0 %v1223_v0 }
  0x29   :  { %691 = vmatprep.mubr.f32.mxu1 %v1398_v3  ;;  %1296 = vmatpush1.bf16.msra.mxu1 %v1223_v0  ;;  %v1253_v0 = vpack.c.bf16 %v1122_v60, %v1120_v59 }
  0x2a   :  { %1134 = vmatmul.mubr.msk.f32.gmra.mrb[6].mxu0 %vm122_vm1, %v117_v5  ;;  %1226 = vmatprep.subr.bf16.mxu0 %v1225_v4  ;;  %v1126_v5 = vld [vmem:[%s2000_s5 + $0x258] sm:$0xff] }
  0x2b   :  { %1164 = vmatmul.mubr.msk.f32.gmra.mrb[6].mxu1 %vm122_vm1, %v580_v8  ;;  %1298 = vmatprep.subr.bf16.mxu1 %v1225_v4  ;;  %v1124_v4 = vld [vmem:[%s2000_s5 + $0x248] sm:$0xff]  ;;  %v1255_v8 = vpack.c.bf16 %v1121_v2, %v1119_v1 }
  0x2c   :  { %242 = vmatprep.mubr.f32.mxu0 %v1398_v3  ;;  %1228 = vmatpush1.bf16.msra.mxu0 %v1227_v9 }
  0x2d   :  { %697 = vmatprep.mubr.f32.mxu1 %v1398_v3  ;;  %1300 = vmatpush1.bf16.msra.mxu1 %v1227_v9  ;;  %v1257_v9 = vpack.c.bf16 %v1126_v5, %v1124_v4 }
  0x2e   :  { %1135 = vmatmul.mubr.msk.f32.gmra.mrb[8].mxu0 %vm122_vm1, %v118_v13  ;;  %1230 = vmatprep.subr.bf16.mxu0 %v1229_v10  ;;  %v415_v13 = vld [vmem:[%s2004_s2 + $0x28] sm:$0xff] }
  0x2f   :  { %1165 = vmatmul.mubr.msk.f32.gmra.mrb[8].mxu1 %vm122_vm1, %v581_v16  ;;  %248 = vmatprep.mubr.f32.mxu0 %v1398_v3  ;;  %v112_v16 = vld [vmem:[%s2003_s0 + $0x30] sm:$0xff] }
  0x30   :  { %703 = vmatprep.mubr.f32.mxu1 %v1398_v3  ;;  %1302 = vmatprep.subr.bf16.mxu1 %v1229_v10  ;;  %v1123_v10 = vld [vmem:[%s2000_s5 + $0x240] sm:$0xff] }
  0x31   :  { %1232 = vmatpush1.bf16.msra.mxu0 %v1231_v17  ;;  %1304 = vmatpush1.bf16.msra.mxu1 %v1231_v17  ;;  %v1259_v14 = vpack.c.bf16 %v1125_v11, %v1123_v10  ;;  %v416_v17 = vld [vmem:[%s2004_s2 + $0x30] sm:$0xff] }
  0x32   :  { %1136 = vmatmul.mubr.msk.f32.gmra.mrb[10].mxu0 %vm122_vm1, %v119_v21  ;;  %1234 = vmatprep.subr.bf16.mxu0 %v1233_v18  ;;  %v835_v21 = vld [vmem:[%s2005_s4] sm:$0xff] }
  0x33   :  { %1166 = vmatmul.mubr.msk.f32.gmra.mrb[10].mxu1 %vm122_vm1, %v582_v22  ;;  %254 = vmatprep.mubr.f32.mxu0 %v1398_v3  ;;  %v836_v22 = vld [vmem:[%s2005_s4 + $0x8] sm:$0xff] }
  0x34   :  { %709 = vmatprep.mubr.f32.mxu1 %v1398_v3  ;;  %1306 = vmatprep.subr.bf16.mxu1 %v1233_v18  ;;  %v1127_v18 = vld [vmem:[%s2000_s5 + $0x260] sm:$0xf] }
  0x35   :  { %1236 = vmatpush1.bf16.msra.mxu0 %v1235_v23  ;;  %1308 = vmatpush1.bf16.msra.mxu1 %v1235_v23  ;;  %v837_v23 = vld [vmem:[%s2005_s4 + $0x10] sm:$0xff] }
  0x36   :  { %1137 = vmatmul.mubr.msk.f32.gmra.mrb[12].mxu0 %vm122_vm1, %v120_v24  ;;  %1139 = vmatprep.subr.msk.mxu0 %vm147_vm0, %v51_v25  ;;  %v838_v24 = vld [vmem:[%s2005_s4 + $0x18] sm:$0xff] }
  0x37   :  { %1167 = vmatmul.mubr.msk.f32.gmra.mrb[12].mxu1 %vm122_vm1, %v583_v28  ;;  %260 = vmatprep.mubr.f32.mxu0 %v1398_v3  ;;  %v842_v28 = vld [vmem:[%s2005_s4 + $0x38] sm:$0xff] }
  0x38   :  { %715 = vmatprep.mubr.f32.mxu1 %v1398_v3  ;;  %1169 = vmatprep.subr.msk.mxu1 %vm147_vm0, %v51_v25  ;;  %v839_v25 = vld [vmem:[%s2005_s4 + $0x20] sm:$0xff] }
  0x39   :  { %1140 = vmatpush1.msk.msra.mxu0 %vm147_vm0, %v50_v29  ;;  %1170 = vmatpush1.msk.msra.mxu1 %vm147_vm0, %v50_v29  ;;  %v1014_v29 = vlaneseq }
  0x3a   :  { %1138 = vmatmul.mubr.msk.f32.gmra.mrb[14].mxu0 %vm122_vm1, %v121_v31  ;;  %1238 = vmatprep.subr.bf16.mxu0 %v1237_v30 }
  0x3b   :  { %1168 = vmatmul.mubr.msk.f32.gmra.mrb[14].mxu1 %vm122_vm1, %v584_v32  ;;  %361 = vmatprep.mubr.f32.mxu0 %v1398_v3  ;;  %v1012_v32 = vld [vmem:[%s2006_s6] sm:$0x3] }
  0x3c   :  { %786 = vmatprep.mubr.f32.mxu1 %v1398_v3  ;;  %1310 = vmatprep.subr.bf16.mxu1 %v1237_v30  ;;  %v1015_v30 = vshrl.u32 %v1014_v29, 7 }
  0x3e   :  { %1141 = vmatmul.mubr.msk.f32.vlgmr.msra.gmra.mrb[0].mxu0 %vm122_vm1, %v106_v37  ;;  %v1016_v31 = vsub.s32 0, %v1015_v30  ;;  %v1020_v33 = vsub.s32 1, %v1015_v30 }
  0x3f   :  { %1171 = vmatmul.mubr.msk.f32.vlgmr.msra.gmra.mrb[0].mxu1 %vm122_vm1, %v1709_v39  ;;  %1240 = vmatpush1.bf16.msra.mxu0 %v1239_v38 }
  0x40   :  { %1312 = vmatpush1.bf16.msra.mxu1 %v1239_v38  ;;  %367 = vmatprep.mubr.f32.mxu0 %v1398_v3  ;;  %v1924_v35 = vrot.slane %v1012_v32, %v1016_v31  ;;  %v1926_v37 = vrot.slane %v1012_v32, %v1020_v33 }
  0x41   :  { %792 = vmatprep.mubr.f32.mxu1 %v1398_v3  ;;  %1242 = vmatprep.subr.bf16.mxu0 %v1241_v42 }
  0x42   :  { %1142 = vmatmul.mubr.msk.f32.gmra.mrb[2].mxu0 %vm122_vm1, %v107_v45  ;;  %1314 = vmatprep.subr.bf16.mxu1 %v1241_v42 }
  0x43   :  { %1172 = vmatmul.mubr.msk.f32.gmra.mrb[2].mxu1 %vm122_vm1, %v1733_v47  ;;  %1244 = vmatpush1.bf16.msra.mxu0 %v1243_v46 }
  0x44   :  { %1316 = vmatpush1.bf16.msra.mxu1 %v1243_v46  ;;  %373 = vmatprep.mubr.f32.mxu0 %v1398_v3 }
  0x45   :  { %798 = vmatprep.mubr.f32.mxu1 %v1398_v3  ;;  %1246 = vmatprep.subr.bf16.mxu0 %v1245_v48 }
  0x46   :  { %1143 = vmatmul.mubr.msk.f32.gmra.mrb[4].mxu0 %vm122_vm1, %v108_v53  ;;  %1318 = vmatprep.subr.bf16.mxu1 %v1245_v48 }
  0x47   :  { %1173 = vmatmul.mubr.msk.f32.gmra.mrb[4].mxu1 %vm122_vm1, %v1758_v54  ;;  %379 = vmatprep.mubr.f32.mxu0 %v1398_v3 }
  0x48   :  { %1248 = vmatpush1.bf16.msra.mxu0 %v1247_v55  ;;  %804 = vmatprep.mubr.f32.mxu1 %v1398_v3 }
  0x49   :  { %1320 = vmatpush1.bf16.msra.mxu1 %v1247_v55  ;;  %1250 = vmatprep.subr.bf16.mxu0 %v1249_v56 }
  0x4a   :  { %1144 = vmatmul.mubr.msk.f32.gmra.mrb[6].mxu0 %vm122_vm1, %v109_v61  ;;  %1322 = vmatprep.subr.bf16.mxu1 %v1249_v56 }
  0x4b   :  { %1174 = vmatmul.mubr.msk.f32.gmra.mrb[6].mxu1 %vm122_vm1, %v1784_v62  ;;  %385 = vmatprep.mubr.f32.mxu0 %v1398_v3 }
  0x4c   :  { %1252 = vmatpush1.bf16.msra.mxu0 %v1251_v63  ;;  %810 = vmatprep.mubr.f32.mxu1 %v1398_v3 }
  0x4d   :  { %1324 = vmatpush1.bf16.msra.mxu1 %v1251_v63  ;;  %1254 = vmatprep.subr.bf16.mxu0 %v1253_v0 }
  0x4e   :  { %1145 = vmatmul.mubr.msk.f32.gmra.mrb[8].mxu0 %vm122_vm1, %v110_v6  ;;  %1326 = vmatprep.subr.bf16.mxu1 %v1253_v0 }
  0x4f   :  { %1175 = vmatmul.mubr.msk.f32.gmra.mrb[8].mxu1 %vm122_vm1, %v1809_v7  ;;  %391 = vmatprep.mubr.f32.mxu0 %v1398_v3 }
  0x50   :  { %816 = vmatprep.mubr.f32.mxu1 %v1398_v3  ;;  %1256 = vmatpush1.bf16.msra.mxu0 %v1255_v8 }
  0x51   :  { %1328 = vmatpush1.bf16.msra.mxu1 %v1255_v8  ;;  %1258 = vmatprep.subr.bf16.mxu0 %v1257_v9 }
  0x52   :  { %1146 = vmatmul.mubr.msk.f32.gmra.mrb[10].mxu0 %vm122_vm1, %v111_v12  ;;  %1330 = vmatprep.subr.bf16.mxu1 %v1257_v9 }
  0x53   :  { %1176 = vmatmul.mubr.msk.f32.gmra.mrb[10].mxu1 %vm122_vm1, %v415_v13  ;;  %397 = vmatprep.mubr.f32.mxu0 %v1398_v3 }
  0x54   :  { %822 = vmatprep.mubr.f32.mxu1 %v1398_v3  ;;  %1260 = vmatpush1.bf16.msra.mxu0 %v1259_v14 }
  0x55   :  { %1332 = vmatpush1.bf16.msra.mxu1 %v1259_v14  ;;  %1149 = vmatprep.subr.msk.mxu0 %vm147_vm0, %v1128_v15 }
  0x56   :  { %1147 = vmatmul.mubr.msk.f32.gmra.mrb[12].mxu0 %vm122_vm1, %v112_v16  ;;  %1179 = vmatprep.subr.msk.mxu1 %vm147_vm0, %v1128_v15 }
  0x57   :  { %1177 = vmatmul.mubr.msk.f32.gmra.mrb[12].mxu1 %vm122_vm1, %v416_v17  ;;  %403 = vmatprep.mubr.f32.mxu0 %v1398_v3 }
  0x58   :  { %828 = vmatprep.mubr.f32.mxu1 %v1398_v3  ;;  %1150 = vmatpush1.msk.msra.mxu0 %vm147_vm0, %v1127_v18 }
  0x59   :  { %1180 = vmatpush1.msk.msra.mxu1 %vm147_vm0, %v1127_v18 }
  0x5a   :  { %1148 = vmatmul.mubr.msk.f32.gmra.mrb[14].mxu0 %vm122_vm1, %v113_v19 }
  0x5b   :  { %1178 = vmatmul.mubr.msk.f32.gmra.mrb[14].mxu1 %vm122_vm1, %v417_v20  ;;  %512 = vmatprep.mubr.f32.mxu0 %v1398_v3 }
  0x5c   :  { %931 = vmatprep.mubr.f32.mxu1 %v1398_v3 }
  0x5e   :  { %1151 = vmatmul.mubr.msk.f32.vlgmr.msra.gmra.mrb[0].mxu0 %vm122_vm1, %v1709_v39 }
  0x5f   :  { %1181 = vmatmul.mubr.msk.f32.vlgmr.msra.gmra.mrb[0].mxu1 %vm122_vm1, %v835_v21  ;;  %518 = vmatprep.mubr.f32.mxu0 %v1398_v3 }
  0x60   :  { %937 = vmatprep.mubr.f32.mxu1 %v1398_v3 }
  0x62   :  { %1152 = vmatmul.mubr.msk.f32.gmra.mrb[2].mxu0 %vm122_vm1, %v1733_v47 }
  0x63   :  { %1182 = vmatmul.mubr.msk.f32.gmra.mrb[2].mxu1 %vm122_vm1, %v836_v22  ;;  %524 = vmatprep.mubr.f32.mxu0 %v1398_v3 }
  0x64   :  { %943 = vmatprep.mubr.f32.mxu1 %v1398_v3 }
  0x66   :  { %1153 = vmatmul.mubr.msk.f32.gmra.mrb[4].mxu0 %vm122_vm1, %v1758_v54 }
  0x67   :  { %1183 = vmatmul.mubr.msk.f32.gmra.mrb[4].mxu1 %vm122_vm1, %v837_v23  ;;  %530 = vmatprep.mubr.f32.mxu0 %v1398_v3 }
  0x68   :  { %949 = vmatprep.mubr.f32.mxu1 %v1398_v3 }
  0x6a   :  { %1154 = vmatmul.mubr.msk.f32.gmra.mrb[6].mxu0 %vm122_vm1, %v1784_v62 }
  0x6b   :  { %1184 = vmatmul.mubr.msk.f32.gmra.mrb[6].mxu1 %vm122_vm1, %v838_v24  ;;  %536 = vmatprep.mubr.f32.mxu0 %v1398_v3 }
  0x6c   :  { %955 = vmatprep.mubr.f32.mxu1 %v1398_v3 }
  0x6e   :  { %1155 = vmatmul.mubr.msk.f32.gmra.mrb[8].mxu0 %vm122_vm1, %v1809_v7 }
  0x6f   :  { %1185 = vmatmul.mubr.msk.f32.gmra.mrb[8].mxu1 %vm122_vm1, %v839_v25  ;;  %542 = vmatprep.mubr.f32.mxu0 %v1398_v3 }
  0x70   :  { %961 = vmatprep.mubr.f32.mxu1 %v1398_v3 }
  0x72   :  { %1156 = vmatmul.mubr.msk.f32.gmra.mrb[10].mxu0 %vm122_vm1, %v415_v13 }
  0x73   :  { %1186 = vmatmul.mubr.msk.f32.gmra.mrb[10].mxu1 %vm122_vm1, %v840_v26  ;;  %548 = vmatprep.mubr.f32.mxu0 %v1398_v3 }
  0x74   :  { %967 = vmatprep.mubr.f32.mxu1 %v1398_v3 }
  0x76   :  { %1157 = vmatmul.mubr.msk.f32.gmra.mrb[12].mxu0 %vm122_vm1, %v416_v17 }
  0x77   :  { %1187 = vmatmul.mubr.msk.f32.gmra.mrb[12].mxu1 %vm122_vm1, %v841_v27  ;;  %554 = vmatprep.mubr.f32.mxu0 %v1398_v3 }
  0x78   :  { %973 = vmatprep.mubr.f32.mxu1 %v1398_v3 }
  0x7a   :  { %1158 = vmatmul.mubr.msk.f32.gmra.mrb[14].mxu0 %vm122_vm1, %v417_v20 }
  0x7b   :  { %1188 = vmatmul.mubr.msk.f32.gmra.mrb[14].mxu1 %vm122_vm1, %v842_v28 }
 0x131   :  { %v514_v34 = vpop.f32.mrb[0].mxu0 }
 0x132   :  { %v933_v3 = vpop.f32.mrb[0].mxu1  ;;  %v516_v36 = vpop.f32.mrb[1].mxu0 }
 0x133   :  { %v996_v38 = vmax.f32 %v514_v34, %v933_v3  ;;  %v935_v39 = vpop.f32.mrb[1].mxu1 }
 0x134   :  { %v997_v40 = vmax.f32 %v516_v36, %v935_v39 }
 0x135   :  { %v1024_v41 = vadd.f32 %v1924_v35, %v996_v38  ;;  %v520_v42 = vpop.f32.mrb[2].mxu0 }
 0x136   :  { %v1025_v43 = vadd.f32 %v1926_v37, %v997_v40  ;;  %v939_v44 = vpop.f32.mrb[2].mxu1  ;;  %v522_v45 = vpop.f32.mrb[3].mxu0 }
 0x137   :  { %v1040_v46 = vmax.f32 %v1024_v41, 0.0  ;;  %v998_v47 = vmax.f32 %v520_v42, %v939_v44  ;;  %v941_v48 = vpop.f32.mrb[3].mxu1 }
 0x138   :  { %v1041_v49 = vmax.f32 %v1025_v43, 0.0  ;;  %v999_v50 = vmax.f32 %v522_v45, %v941_v48 }
 0x139   :  { %1056 = vst [vmem:[%s2007_s7] sm:$0xff] %v1040_v46  ;;  %v1026_v51 = vadd.f32 %v1924_v35, %v998_v47  ;;  %v526_v52 = vpop.f32.mrb[4].mxu0 }
 0x13a   :  { %1058 = vst.msk [vmem:[%s2007_s7 + $0x8] sm:$0xff] %vm1057_vm2, %v1041_v49  ;;  %v1027_v53 = vadd.f32 %v1926_v37, %v999_v50  ;;  %v945_v54 = vpop.f32.mrb[4].mxu1  ;;  %v528_v55 = vpop.f32.mrb[5].mxu0 }
 0x13b   :  { %v1042_v56 = vmax.f32 %v1026_v51, 0.0  ;;  %v1000_v57 = vmax.f32 %v526_v52, %v945_v54  ;;  %v947_v58 = vpop.f32.mrb[5].mxu1 }
 0x13c   :  { %v1043_v59 = vmax.f32 %v1027_v53, 0.0  ;;  %v1001_v60 = vmax.f32 %v528_v55, %v947_v58 }
 0x13d   :  { %1059 = vst [vmem:[%s2007_s7 + $0x10] sm:$0xff] %v1042_v56  ;;  %v1028_v61 = vadd.f32 %v1924_v35, %v1000_v57  ;;  %v532_v62 = vpop.f32.mrb[6].mxu0 }
 0x13e   :  { %1060 = vst.msk [vmem:[%s2007_s7 + $0x18] sm:$0xff] %vm1057_vm2, %v1043_v59  ;;  %v1029_v63 = vadd.f32 %v1926_v37, %v1001_v60  ;;  %v951_v0 = vpop.f32.mrb[6].mxu1  ;;  %v534_v1 = vpop.f32.mrb[7].mxu0 }
 0x13f   :  { %v1044_v2 = vmax.f32 %v1028_v61, 0.0  ;;  %v1002_v4 = vmax.f32 %v532_v62, %v951_v0  ;;  %v953_v5 = vpop.f32.mrb[7].mxu1 }
 0x140   :  { %v1045_v6 = vmax.f32 %v1029_v63, 0.0  ;;  %v1003_v7 = vmax.f32 %v534_v1, %v953_v5 }
 0x141   :  { %1061 = vst [vmem:[%s2007_s7 + $0x20] sm:$0xff] %v1044_v2  ;;  %v1030_v8 = vadd.f32 %v1924_v35, %v1002_v4  ;;  %v538_v9 = vpop.f32.mrb[8].mxu0 }
 0x142   :  { %1062 = vst.msk [vmem:[%s2007_s7 + $0x28] sm:$0xff] %vm1057_vm2, %v1045_v6  ;;  %v1031_v10 = vadd.f32 %v1926_v37, %v1003_v7  ;;  %v957_v11 = vpop.f32.mrb[8].mxu1  ;;  %v540_v12 = vpop.f32.mrb[9].mxu0 }
 0x143   :  { %v1046_v13 = vmax.f32 %v1030_v8, 0.0  ;;  %v1004_v14 = vmax.f32 %v538_v9, %v957_v11  ;;  %v959_v15 = vpop.f32.mrb[9].mxu1 }
 0x144   :  { %v1047_v16 = vmax.f32 %v1031_v10, 0.0  ;;  %v1005_v17 = vmax.f32 %v540_v12, %v959_v15 }
 0x145   :  { %1063 = vst [vmem:[%s2007_s7 + $0x30] sm:$0xff] %v1046_v13  ;;  %v1032_v18 = vadd.f32 %v1924_v35, %v1004_v14  ;;  %v544_v19 = vpop.f32.mrb[10].mxu0 }
 0x146   :  { %1064 = vst.msk [vmem:[%s2007_s7 + $0x38] sm:$0xff] %vm1057_vm2, %v1047_v16  ;;  %v1033_v20 = vadd.f32 %v1926_v37, %v1005_v17  ;;  %v963_v21 = vpop.f32.mrb[10].mxu1  ;;  %v546_v22 = vpop.f32.mrb[11].mxu0 }
 0x147   :  { %v1048_v23 = vmax.f32 %v1032_v18, 0.0  ;;  %v1006_v24 = vmax.f32 %v544_v19, %v963_v21  ;;  %v965_v25 = vpop.f32.mrb[11].mxu1 }
 0x148   :  { %v1049_v26 = vmax.f32 %v1033_v20, 0.0  ;;  %v1007_v27 = vmax.f32 %v546_v22, %v965_v25 }
 0x149   :  { %1065 = vst [vmem:[%s2007_s7 + $0x40] sm:$0xff] %v1048_v23  ;;  %v1034_v28 = vadd.f32 %v1924_v35, %v1006_v24  ;;  %v550_v29 = vpop.f32.mrb[12].mxu0 }
 0x14a   :  { %1066 = vst.msk [vmem:[%s2007_s7 + $0x48] sm:$0xff] %vm1057_vm2, %v1049_v26  ;;  %v1035_v30 = vadd.f32 %v1926_v37, %v1007_v27  ;;  %v969_v31 = vpop.f32.mrb[12].mxu1  ;;  %v552_v32 = vpop.f32.mrb[13].mxu0 }
 0x14b   :  { %v1050_v33 = vmax.f32 %v1034_v28, 0.0  ;;  %v1008_v34 = vmax.f32 %v550_v29, %v969_v31  ;;  %v971_v3 = vpop.f32.mrb[13].mxu1 }
 0x14c   :  { %v1051_v36 = vmax.f32 %v1035_v30, 0.0  ;;  %v1009_v38 = vmax.f32 %v552_v32, %v971_v3 }
 0x14d   :  { %1067 = vst [vmem:[%s2007_s7 + $0x50] sm:$0xff] %v1050_v33  ;;  %v1036_v39 = vadd.f32 %v1924_v35, %v1008_v34  ;;  %v556_v40 = vpop.f32.mrb[14].mxu0 }
 0x14e   :  { %1068 = vst.msk [vmem:[%s2007_s7 + $0x58] sm:$0xff] %vm1057_vm2, %v1051_v36  ;;  %v1037_v41 = vadd.f32 %v1926_v37, %v1009_v38  ;;  %v975_v42 = vpop.f32.mrb[14].mxu1  ;;  %v558_v43 = vpop.f32.mrb[15].mxu0 }
 0x14f   :  { %v1052_v44 = vmax.f32 %v1036_v39, 0.0  ;;  %v1010_v45 = vmax.f32 %v556_v40, %v975_v42  ;;  %v977_v46 = vpop.f32.mrb[15].mxu1 }
 0x150   :  { %v1053_v47 = vmax.f32 %v1037_v41, 0.0  ;;  %v1011_v48 = vmax.f32 %v558_v43, %v977_v46 }
 0x151   :  { %1069 = vst [vmem:[%s2007_s7 + $0x60] sm:$0xff] %v1052_v44  ;;  %v1038_v49 = vadd.f32 %v1924_v35, %v1010_v45 }
 0x152   :  { %1070 = vst.msk [vmem:[%s2007_s7 + $0x68] sm:$0xff] %vm1057_vm2, %v1053_v47  ;;  %v1039_v50 = vadd.f32 %v1926_v37, %v1011_v48 }
 0x153   :  { %v1054_v51 = vmax.f32 %v1038_v49, 0.0 }
 0x154   :  { %v1055_v52 = vmax.f32 %v1039_v50, 0.0 }
 0x155   :  { %1071 = vst [vmem:[%s2007_s7 + $0x70] sm:$0xff] %v1054_v51 }
 0x156   :  { %1072 = vst.msk [vmem:[%s2007_s7 + $0x78] sm:$0xff] %vm1057_vm2, %v1055_v52 }

// kernel: net_forward.4
= control target key start
LH: loop header
LB: loop body
LE: loop exit
PB: predicated region body
PF: predicated region fallthrough
CT: control target
= control target key end

     0   :  { %v925_v0 = vmov 0.0|0.0   ;;  %vm111_vm0 = vcmask 588800   ;;  %v926_v41 = vmov 0.0   ;;  %vm621_vm1 = vcmask 818176   ;;  %s1367_s5 = inlined_call_operand.vmem [shape: f32[3,200,100], index: 5, kind: input, shape index: {}]   ;;  %s1368_s1 = inlined_call_operand.vmem [shape: f32[16,200], index: 1, kind: input, shape index: {}]   ;;  %s1369_s3 = inlined_call_operand.vmem [shape: f32[16,200], index: 3, kind: input, shape index: {}]   ;;  %s1370_s0 = inlined_call_operand.vmem [shape: f32[16,200], index: 0, kind: input, shape index: {}]   ;;  %s1371_s2 = inlined_call_operand.vmem [shape: f32[16,200], index: 2, kind: input, shape index: {}]   ;;  %s1372_s4 = inlined_call_operand.vmem [shape: f32[16,200], index: 4, kind: input, shape index: {}]   ;;  %s1373_s6 = inlined_call_operand.vmem [shape: f32[1,100], index: 6, kind: input, shape index: {}]   ;;  %s1374_s7 = inlined_call_operand.vmem [shape: f32[16,100], index: 7, kind: output, shape index: {}]  }
   0x1   :  { %691 = vmatprep.subr.bf16.mxu0 %v925_v0  ;;  %799 = vmatprep.subr.bf16.mxu1 %v925_v0  ;;  %v628_v1 = vld [vmem:[%s1367_s5 + $0xc8] sm:$0xff]  ;;  %v629_v2 = vld [vmem:[%s1367_s5 + $0xd0] sm:$0xff]  ;;  %v630_v3 = vld [vmem:[%s1367_s5 + $0xd8] sm:$0xff] }
   0x2   :  { %v692_v4 = vpack.c.bf16 %v629_v2, %v628_v1  ;;  %v631_v5 = vld [vmem:[%s1367_s5 + $0xe0] sm:$0xff]  ;;  %v632_v7 = vld [vmem:[%s1367_s5 + $0xe8] sm:$0xff]  ;;  %v633_v8 = vld [vmem:[%s1367_s5 + $0xf0] sm:$0xff] }
   0x3   :  { %v695_v6 = vpack.c.bf16 %v631_v5, %v630_v3  ;;  %v698_v9 = vpack.c.bf16 %v633_v8, %v632_v7  ;;  %v634_v10 = vld [vmem:[%s1367_s5 + $0xf8] sm:$0xff]  ;;  %v635_v11 = vld [vmem:[%s1367_s5 + $0x100] sm:$0xff]  ;;  %v108_v12 = vld [vmem:[%s1368_s1 + $0x8] sm:$0xff] }
   0x4   :  { %693 = vmatpush1.bf16.msra.mxu0 %v692_v4  ;;  %801 = vmatpush1.bf16.msra.mxu1 %v692_v4  ;;  %v362_v13 = vld [vmem:[%s1369_s3 + $0x8] sm:$0xff]  ;;  %v701_v14 = vpack.c.bf16 %v635_v11, %v634_v10  ;;  %v637_v16 = vld [vmem:[%s1367_s5 + $0x110] sm:$0xff]  ;;  %v638_v18 = vld [vmem:[%s1367_s5 + $0x118] sm:$0xff] }
   0x5   :  { %694 = vmatprep.subr.bf16.mxu0 %v925_v0  ;;  %802 = vmatprep.subr.bf16.mxu1 %v925_v0  ;;  %v636_v15 = vld [vmem:[%s1367_s5 + $0x108] sm:$0xff]  ;;  %v639_v19 = vld [vmem:[%s1367_s5 + $0x120] sm:$0xff]  ;;  %v641_v22 = vld [vmem:[%s1367_s5 + $0x130] sm:$0xff] }
   0x6   :  { %678 = vmatprep.mubr.msk.f32.mxu0 %vm111_vm0, %v108_v12  ;;  %684 = vmatprep.mubr.msk.f32.mxu1 %vm111_vm0, %v362_v13  ;;  %v704_v17 = vpack.c.bf16 %v637_v16, %v636_v15  ;;  %v707_v20 = vpack.c.bf16 %v639_v19, %v638_v18  ;;  %v640_v21 = vld [vmem:[%s1367_s5 + $0x128] sm:$0xff]  ;;  %v642_v24 = vld [vmem:[%s1367_s5 + $0x138] sm:$0xff]  ;;  %v643_v25 = vld [vmem:[%s1367_s5 + $0x140] sm:$0xff] }
   0x7   :  { %v710_v23 = vpack.c.bf16 %v641_v22, %v640_v21  ;;  %v713_v26 = vpack.c.bf16 %v643_v25, %v642_v24  ;;  %v644_v27 = vld [vmem:[%s1367_s5 + $0x148] sm:$0xff]  ;;  %v645_v28 = vld [vmem:[%s1367_s5 + $0x150] sm:$0xff]  ;;  %v646_v30 = vld [vmem:[%s1367_s5 + $0x158] sm:$0xff] }
   0x8   :  { %696 = vmatpush1.bf16.msra.mxu0 %v695_v6  ;;  %804 = vmatpush1.bf16.msra.mxu1 %v695_v6  ;;  %v716_v29 = vpack.c.bf16 %v645_v28, %v644_v27  ;;  %v647_v31 = vld [vmem:[%s1367_s5 + $0x160] sm:$0xff]  ;;  %v648_v33 = vld [vmem:[%s1367_s5 + $0x168] sm:$0xff]  ;;  %v649_v34 = vld [vmem:[%s1367_s5 + $0x170] sm:$0xff] }
   0x9   :  { %697 = vmatprep.subr.bf16.mxu0 %v925_v0  ;;  %805 = vmatprep.subr.bf16.mxu1 %v925_v0  ;;  %v719_v32 = vpack.c.bf16 %v647_v31, %v646_v30  ;;  %v722_v35 = vpack.c.bf16 %v649_v34, %v648_v33  ;;  %v650_v36 = vld [vmem:[%s1367_s5 + $0x178] sm:$0xff]  ;;  %v651_v37 = vld [vmem:[%s1367_s5 + $0x180] sm:$0xff]  ;;  %v27_v40 = vld [vmem:[%s1367_s5 + $0x8] sm:$0xff] }
   0xa   :  { %v725_v38 = vpack.c.bf16 %v651_v37, %v650_v36  ;;  %v26_v39 = vld [vmem:[%s1367_s5] sm:$0xff]  ;;  %v652_v42 = vld [vmem:[%s1367_s5 + $0x188] sm:$0xff]  ;;  %v28_v46 = vld [vmem:[%s1367_s5 + $0x10] sm:$0xff] }
   0xb   :  { %v107_v43 = vld [vmem:[%s1368_s1] sm:$0xff]  ;;  %v728_v44 = vpack.c.bf16 %v27_v40, %v26_v39  ;;  %v29_v47 = vld [vmem:[%s1367_s5 + $0x18] sm:$0xff]  ;;  %v109_v51 = vld [vmem:[%s1368_s1 + $0x10] sm:$0xff] }
   0xc   :  { %699 = vmatpush1.bf16.msra.mxu0 %v698_v9  ;;  %807 = vmatpush1.bf16.msra.mxu1 %v698_v9  ;;  %v361_v45 = vld [vmem:[%s1369_s3] sm:$0xff]  ;;  %v110_v48 = vld [vmem:[%s1368_s1 + $0x18] sm:$0xff]  ;;  %v731_v50 = vpack.c.bf16 %v29_v47, %v28_v46  ;;  %v363_v52 = vld [vmem:[%s1369_s3 + $0x10] sm:$0xff] }
   0xd   :  { %700 = vmatprep.subr.bf16.mxu0 %v925_v0  ;;  %808 = vmatprep.subr.bf16.mxu1 %v925_v0  ;;  %v364_v49 = vld [vmem:[%s1369_s3 + $0x18] sm:$0xff]  ;;  %v30_v53 = vld [vmem:[%s1367_s5 + $0x20] sm:$0xff]  ;;  %v31_v54 = vld [vmem:[%s1367_s5 + $0x28] sm:$0xff] }
   0xe   :  { %v104_v55 = vld [vmem:[%s1370_s0 + $0x8] sm:$0xff]  ;;  %v734_v57 = vpack.c.bf16 %v31_v54, %v30_v53  ;;  %v32_v58 = vld [vmem:[%s1367_s5 + $0x30] sm:$0xff]  ;;  %v33_v59 = vld [vmem:[%s1367_s5 + $0x38] sm:$0xff] }
   0xf   :  { %v1124_v56 = vld [vmem:[%s1371_s2 + $0x8] sm:$0xff]  ;;  %v737_v60 = vpack.c.bf16 %v33_v59, %v32_v58  ;;  %v34_v61 = vld [vmem:[%s1367_s5 + $0x40] sm:$0xff]  ;;  %v36_v1 = vld [vmem:[%s1367_s5 + $0x50] sm:$0xff] }
  0x10   :  { %702 = vmatpush1.bf16.msra.mxu0 %v701_v14  ;;  %810 = vmatpush1.bf16.msra.mxu1 %v701_v14  ;;  %v35_v62 = vld [vmem:[%s1367_s5 + $0x48] sm:$0xff]  ;;  %v37_v2 = vld [vmem:[%s1367_s5 + $0x58] sm:$0xff]  ;;  %v38_v4 = vld [vmem:[%s1367_s5 + $0x60] sm:$0xff] }
  0x11   :  { %703 = vmatprep.subr.bf16.mxu0 %v925_v0  ;;  %811 = vmatprep.subr.bf16.mxu1 %v925_v0  ;;  %v740_v63 = vpack.c.bf16 %v35_v62, %v34_v61  ;;  %v743_v3 = vpack.c.bf16 %v37_v2, %v36_v1  ;;  %v39_v5 = vld [vmem:[%s1367_s5 + $0x68] sm:$0xff]  ;;  %v40_v7 = vld [vmem:[%s1367_s5 + $0x70] sm:$0xff]  ;;  %v41_v8 = vld [vmem:[%s1367_s5 + $0x78] sm:$0xff] }
  0x12   :  { %v746_v6 = vpack.c.bf16 %v39_v5, %v38_v4  ;;  %v749_v9 = vpack.c.bf16 %v41_v8, %v40_v7  ;;  %v42_v10 = vld [vmem:[%s1367_s5 + $0x80] sm:$0xff]  ;;  %v43_v11 = vld [vmem:[%s1367_s5 + $0x88] sm:$0xff]  ;;  %v44_v13 = vld [vmem:[%s1367_s5 + $0x90] sm:$0xff] }
  0x13   :  { %v752_v12 = vpack.c.bf16 %v43_v11, %v42_v10  ;;  %v45_v14 = vld [vmem:[%s1367_s5 + $0x98] sm:$0xff]  ;;  %v46_v16 = vld [vmem:[%s1367_s5 + $0xa0] sm:$0xff]  ;;  %v48_v19 = vld [vmem:[%s1367_s5 + $0xb0] sm:$0xff] }
  0x14   :  { %705 = vmatpush1.bf16.msra.mxu0 %v704_v17  ;;  %813 = vmatpush1.bf16.msra.mxu1 %v704_v17  ;;  %v755_v15 = vpack.c.bf16 %v45_v14, %v44_v13  ;;  %v47_v17 = vld [vmem:[%s1367_s5 + $0xa8] sm:$0xff]  ;;  %v653_v22 = vld [vmem:[%s1367_s5 + $0x190] sm:$0xff]  ;;  %v50_v24 = vld [vmem:[%s1367_s5 + $0xc0] sm:$0xff] }
  0x15   :  { %706 = vmatprep.subr.bf16.mxu0 %v925_v0  ;;  %814 = vmatprep.subr.bf16.mxu1 %v925_v0  ;;  %v758_v18 = vpack.c.bf16 %v47_v17, %v46_v16  ;;  %v103_v25 = vld [vmem:[%s1370_s0] sm:$0xff]  ;;  %v106_v30 = vld [vmem:[%s1370_s0 + $0x18] sm:$0xff]  ;;  %v105_v33 = vld [vmem:[%s1370_s0 + $0x10] sm:$0xff] }
  0x16   :  { %v1220_v27 = vld [vmem:[%s1371_s2] sm:$0xff]  ;;  %v1237_v31 = vld [vmem:[%s1371_s2 + $0x18] sm:$0xff]  ;;  %v1245_v34 = vld [vmem:[%s1371_s2 + $0x10] sm:$0xff] }
  0x17   :  { %v655_v28 = vld [vmem:[%s1367_s5 + $0x1a0] sm:$0xff]  ;;  %v658_v36 = vld [vmem:[%s1367_s5 + $0x1b8] sm:$0xff]  ;;  %v522_v37 = vld [vmem:[%s1372_s4 + $0x8] sm:$0xff] }
  0x18   :  { %708 = vmatpush1.bf16.msra.mxu0 %v707_v20  ;;  %816 = vmatpush1.bf16.msra.mxu1 %v707_v20  ;;  %v49_v20 = vld [vmem:[%s1367_s5 + $0xb8] sm:$0xff]  ;;  %v659_v39 = vld [vmem:[%s1367_s5 + $0x1c0] sm:$0xff]  ;;  %v660_v40 = vld [vmem:[%s1367_s5 + $0x1c8] sm:$0xff] }
  0x19   :  { %709 = vmatprep.subr.bf16.mxu0 %v925_v0  ;;  %817 = vmatprep.subr.bf16.mxu1 %v925_v0  ;;  %v761_v21 = vpack.c.bf16 %v49_v20, %v48_v19  ;;  %v663_v46 = vld [vmem:[%s1367_s5 + $0x1e0] sm:$0xff]  ;;  %v664_v47 = vld [vmem:[%s1367_s5 + $0x1e8] sm:$0xff]  ;;  %v673_v61 = vld [vmem:[%s1367_s5 + $0x230] sm:$0xff] }
  0x1a   :  { %v668_v53 = vld [vmem:[%s1367_s5 + $0x208] sm:$0xff]  ;;  %v671_v58 = vld [vmem:[%s1367_s5 + $0x220] sm:$0xff]  ;;  %v674_v62 = vld [vmem:[%s1367_s5 + $0x238] sm:$0xff] }
  0x1b   :  { %v672_v59 = vld [vmem:[%s1367_s5 + $0x228] sm:$0xff]  ;;  %v675_v1 = vld [vmem:[%s1367_s5 + $0x240] sm:$0xff]  ;;  %v677_v4 = vld [vmem:[%s1367_s5 + $0x250] sm:$0xff] }
  0x1c   :  { %711 = vmatpush1.bf16.msra.mxu0 %v710_v23  ;;  %819 = vmatpush1.bf16.msra.mxu1 %v710_v23  ;;  %v654_v23 = vld [vmem:[%s1367_s5 + $0x198] sm:$0xff]  ;;  %v676_v2 = vld [vmem:[%s1367_s5 + $0x248] sm:$0xff]  ;;  %v521_v5 = vld [vmem:[%s1372_s4] sm:$0xff] }
  0x1d   :  { %712 = vmatprep.subr.bf16.mxu0 %v925_v0  ;;  %820 = vmatprep.subr.bf16.mxu1 %v925_v0  ;;  %v690_v8 = vld [vmem:[%s1373_s6] ss:$0 sm:$0xff] }
  0x20   :  { %714 = vmatpush1.bf16.msra.mxu0 %v713_v26  ;;  %822 = vmatpush1.bf16.msra.mxu1 %v713_v26  ;;  %v764_v26 = vpack.c.bf16 %v654_v23, %v653_v22 }
  0x21   :  { %715 = vmatprep.subr.bf16.mxu0 %v925_v0  ;;  %823 = vmatprep.subr.bf16.mxu1 %v925_v0 }
  0x24   :  { %717 = vmatpush1.bf16.msra.mxu0 %v716_v29  ;;  %825 = vmatpush1.bf16.msra.mxu1 %v716_v29  ;;  %v656_v29 = vld [vmem:[%s1367_s5 + $0x1a8] sm:$0xff] }
  0x25   :  { %718 = vmatprep.subr.bf16.mxu0 %v925_v0  ;;  %826 = vmatprep.subr.bf16.mxu1 %v925_v0 }
  0x28   :  { %720 = vmatpush1.bf16.msra.mxu0 %v719_v32  ;;  %828 = vmatpush1.bf16.msra.mxu1 %v719_v32  ;;  %v767_v32 = vpack.c.bf16 %v656_v29, %v655_v28 }
  0x29   :  { %721 = vmatprep.subr.bf16.mxu0 %v925_v0  ;;  %829 = vmatprep.subr.bf16.mxu1 %v925_v0 }
  0x2c   :  { %723 = vmatpush1.bf16.msra.mxu0 %v722_v35  ;;  %831 = vmatpush1.bf16.msra.mxu1 %v722_v35  ;;  %v657_v35 = vld [vmem:[%s1367_s5 + $0x1b0] sm:$0xff] }
  0x2d   :  { %724 = vmatprep.subr.bf16.mxu0 %v925_v0  ;;  %832 = vmatprep.subr.bf16.mxu1 %v925_v0 }
  0x30   :  { %726 = vmatpush1.bf16.msra.mxu0 %v725_v38  ;;  %834 = vmatpush1.bf16.msra.mxu1 %v725_v38  ;;  %v770_v38 = vpack.c.bf16 %v658_v36, %v657_v35 }
  0x31   :  { %166 = vmatprep.subr.mxu0 %v926_v41  ;;  %419 = vmatprep.subr.mxu1 %v926_v41 }
  0x34   :  { %167 = vmatpush1.msra.mxu0 %v652_v42  ;;  %420 = vmatpush1.msra.mxu1 %v652_v42  ;;  %v773_v42 = vpack.c.bf16 %v660_v40, %v659_v39 }
  0x35   :  { %727 = vmatprep.subr.bf16.mxu0 %v925_v0  ;;  %835 = vmatprep.subr.bf16.mxu1 %v925_v0 }
  0x36   :  { %183 = vmatmul.mubr.f32.vlgmr.msra.gmra.mrb[0].mxu0 %v107_v43  ;;  %436 = vmatmul.mubr.f32.vlgmr.msra.gmra.mrb[0].mxu1 %v361_v45  ;;  %v661_v43 = vld [vmem:[%s1367_s5 + $0x1d0] sm:$0xff] }
  0x37   :  { %729 = vmatpush1.bf16.msra.mxu0 %v728_v44  ;;  %837 = vmatpush1.bf16.msra.mxu1 %v728_v44  ;;  %v662_v44 = vld [vmem:[%s1367_s5 + $0x1d8] sm:$0xff] }
  0x38   :  { %730 = vmatprep.subr.bf16.mxu0 %v925_v0  ;;  %838 = vmatprep.subr.bf16.mxu1 %v925_v0  ;;  %v776_v45 = vpack.c.bf16 %v662_v44, %v661_v43 }
  0x39   :  { %679 = vmatprep.mubr.msk.f32.mxu0 %vm111_vm0, %v110_v48  ;;  %685 = vmatprep.mubr.msk.f32.mxu1 %vm111_vm0, %v364_v49  ;;  %v779_v48 = vpack.c.bf16 %v664_v47, %v663_v46  ;;  %v665_v49 = vld [vmem:[%s1367_s5 + $0x1f0] sm:$0xff] }
  0x3a   :  { %188 = vmatmul.mubr.f32.gmra.mrb[2].mxu0 %v109_v51  ;;  %441 = vmatmul.mubr.f32.gmra.mrb[2].mxu1 %v363_v52  ;;  %v667_v52 = vld [vmem:[%s1367_s5 + $0x200] sm:$0xff] }
  0x3b   :  { %732 = vmatpush1.bf16.msra.mxu0 %v731_v50  ;;  %840 = vmatpush1.bf16.msra.mxu1 %v731_v50  ;;  %v666_v50 = vld [vmem:[%s1367_s5 + $0x1f8] sm:$0xff]  ;;  %v785_v54 = vpack.c.bf16 %v668_v53, %v667_v52 }
  0x3c   :  { %733 = vmatprep.subr.bf16.mxu0 %v925_v0  ;;  %841 = vmatprep.subr.bf16.mxu1 %v925_v0  ;;  %v782_v51 = vpack.c.bf16 %v666_v50, %v665_v49 }
  0x3d   :  { %680 = vmatprep.mubr.msk.f32.mxu0 %vm111_vm0, %v104_v55  ;;  %686 = vmatprep.mubr.msk.f32.mxu1 %vm111_vm0, %v1124_v56  ;;  %v669_v55 = vld [vmem:[%s1367_s5 + $0x210] sm:$0xff] }
  0x3f   :  { %735 = vmatpush1.bf16.msra.mxu0 %v734_v57  ;;  %843 = vmatpush1.bf16.msra.mxu1 %v734_v57 }
  0x40   :  { %736 = vmatprep.subr.bf16.mxu0 %v925_v0  ;;  %844 = vmatprep.subr.bf16.mxu1 %v925_v0 }
  0x43   :  { %738 = vmatpush1.bf16.msra.mxu0 %v737_v60  ;;  %846 = vmatpush1.bf16.msra.mxu1 %v737_v60  ;;  %v791_v60 = vpack.c.bf16 %v672_v59, %v671_v58 }
  0x44   :  { %739 = vmatprep.subr.bf16.mxu0 %v925_v0  ;;  %847 = vmatprep.subr.bf16.mxu1 %v925_v0 }
  0x47   :  { %741 = vmatpush1.bf16.msra.mxu0 %v740_v63  ;;  %849 = vmatpush1.bf16.msra.mxu1 %v740_v63  ;;  %v794_v63 = vpack.c.bf16 %v674_v62, %v673_v61 }
  0x48   :  { %742 = vmatprep.subr.bf16.mxu0 %v925_v0  ;;  %850 = vmatprep.subr.bf16.mxu1 %v925_v0 }
  0x4b   :  { %744 = vmatpush1.bf16.msra.mxu0 %v743_v3  ;;  %852 = vmatpush1.bf16.msra.mxu1 %v743_v3  ;;  %v797_v3 = vpack.c.bf16 %v676_v2, %v675_v1 }
  0x4c   :  { %745 = vmatprep.subr.bf16.mxu0 %v925_v0  ;;  %853 = vmatprep.subr.bf16.mxu1 %v925_v0 }
  0x4f   :  { %747 = vmatpush1.bf16.msra.mxu0 %v746_v6  ;;  %855 = vmatpush1.bf16.msra.mxu1 %v746_v6  ;;  %v524_v6 = vld [vmem:[%s1372_s4 + $0x18] sm:$0xff] }
  0x50   :  { %748 = vmatprep.subr.bf16.mxu0 %v925_v0  ;;  %856 = vmatprep.subr.bf16.mxu1 %v925_v0 }
  0x53   :  { %750 = vmatpush1.bf16.msra.mxu0 %v749_v9  ;;  %858 = vmatpush1.bf16.msra.mxu1 %v749_v9 }
  0x54   :  { %751 = vmatprep.subr.bf16.mxu0 %v925_v0  ;;  %859 = vmatprep.subr.bf16.mxu1 %v925_v0 }
  0x57   :  { %753 = vmatpush1.bf16.msra.mxu0 %v752_v12  ;;  %861 = vmatpush1.bf16.msra.mxu1 %v752_v12 }
  0x58   :  { %754 = vmatprep.subr.bf16.mxu0 %v925_v0  ;;  %862 = vmatprep.subr.bf16.mxu1 %v925_v0 }
  0x5b   :  { %756 = vmatpush1.bf16.msra.mxu0 %v755_v15  ;;  %864 = vmatpush1.bf16.msra.mxu1 %v755_v15 }
  0x5c   :  { %757 = vmatprep.subr.bf16.mxu0 %v925_v0  ;;  %865 = vmatprep.subr.bf16.mxu1 %v925_v0 }
  0x5f   :  { %759 = vmatpush1.bf16.msra.mxu0 %v758_v18  ;;  %867 = vmatpush1.bf16.msra.mxu1 %v758_v18 }
  0x60   :  { %760 = vmatprep.subr.bf16.mxu0 %v925_v0  ;;  %868 = vmatprep.subr.bf16.mxu1 %v925_v0 }
  0x63   :  { %762 = vmatpush1.bf16.msra.mxu0 %v761_v21  ;;  %870 = vmatpush1.bf16.msra.mxu1 %v761_v21 }
  0x64   :  { %247 = vmatprep.subr.mxu0 %v926_v41  ;;  %494 = vmatprep.subr.mxu1 %v926_v41 }
  0x67   :  { %248 = vmatpush1.msra.mxu0 %v50_v24  ;;  %495 = vmatpush1.msra.mxu1 %v50_v24 }
  0x68   :  { %763 = vmatprep.subr.bf16.mxu0 %v925_v0  ;;  %871 = vmatprep.subr.bf16.mxu1 %v925_v0 }
  0x69   :  { %264 = vmatmul.mubr.f32.vlgmr.msra.gmra.mrb[0].mxu0 %v103_v25  ;;  %511 = vmatmul.mubr.f32.vlgmr.msra.gmra.mrb[0].mxu1 %v1220_v27 }
  0x6a   :  { %765 = vmatpush1.bf16.msra.mxu0 %v764_v26  ;;  %873 = vmatpush1.bf16.msra.mxu1 %v764_v26 }
  0x6b   :  { %766 = vmatprep.subr.bf16.mxu0 %v925_v0  ;;  %874 = vmatprep.subr.bf16.mxu1 %v925_v0 }
  0x6c   :  { %681 = vmatprep.mubr.msk.f32.mxu0 %vm111_vm0, %v106_v30  ;;  %687 = vmatprep.mubr.msk.f32.mxu1 %vm111_vm0, %v1237_v31 }
  0x6d   :  { %269 = vmatmul.mubr.f32.gmra.mrb[2].mxu0 %v105_v33  ;;  %516 = vmatmul.mubr.f32.gmra.mrb[2].mxu1 %v1245_v34 }
  0x6e   :  { %768 = vmatpush1.bf16.msra.mxu0 %v767_v32  ;;  %876 = vmatpush1.bf16.msra.mxu1 %v767_v32 }
  0x6f   :  { %769 = vmatprep.subr.bf16.mxu0 %v925_v0  ;;  %877 = vmatprep.subr.bf16.mxu1 %v925_v0 }
  0x70   :  { %682 = vmatprep.mubr.msk.f32.mxu0 %vm111_vm0, %v1124_v56  ;;  %688 = vmatprep.mubr.msk.f32.mxu1 %vm111_vm0, %v522_v37  ;;  %v670_v56 = vld [vmem:[%s1367_s5 + $0x218] sm:$0xff] }
  0x71   :  { %v788_v57 = vpack.c.bf16 %v670_v56, %v669_v55 }
  0x72   :  { %771 = vmatpush1.bf16.msra.mxu0 %v770_v38  ;;  %879 = vmatpush1.bf16.msra.mxu1 %v770_v38 }
  0x73   :  { %772 = vmatprep.subr.bf16.mxu0 %v925_v0  ;;  %880 = vmatprep.subr.bf16.mxu1 %v925_v0 }
  0x76   :  { %774 = vmatpush1.bf16.msra.mxu0 %v773_v42  ;;  %882 = vmatpush1.bf16.msra.mxu1 %v773_v42 }
  0x77   :  { %775 = vmatprep.subr.bf16.mxu0 %v925_v0  ;;  %883 = vmatprep.subr.bf16.mxu1 %v925_v0 }
  0x7a   :  { %777 = vmatpush1.bf16.msra.mxu0 %v776_v45  ;;  %885 = vmatpush1.bf16.msra.mxu1 %v776_v45 }
  0x7b   :  { %778 = vmatprep.subr.bf16.mxu0 %v925_v0  ;;  %886 = vmatprep.subr.bf16.mxu1 %v925_v0 }
  0x7e   :  { %780 = vmatpush1.bf16.msra.mxu0 %v779_v48  ;;  %888 = vmatpush1.bf16.msra.mxu1 %v779_v48 }
  0x7f   :  { %781 = vmatprep.subr.bf16.mxu0 %v925_v0  ;;  %889 = vmatprep.subr.bf16.mxu1 %v925_v0 }
  0x82   :  { %783 = vmatpush1.bf16.msra.mxu0 %v782_v51  ;;  %891 = vmatpush1.bf16.msra.mxu1 %v782_v51 }
  0x83   :  { %784 = vmatprep.subr.bf16.mxu0 %v925_v0  ;;  %892 = vmatprep.subr.bf16.mxu1 %v925_v0 }
  0x86   :  { %786 = vmatpush1.bf16.msra.mxu0 %v785_v54  ;;  %894 = vmatpush1.bf16.msra.mxu1 %v785_v54 }
  0x87   :  { %787 = vmatprep.subr.bf16.mxu0 %v925_v0  ;;  %895 = vmatprep.subr.bf16.mxu1 %v925_v0 }
  0x8a   :  { %789 = vmatpush1.bf16.msra.mxu0 %v788_v57  ;;  %897 = vmatpush1.bf16.msra.mxu1 %v788_v57 }
  0x8b   :  { %790 = vmatprep.subr.bf16.mxu0 %v925_v0  ;;  %898 = vmatprep.subr.bf16.mxu1 %v925_v0 }
  0x8e   :  { %792 = vmatpush1.bf16.msra.mxu0 %v791_v60  ;;  %900 = vmatpush1.bf16.msra.mxu1 %v791_v60 }
  0x8f   :  { %793 = vmatprep.subr.bf16.mxu0 %v925_v0  ;;  %901 = vmatprep.subr.bf16.mxu1 %v925_v0 }
  0x92   :  { %795 = vmatpush1.bf16.msra.mxu0 %v794_v63  ;;  %903 = vmatpush1.bf16.msra.mxu1 %v794_v63 }
  0x93   :  { %796 = vmatprep.subr.bf16.mxu0 %v925_v0  ;;  %904 = vmatprep.subr.bf16.mxu1 %v925_v0  ;;  %v523_v0 = vld [vmem:[%s1372_s4 + $0x10] sm:$0xff] }
  0x96   :  { %798 = vmatpush1.bf16.msra.mxu0 %v797_v3  ;;  %906 = vmatpush1.bf16.msra.mxu1 %v797_v3 }
  0x97   :  { %332 = vmatprep.subr.mxu0 %v926_v41  ;;  %579 = vmatprep.subr.mxu1 %v926_v41 }
  0x9a   :  { %333 = vmatpush1.msra.mxu0 %v677_v4  ;;  %580 = vmatpush1.msra.mxu1 %v677_v4 }
  0x9b   :  { %349 = vmatmul.mubr.f32.vlgmr.msra.gmra.mrb[0].mxu0 %v1220_v27  ;;  %596 = vmatmul.mubr.f32.vlgmr.msra.gmra.mrb[0].mxu1 %v521_v5 }
  0x9c   :  { %683 = vmatprep.mubr.msk.f32.mxu0 %vm111_vm0, %v1237_v31  ;;  %689 = vmatprep.mubr.msk.f32.mxu1 %vm111_vm0, %v524_v6 }
  0x9f   :  { %354 = vmatmul.mubr.f32.gmra.mrb[2].mxu0 %v1245_v34  ;;  %601 = vmatmul.mubr.f32.gmra.mrb[2].mxu1 %v523_v0 }
 0x16e   :  { %v350_v41 = vpop.f32.mrb[0].mxu0  ;;  %v597_v7 = vpop.f32.mrb[0].mxu1 }
 0x16f   :  { %v608_v9 = vmax.f32 %v350_v41, %v597_v7  ;;  %v352_v10 = vpop.f32.mrb[1].mxu0  ;;  %v599_v11 = vpop.f32.mrb[1].mxu1 }
 0x171   :  { %v617_v12 = vadd.f32 %v690_v8, %v608_v9 }
 0x172   :  { %v355_v13 = vpop.f32.mrb[2].mxu0  ;;  %v602_v14 = vpop.f32.mrb[2].mxu1 }
 0x173   :  { %v619_v15 = vmax.f32 %v617_v12, 0.0  ;;  %v609_v16 = vmax.f32 %v355_v13, %v602_v14  ;;  %v357_v17 = vpop.f32.mrb[3].mxu0  ;;  %v604_v18 = vpop.f32.mrb[3].mxu1 }
 0x175   :  { %622 = vst.msk [vmem:[%s1374_s7] sm:$0xff] %vm621_vm1, %v619_v15  ;;  %v618_v19 = vadd.f32 %v690_v8, %v609_v16 }
 0x177   :  { %v620_v20 = vmax.f32 %v618_v19, 0.0 }
 0x179   :  { %623 = vst.msk [vmem:[%s1374_s7 + $0x8] sm:$0xff] %vm621_vm1, %v620_v20 }

// kernel: net_forward.5
= control target key start
LH: loop header
LB: loop body
LE: loop exit
PB: predicated region body
PF: predicated region fallthrough
CT: control target
= control target key end

     0   :  { %v3960_v3 = vmov 0.0   ;;  %vm108_vm0 = vcmask 1043456   ;;  %vm101_vm1 = vcmask 818176   ;;  %v91_v41 = vlaneseq  ;;  %s3962_s19 = smov 32   ;;  %s4832_s2 = inlined_call_operand.vmem [shape: f32[100,256], index: 2, kind: input, shape index: {}]   ;;  %s4833_s0 = inlined_call_operand.vmem [shape: f32[16,100], index: 0, kind: input, shape index: {}]   ;;  %s4834_s5 = inlined_call_operand.vmem [shape: f32[1,256], index: 5, kind: input, shape index: {}]   ;;  %s4835_s3 = inlined_call_operand.vmem [shape: f32[32,128], index: 3, kind: input, shape index: {}]   ;;  %s4836_s4 = inlined_call_operand.vmem [shape: f32[32,128], index: 4, kind: input, shape index: {}]   ;;  %s4837_s6 = inlined_call_operand.vmem [shape: f32[64,256], index: 6, kind: input, shape index: {}]   ;;  %s4838_s9 = inlined_call_operand.vmem [shape: f32[1,256], index: 9, kind: input, shape index: {}]   ;;  %s4839_s7 = inlined_call_operand.vmem [shape: f32[32,128], index: 7, kind: input, shape index: {}]   ;;  %s4840_s8 = inlined_call_operand.vmem [shape: f32[32,128], index: 8, kind: input, shape index: {}]   ;;  %s4841_s10 = inlined_call_operand.vmem [shape: f32[32,128], index: 10, kind: input, shape index: {}]   ;;  %s4842_s11 = inlined_call_operand.vmem [shape: f32[32,128], index: 11, kind: input, shape index: {}]   ;;  %s4843_s14 = inlined_call_operand.vmem [shape: f32[128,128], index: 14, kind: input, shape index: {}]   ;;  %s4844_s12 = inlined_call_operand.vmem [shape: f32[27,128], index: 12, kind: input, shape index: {}]   ;;  %s4845_s1 = inlined_call_operand.vmem [shape: f32[4,27], index: 1, kind: input, shape index: {}]   ;;  %s4846_s16 = inlined_call_operand.vmem [shape: f32[128,1], index: 16, kind: input, shape index: {}]   ;;  %s4847_s13 = inlined_call_operand.vmem [shape: f32[1,128], index: 13, kind: input, shape index: {}]   ;;  %s4848_s17 = inlined_call_operand.<no memory space> [shape: f32[1,1], index: 17, kind: input, shape index: {}]   ;;  %s4849_s15 = inlined_call_operand.vmem [shape: f32[1,128], index: 15, kind: input, shape index: {}]   ;;  %s4850_s18 = inlined_call_operand.vmem [shape: f32[4,1], index: 18, kind: output, shape index: {}]  }
   0x1   :  { %4853 = sst [smem:[#allocation5_spill]] %s4832_s2  ;;  %179 = vmatprep.mubr.f32.mxu0 %v3960_v3  ;;  %s3961_s2 = smov 64   ;;  %vm3964_vm2 = vmmov 0   ;;  %vm258_vm3 = vcmask 257024   ;;  %vm268_vm4 = vcmask 261120   ;;  %vm264_vm5 = vcmask 523524  }
   0x2   :  { %4854 = sst [smem:[#allocation6_spill]] %s4833_s0  ;;  %s4856_s29 = sld [smem:[#allocation5_spill]]  ;;  %v92_v42 = vshrl.u32 %v91_v41, 7  ;;  %3234 = vmatprep.mubr.msk.f32.mxu1 %vm3964_vm2, %v3960_v3  ;;  %vm479_vm6 = vcmask 261124   ;;  %vm485_vm7 = vcmask 519424   ;;  %vm955_vm8 = vcmask 523264  }
   0x3   :  { %4855 = sst [smem:[#allocation7_spill]] %s4834_s5  ;;  %s4857_s25 = sld [smem:[#allocation6_spill]]  ;;  %vm2746_vm9 = vcmask 1042432   ;;  %vm3965_vm10 = vmmov 1   ;;  %vm2742_vm12 = vcmask 220160   ;;  %vm3023_vm13 = vcmask 3072  }
   0x4   :  { %v4147_v43 = vsub.s32 0, %v92_v42  ;;  %s4858_s30 = sld [smem:[#allocation7_spill]]  ;;  %v4152_v45 = vsub.s32 1, %v92_v42  ;;  %vm3708_vm11 = vmpackc.low %vm2746_vm9, %vm3965_vm10 }
   0x8   :  { %v64_v0 = vld [vmem:[%s4856_s29 + $0x8] sm:$0xff]  ;;  %v66_v1 = vld [vmem:[%s4856_s29 + $0x18] sm:$0xff]  ;;  %v63_v2 = vld [vmem:[%s4856_s29] sm:$0xff] }
   0x9   :  { %v3527_v4 = vpack.c.bf16 %v66_v1, %v64_v0  ;;  %v65_v5 = vld [vmem:[%s4856_s29 + $0x10] sm:$0xff]  ;;  %v68_v6 = vld [vmem:[%s4856_s29 + $0x28] sm:$0xff]  ;;  %v70_v7 = vld [vmem:[%s4856_s29 + $0x38] sm:$0xff] }
   0xa   :  { %v3529_v8 = vpack.c.bf16 %v65_v5, %v63_v2  ;;  %v3531_v9 = vpack.c.bf16 %v70_v7, %v68_v6  ;;  %v67_v10 = vld [vmem:[%s4856_s29 + $0x20] sm:$0xff]  ;;  %v69_v11 = vld [vmem:[%s4856_s29 + $0x30] sm:$0xff]  ;;  %v72_v12 = vld [vmem:[%s4856_s29 + $0x48] sm:$0xff] }
   0xb   :  { %3528 = vmatprep.subr.bf16.mxu0 %v3527_v4  ;;  %v74_v13 = vld [vmem:[%s4856_s29 + $0x58] sm:$0xff]  ;;  %v3533_v14 = vpack.c.bf16 %v69_v11, %v67_v10  ;;  %v71_v16 = vld [vmem:[%s4856_s29 + $0x40] sm:$0xff]  ;;  %v73_v17 = vld [vmem:[%s4856_s29 + $0x50] sm:$0xff] }
   0xc   :  { %3530 = vmatpush1.bf16.msra.mxu0 %v3529_v8  ;;  %v3535_v15 = vpack.c.bf16 %v74_v13, %v72_v12  ;;  %v76_v18 = vld [vmem:[%s4856_s29 + $0x68] sm:$0xff]  ;;  %v78_v19 = vld [vmem:[%s4856_s29 + $0x78] sm:$0xff]  ;;  %v3537_v20 = vpack.c.bf16 %v73_v17, %v71_v16  ;;  %v75_v22 = vld [vmem:[%s4856_s29 + $0x60] sm:$0xff] }
   0xd   :  { %3532 = vmatprep.subr.bf16.mxu0 %v3531_v9  ;;  %v3539_v21 = vpack.c.bf16 %v78_v19, %v76_v18  ;;  %v77_v23 = vld [vmem:[%s4856_s29 + $0x70] sm:$0xff]  ;;  %v80_v24 = vld [vmem:[%s4856_s29 + $0x88] sm:$0xff]  ;;  %v82_v25 = vld [vmem:[%s4856_s29 + $0x98] sm:$0xff] }
   0xe   :  { %v3541_v26 = vpack.c.bf16 %v77_v23, %v75_v22  ;;  %v3543_v27 = vpack.c.bf16 %v82_v25, %v80_v24  ;;  %v79_v28 = vld [vmem:[%s4856_s29 + $0x80] sm:$0xff]  ;;  %v81_v29 = vld [vmem:[%s4856_s29 + $0x90] sm:$0xff]  ;;  %v84_v30 = vld [vmem:[%s4856_s29 + $0xa8] sm:$0xff] }
   0xf   :  { %v86_v31 = vld [vmem:[%s4856_s29 + $0xb8] sm:$0xff]  ;;  %v3545_v32 = vpack.c.bf16 %v81_v29, %v79_v28  ;;  %v83_v34 = vld [vmem:[%s4856_s29 + $0xa0] sm:$0xff]  ;;  %v85_v35 = vld [vmem:[%s4856_s29 + $0xb0] sm:$0xff] }
  0x10   :  { %3534 = vmatpush1.bf16.msra.mxu0 %v3533_v14  ;;  %v3547_v33 = vpack.c.bf16 %v86_v31, %v84_v30  ;;  %v3549_v36 = vpack.c.bf16 %v85_v35, %v83_v34  ;;  %v88_v37 = vld [vmem:[%s4856_s29 + $0xc8] sm:$0xf]  ;;  %v87_v38 = vld [vmem:[%s4856_s29 + $0xc0] sm:$0xf]  ;;  %v198_v18 = vld [vmem:[%s4835_s3 + $0x10] sm:$0xff] }
  0x11   :  { %3536 = vmatprep.subr.bf16.mxu0 %v3535_v15  ;;  %v61_v39 = vld [vmem:[%s4857_s25] sm:$0xff]  ;;  %v62_v40 = vld [vmem:[%s4857_s25 + $0x8] sm:$0xff]  ;;  %v3963_v15 = vmov 0.0|0.0  }
  0x12   :  { %v89_v44 = vld [vmem:[%s4858_s30] sm:$0x3]  ;;  %3551 = vmatprep.subr.bf16.mxu1 %v3963_v15  ;;  %v197_v17 = vld [vmem:[%s4835_s3 + $0x8] sm:$0xff] }
  0x13   :  { %v94_v46 = vrot.slane %v89_v44, %v4147_v43  ;;  %v98_v47 = vrot.slane %v89_v44, %v4152_v45  ;;  %v196_v16 = vld [vmem:[%s4835_s3] sm:$0xff]  ;;  %v201_v30 = vld [vmem:[%s4836_s4 + $0x8] sm:$0xff] }
  0x14   :  { %3538 = vmatpush1.bf16.msra.mxu0 %v3537_v20  ;;  %v3552_v19 = vpack.c.bf16 %v197_v17, %v196_v16  ;;  %v199_v20 = vld [vmem:[%s4835_s3 + $0x18] sm:$0xff]  ;;  %v200_v29 = vld [vmem:[%s4836_s4] sm:$0xff] }
  0x15   :  { %3540 = vmatprep.subr.bf16.mxu0 %v3539_v21  ;;  %v3555_v22 = vpack.c.bf16 %v199_v20, %v198_v18  ;;  %v4200_v31 = vpack.c.bf16 %v201_v30, %v200_v29 }
  0x16   :  { %3553 = vmatpush3.bf16.msra.mxu1 %v3552_v19 }
  0x17   :  { %3554 = vmatprep.subr.bf16.mxu1 %v3963_v15 }
  0x18   :  { %3542 = vmatpush1.bf16.msra.mxu0 %v3541_v26 }
  0x19   :  { %3544 = vmatprep.subr.bf16.mxu0 %v3543_v27 }
  0x1a   :  { %3556 = vmatpush3.bf16.msra.mxu1 %v3555_v22 }
  0x1b   :  { %3557 = vmatprep.subr.bf16.mxu1 %v3963_v15 }
  0x1c   :  { %3546 = vmatpush1.bf16.msra.mxu0 %v3545_v32  ;;  %v202_v32 = vld [vmem:[%s4836_s4 + $0x10] sm:$0xff] }
  0x1d   :  { %3548 = vmatprep.subr.bf16.mxu0 %v3547_v33  ;;  %v203_v33 = vld [vmem:[%s4836_s4 + $0x18] sm:$0xff] }
  0x1e   :  { %v4211_v35 = vpack.c.bf16 %v203_v33, %v202_v32 }
  0x20   :  { %3550 = vmatpush1.bf16.msra.mxu0 %v3549_v36 }
  0x21   :  { %3029 = vmatprep.subr.msk.mxu0 %vm108_vm0, %v88_v37 }
  0x24   :  { %3030 = vmatpush1.msk.msra.mxu0 %vm108_vm0, %v87_v38 }
  0x25   :  { %3031 = vmatmul.mubr.msk.f32.vlgmr.msra.gmra.mrb[0].mxu0 %vm101_vm1, %v61_v39  ;;  %3575 = vmatprep.subr.bf16.mxu0 %v3963_v15 }
  0x26   :  { %185 = vmatprep.mubr.f32.mxu0 %v3960_v3  ;;  %3577 = vmatpush3.bf16.msra.mxu0 %v3552_v19 }
  0x27   :  { %3578 = vmatprep.subr.bf16.mxu0 %v3963_v15 }
  0x29   :  { %3032 = vmatmul.mubr.msk.f32.gmra.mrb[2].mxu0 %vm101_vm1, %v62_v40 }
  0x2a   :  { %3278 = vmatprep.mubr.msk.f32.mxu0 %vm3964_vm2, %v3960_v3  ;;  %3580 = vmatpush3.bf16.msra.mxu0 %v3555_v22 }
  0xf8   :  { %v181_v48 = vpop.f32.mrb[0].mxu0 }
  0xf9   :  { %v182_v49 = vadd.f32 %v181_v48, %v94_v46  ;;  %v183_v50 = vpop.f32.mrb[1].mxu0 }
  0xfa   :  { %v184_v51 = vadd.f32 %v183_v50, %v98_v47 }
  0xfb   :  { %192 = vst [vmem:[#allocation2] sm:$0xff] %v182_v49 }
  0xfc   :  { %193 = vst [vmem:[#allocation2 + $0x8] sm:$0xff] %v184_v51  ;;  %v187_v52 = vpop.f32.mrb[2].mxu0 }
  0xfd   :  { %v188_v53 = vadd.f32 %v187_v52, %v94_v46  ;;  %v189_v54 = vpop.f32.mrb[3].mxu0 }
  0xfe   :  { %v190_v55 = vadd.f32 %v189_v54, %v98_v47 }
  0xff   :  { %194 = vst [vmem:[#allocation2 + $0x10] sm:$0xff] %v188_v53 }
 0x100   :  { %195 = vst [vmem:[#allocation2 + $0x18] sm:$0xff] %v190_v55 }
 0x102   :  { %v204_v56 = vld [vmem:[#allocation2] sm:$0xf]  ;;  %v266_v40 = vld [vmem:[#allocation2] sm:$0xf0] }
 0x103   :  { %3764 = vtanh.f32 %v204_v56  ;;  %v3033_v60 = vmul.f32 -1.442695, %v204_v56 }
 0x106   :  { %v487_v17 = vld [vmem:[#allocation2 + $0x10] sm:$0xf] }
 0x107   :  { %v205_v57 = vld [vmem:[#allocation2 + $0x18] sm:$0xf0]  ;;  %v267_v42 = vld [vmem:[#allocation2 + $0x18] sm:$0xf] }
 0x108   :  { %3766 = vtanh.f32 %v205_v57  ;;  %v3034_v61 = vmul.f32 -1.442695, %v205_v57 }
 0x109   :  { %3768 = vpow2.f32 %v3033_v60 }
 0x10a   :  { %3770 = vpow2.f32 %v3034_v61 }
 0x10d   :  { %v3765_v58 = vpop.eup %3764 }
 0x10e   :  { %215 = vrot.lane.b32.xlu0 %v3765_v58, %s3961_s2 }
 0x112   :  { %v3767_v59 = vpop.eup %3766 }
 0x113   :  { %239 = vrot.lane.b32.xlu0 %v3767_v59, %s3961_s2  ;;  %v3769_v62 = vpop.eup %3768 }
 0x114   :  { %v209_v63 = vadd.f32 1.0, %v3769_v62  ;;  %v3771_v0 = vpop.eup %3770 }
 0x115   :  { %v233_v1 = vadd.f32 1.0, %v3771_v0 }
 0x116   :  { %3772 = vrcp.f32 %v209_v63 }
 0x117   :  { %3774 = vrcp.f32 %v233_v1 }
 0x120   :  { %v3773_v2 = vpop.eup %3772 }
 0x121   :  { %v3775_v6 = vpop.eup %3774  ;;  %v213_v9 = vmul.f32 0.0, %v3773_v2 }
 0x122   :  { %v237_v12 = vmul.f32 0.0, %v3775_v6 }
 0x180   :  { %v216_v4 = vpop.permute.xlu0 %215 }
 0x181   :  { %v218_v5 = vmul.f32 %v3773_v2, %v216_v4 }
 0x183   :  { %220 = vrot.lane.b32.xlu1 %v218_v5, %s3962_s19 }
 0x185   :  { %v240_v7 = vpop.permute.xlu0 %239 }
 0x186   :  { %v242_v8 = vmul.f32 %v3775_v6, %v240_v7 }
 0x188   :  { %244 = vrot.lane.b32.xlu1 %v242_v8, %s3962_s19 }
 0x1f5   :  { %v221_v10 = vpop.permute.xlu1 %220 }
 0x1f6   :  { %v4160_v11 = vadd.f32 %v221_v10, %v213_v9 }
 0x1f8   :  { %3776 = vtanh.f32 %v4160_v11  ;;  %v429_v62 = vrot.slane %v4160_v11, 4 }
 0x1fa   :  { %v245_v13 = vpop.permute.xlu1 %244 }
 0x1fb   :  { %v4163_v14 = vadd.f32 %v245_v13, %v237_v12 }
 0x1fd   :  { %3778 = vtanh.f32 %v4163_v14 }
 0x202   :  { %v3777_v21 = vpop.eup %3776 }
 0x203   :  { %226 = vrot.lane.b32.xlu0 %v3777_v21, %s3961_s2 }
 0x207   :  { %v3779_v23 = vpop.eup %3778 }
 0x208   :  { %250 = vrot.lane.b32.xlu1 %v3779_v23, %s3961_s2 }
 0x275   :  { %v227_v24 = vpop.permute.xlu0 %226 }
 0x276   :  { %v229_v25 = vmul.f32 %v3773_v2, %v227_v24  ;;  %v456_v2 = vrot.slane %v4163_v14, 4  ;;  %v488_v24 = vld [vmem:[#allocation2 + $0x8] sm:$0xf0] }
 0x278   :  { %255 = vrot.lane.b32.xlu0 %v229_v25, %s3962_s19 }
 0x27a   :  { %v251_v26 = vpop.permute.xlu1 %250 }
 0x27b   :  { %v4190_v27 = vmul.f32 %v3775_v6, %v251_v26 }
 0x27d   :  { %v345_v28 = vrot.slane %v4190_v27, 4 }
 0x27f   :  { %346 = vrot.lane.b32.xlu1 %v345_v28, %s3962_s19 }
 0x2ea   :  { %v256_v34 = vpop.permute.xlu0 %255 }
 0x2eb   :  { %259 = vst.msk [vmem:[#allocation3] sm:$0xf] %vm258_vm3, %v256_v34  ;;  %3235 = vmatmul.mubr.msk.f32.vlgmr.msra.gmra.mrb[0].mxu1 %vm268_vm4, %v256_v34 }
 0x2ec   :  { %3559 = vmatpush3.bf16.msra.mxu1 %v4200_v31  ;;  %3245 = vmatprep.mubr.msk.f32.mxu1 %vm3964_vm2, %v3960_v3 }
 0x2ed   :  { %3560 = vmatprep.subr.bf16.mxu1 %v3963_v15 }
 0x2f0   :  { %3562 = vmatpush3.bf16.msra.mxu1 %v4211_v35 }
 0x2f1   :  { %v347_v36 = vpop.permute.xlu1 %346  ;;  %3563 = vmatprep.subr.bf16.mxu1 %v3963_v15 }
 0x2f3   :  { %3246 = vmatmul.mubr.msk.f32.vlgmr.msra.gmra.mrb[2].mxu1 %vm268_vm4, %v347_v36 }
 0x2f4   :  { %3565 = vmatpush3.bf16.msra.mxu1 %v3552_v19  ;;  %3256 = vmatprep.mubr.msk.f32.mxu1 %vm3964_vm2, %v3960_v3 }
 0x2f5   :  { %3566 = vmatprep.subr.bf16.mxu1 %v3963_v15 }
 0x2f8   :  { %3568 = vmatpush3.bf16.msra.mxu1 %v3555_v22 }
 0x2f9   :  { %3569 = vmatprep.subr.bf16.mxu1 %v3963_v15 }
 0x3be   :  { %v337_v37 = vpop.f32.mrb[0].mxu1 }
 0x3bf   :  { %v342_v38 = vrot.slane %v337_v37, 4  ;;  %v3236_v39 = vpop.f32.mrb[1].mxu1 }
 0x3c1   :  { %v344_v41 = vadd.f32 %v342_v38, %v266_v40 }
 0x3c3   :  { %3780 = vtanh.f32 %v344_v41  ;;  %v3037_v50 = vmul.f32 -1.442695, %v344_v41 }
 0x3c6   :  { %v416_v44 = vpop.f32.mrb[2].mxu1 }
 0x3c7   :  { %v420_v46 = vadd.f32 %v416_v44, %v267_v42  ;;  %v3247_v47 = vpop.f32.mrb[3].mxu1 }
 0x3c9   :  { %3782 = vtanh.f32 %v420_v46  ;;  %v3038_v51 = vmul.f32 -1.442695, %v420_v46 }
 0x3ca   :  { %3784 = vpow2.f32 %v3037_v50 }
 0x3cb   :  { %3786 = vpow2.f32 %v3038_v51 }
 0x3cd   :  { %v3781_v48 = vpop.eup %3780 }
 0x3ce   :  { %433 = vrot.lane.b32.xlu0 %v3781_v48, %s3961_s2 }
 0x3d3   :  { %v3783_v49 = vpop.eup %3782 }
 0x3d4   :  { %460 = vrot.lane.b32.xlu1 %v3783_v49, %s3961_s2  ;;  %v3785_v52 = vpop.eup %3784 }
 0x3d5   :  { %v424_v53 = vadd.f32 1.0, %v3785_v52  ;;  %v3787_v54 = vpop.eup %3786 }
 0x3d6   :  { %v451_v55 = vadd.f32 1.0, %v3787_v54 }
 0x3d7   :  { %3788 = vrcp.f32 %v424_v53 }
 0x3d8   :  { %3790 = vrcp.f32 %v451_v55 }
 0x3e1   :  { %v3789_v56 = vpop.eup %3788 }
 0x3e2   :  { %v3791_v59 = vpop.eup %3790  ;;  %v431_v63 = vmul.f32 %v3789_v56, %v429_v62 }
 0x3e3   :  { %v458_v4 = vmul.f32 %v3791_v59, %v456_v2 }
 0x440   :  { %v434_v57 = vpop.permute.xlu0 %433 }
 0x441   :  { %v436_v58 = vmul.f32 %v3789_v56, %v434_v57 }
 0x443   :  { %438 = vrot.lane.b32.xlu0 %v436_v58, %s3962_s19 }
 0x446   :  { %v461_v60 = vpop.permute.xlu1 %460 }
 0x447   :  { %v463_v61 = vmul.f32 %v3791_v59, %v461_v60 }
 0x449   :  { %465 = vrot.lane.b32.xlu1 %v463_v61, %s3962_s19 }
 0x4b5   :  { %v439_v0 = vpop.permute.xlu0 %438 }
 0x4b6   :  { %v4228_v1 = vadd.f32 %v439_v0, %v431_v63  ;;  %v707_v63 = vld [vmem:[#allocation2 + $0x10] sm:$0xf0] }
 0x4b8   :  { %3792 = vtanh.f32 %v4228_v1  ;;  %v651_v41 = vrot.slane %v4228_v1, 4  ;;  %v708_v1 = vld [vmem:[#allocation2 + $0x8] sm:$0xf] }
 0x4bb   :  { %v466_v5 = vpop.permute.xlu1 %465 }
 0x4bc   :  { %v4232_v6 = vadd.f32 %v466_v5, %v458_v4 }
 0x4be   :  { %3794 = vtanh.f32 %v4232_v6  ;;  %v678_v47 = vrot.slane %v4232_v6, 4 }
 0x4c2   :  { %v3793_v7 = vpop.eup %3792 }
 0x4c3   :  { %444 = vrot.lane.b32.xlu0 %v3793_v7, %s3961_s2 }
 0x4c8   :  { %v3795_v8 = vpop.eup %3794 }
 0x4c9   :  { %471 = vrot.lane.b32.xlu1 %v3795_v8, %s3961_s2 }
 0x535   :  { %v445_v9 = vpop.permute.xlu0 %444 }
 0x536   :  { %v4237_v10 = vmul.f32 %v3789_v56, %v445_v9 }
 0x538   :  { %v489_v11 = vrot.slane %v4237_v10, 4 }
 0x53a   :  { %490 = vrot.lane.b32.xlu0 %v489_v11, %s3962_s19 }
 0x53b   :  { %v472_v12 = vpop.permute.xlu1 %471 }
 0x53c   :  { %v4241_v13 = vmul.f32 %v3791_v59, %v472_v12 }
 0x53e   :  { %565 = vrot.lane.b32.xlu1 %v4241_v13, %s3962_s19 }
 0x5ac   :  { %v491_v14 = vpop.permute.xlu0 %490 }
 0x5ad   :  { %3257 = vmatmul.mubr.msk.f32.vlgmr.msra.gmra.mrb[4].mxu1 %vm268_vm4, %v491_v14 }
 0x5ae   :  { %3571 = vmatpush3.bf16.msra.mxu1 %v4200_v31  ;;  %3267 = vmatprep.mubr.msk.f32.mxu1 %vm3964_vm2, %v3960_v3 }
 0x5af   :  { %3572 = vmatprep.subr.bf16.mxu1 %v3963_v15 }
 0x5b0   :  { %v566_v16 = vpop.permute.xlu1 %565 }
 0x5b2   :  { %3574 = vmatpush3.bf16.msra.mxu1 %v4211_v35 }
 0x5b3   :  { %3581 = vmatprep.subr.bf16.mxu1 %v3963_v15 }
 0x5b5   :  { %3268 = vmatmul.mubr.msk.f32.vlgmr.msra.gmra.mrb[6].mxu1 %vm268_vm4, %v566_v16 }
 0x5b6   :  { %3583 = vmatpush3.bf16.msra.mxu1 %v4200_v31  ;;  %3289 = vmatprep.mubr.msk.f32.mxu1 %vm3964_vm2, %v3960_v3 }
 0x5b7   :  { %3584 = vmatprep.subr.bf16.mxu1 %v3963_v15 }
 0x5ba   :  { %3586 = vmatpush3.bf16.msra.mxu1 %v4211_v35 }
 0x5bb   :  { %3603 = vmatprep.subr.bf16.mxu1 %v3963_v15 }
 0x680   :  { %v560_v18 = vpop.f32.mrb[4].mxu1 }
 0x681   :  { %v564_v19 = vadd.f32 %v560_v18, %v487_v17  ;;  %v3258_v20 = vpop.f32.mrb[5].mxu1 }
 0x683   :  { %3796 = vtanh.f32 %v564_v19  ;;  %v3041_v29 = vmul.f32 -1.442695, %v564_v19 }
 0x688   :  { %v635_v21 = vpop.f32.mrb[6].mxu1 }
 0x689   :  { %v640_v22 = vrot.slane %v635_v21, 4  ;;  %v3269_v23 = vpop.f32.mrb[7].mxu1 }
 0x68b   :  { %v642_v25 = vadd.f32 %v640_v22, %v488_v24 }
 0x68d   :  { %v3797_v26 = vpop.eup %3796  ;;  %3798 = vtanh.f32 %v642_v25  ;;  %v3042_v30 = vmul.f32 -1.442695, %v642_v25 }
 0x68e   :  { %655 = vrot.lane.b32.xlu1 %v3797_v26, %s3961_s2  ;;  %3800 = vpow2.f32 %v3041_v29 }
 0x68f   :  { %3802 = vpow2.f32 %v3042_v30 }
 0x697   :  { %v3799_v28 = vpop.eup %3798 }
 0x698   :  { %682 = vrot.lane.b32.xlu0 %v3799_v28, %s3961_s2  ;;  %v3801_v31 = vpop.eup %3800 }
 0x699   :  { %v646_v32 = vadd.f32 1.0, %v3801_v31  ;;  %v3803_v33 = vpop.eup %3802 }
 0x69a   :  { %v673_v34 = vadd.f32 1.0, %v3803_v33 }
 0x69b   :  { %3804 = vrcp.f32 %v646_v32 }
 0x69c   :  { %3806 = vrcp.f32 %v673_v34  ;;  %v928_v34 = vld [vmem:[%s4837_s6 + $0x8] sm:$0xff] }
 0x6a5   :  { %v3805_v35 = vpop.eup %3804 }
 0x6a6   :  { %v3807_v38 = vpop.eup %3806  ;;  %v653_v42 = vmul.f32 %v3805_v35, %v651_v41  ;;  %v933_v41 = vld [vmem:[%s4837_s6 + $0x30] sm:$0xff] }
 0x6a7   :  { %v680_v48 = vmul.f32 %v3807_v38, %v678_v47  ;;  %v938_v47 = vld [vmem:[%s4837_s6 + $0x58] sm:$0xff] }
 0x700   :  { %v656_v36 = vpop.permute.xlu1 %655 }
 0x701   :  { %v658_v37 = vmul.f32 %v3805_v35, %v656_v36 }
 0x703   :  { %660 = vrot.lane.b32.xlu1 %v658_v37, %s3962_s19  ;;  %v929_v37 = vld [vmem:[%s4837_s6 + $0x10] sm:$0xff] }
 0x70a   :  { %v683_v39 = vpop.permute.xlu0 %682 }
 0x70b   :  { %v685_v40 = vmul.f32 %v3807_v38, %v683_v39  ;;  %v934_v39 = vld [vmem:[%s4837_s6 + $0x38] sm:$0xff] }
 0x70d   :  { %687 = vrot.lane.b32.xlu0 %v685_v40, %s3962_s19  ;;  %v931_v40 = vld [vmem:[%s4837_s6 + $0x20] sm:$0xff] }
 0x775   :  { %v661_v44 = vpop.permute.xlu1 %660 }
 0x776   :  { %v663_v46 = vadd.f32 %v661_v44, %v653_v42  ;;  %v4324_v44 = vpack.c.bf16 %v933_v41, %v931_v40 }
 0x778   :  { %3808 = vtanh.f32 %v663_v46  ;;  %v869_v23 = vrot.slane %v663_v46, 4  ;;  %v936_v46 = vld [vmem:[%s4837_s6 + $0x48] sm:$0xff] }
 0x77f   :  { %v688_v49 = vpop.permute.xlu0 %687 }
 0x780   :  { %v690_v50 = vadd.f32 %v688_v49, %v680_v48  ;;  %v4334_v48 = vpack.c.bf16 %v938_v47, %v936_v46  ;;  %v935_v49 = vld [vmem:[%s4837_s6 + $0x40] sm:$0xff] }
 0x781   :  { %v1043_v47 = vld [vmem:[%s4839_s7] sm:$0xff] }
 0x782   :  { %v3809_v51 = vpop.eup %3808  ;;  %3810 = vtanh.f32 %v690_v50  ;;  %v896_v28 = vrot.slane %v690_v50, 4  ;;  %v937_v50 = vld [vmem:[%s4837_s6 + $0x50] sm:$0xff] }
 0x783   :  { %666 = vrot.lane.b32.xlu1 %v3809_v51, %s3961_s2  ;;  %v4342_v51 = vpack.c.bf16 %v937_v50, %v935_v49  ;;  %v1044_v49 = vld [vmem:[%s4839_s7 + $0x8] sm:$0xff]  ;;  %v1045_v50 = vld [vmem:[%s4839_s7 + $0x10] sm:$0xff] }
 0x78c   :  { %v3811_v52 = vpop.eup %3810 }
 0x78d   :  { %693 = vrot.lane.b32.xlu0 %v3811_v52, %s3961_s2 }
 0x7f5   :  { %v667_v53 = vpop.permute.xlu1 %666 }
 0x7f6   :  { %v669_v54 = vmul.f32 %v3805_v35, %v667_v53  ;;  %v930_v35 = vld [vmem:[%s4837_s6 + $0x18] sm:$0xff] }
 0x7f7   :  { %v4298_v36 = vpack.c.bf16 %v930_v35, %v928_v34 }
 0x7f8   :  { %698 = vrot.lane.b32.xlu1 %v669_v54, %s3962_s19  ;;  %v940_v54 = vld [vmem:[%s4837_s6 + $0x68] sm:$0xff] }
 0x7f9   :  { %3588 = vmatprep.subr.bf16.mxu0 %v4298_v36 }
 0x7ff   :  { %v694_v55 = vpop.permute.xlu0 %693 }
 0x800   :  { %v696_v56 = vmul.f32 %v3807_v38, %v694_v55  ;;  %v942_v55 = vld [vmem:[%s4837_s6 + $0x78] sm:$0xff] }
 0x802   :  { %v785_v57 = vrot.slane %v696_v56, 4 }
 0x804   :  { %786 = vrot.lane.b32.xlu0 %v785_v57, %s3962_s19  ;;  %v939_v57 = vld [vmem:[%s4837_s6 + $0x60] sm:$0xff] }
 0x86a   :  { %v4269_v58 = vpop.permute.xlu1 %698 }
 0x86b   :  { %3279 = vmatmul.mubr.msk.f32.vlgmr.msra.gmra.mrb[4].mxu0 %vm268_vm4, %v4269_v58 }
 0x86c   :  { %1026 = vmatprep.mubr.f32.mxu0 %v3960_v3 }
 0x876   :  { %v787_v59 = vpop.permute.xlu0 %786 }
 0x877   :  { %3290 = vmatmul.mubr.msk.f32.vlgmr.msra.gmra.mrb[8].mxu1 %vm268_vm4, %v787_v59  ;;  %v941_v59 = vld [vmem:[%s4837_s6 + $0x70] sm:$0xff] }
 0x878   :  { %3300 = vmatprep.mubr.msk.f32.mxu1 %vm3964_vm2, %v3960_v3 }
 0x93e   :  { %v777_v60 = vpop.f32.mrb[4].mxu0 }
 0x93f   :  { %v782_v61 = vrot.slane %v777_v60, 4  ;;  %v3280_v62 = vpop.f32.mrb[5].mxu0  ;;  %v4361_v60 = vpack.c.bf16 %v941_v59, %v939_v57 }
 0x941   :  { %v784_v0 = vadd.f32 %v782_v61, %v707_v63 }
 0x943   :  { %3812 = vtanh.f32 %v784_v0  ;;  %v3045_v8 = vmul.f32 -1.442695, %v784_v0 }
 0x94a   :  { %v856_v2 = vpop.f32.mrb[8].mxu1 }
 0x94b   :  { %v860_v4 = vadd.f32 %v856_v2, %v708_v1  ;;  %v3291_v5 = vpop.f32.mrb[9].mxu1 }
 0x94d   :  { %v3813_v6 = vpop.eup %3812  ;;  %3814 = vtanh.f32 %v860_v4  ;;  %v3046_v9 = vmul.f32 -1.442695, %v860_v4 }
 0x94e   :  { %873 = vrot.lane.b32.xlu1 %v3813_v6, %s3961_s2  ;;  %3816 = vpow2.f32 %v3045_v8 }
 0x94f   :  { %3818 = vpow2.f32 %v3046_v9 }
 0x957   :  { %v3815_v7 = vpop.eup %3814 }
 0x958   :  { %900 = vrot.lane.b32.xlu0 %v3815_v7, %s3961_s2  ;;  %v3817_v11 = vpop.eup %3816  ;;  %v943_v7 = vld [vmem:[%s4838_s9] sm:$0x3] }
 0x959   :  { %v864_v12 = vadd.f32 1.0, %v3817_v11  ;;  %v3819_v14 = vpop.eup %3818  ;;  %v948_v8 = vrot.slane %v943_v7, %v4147_v43 }
 0x95a   :  { %v891_v16 = vadd.f32 1.0, %v3819_v14 }
 0x95b   :  { %3820 = vrcp.f32 %v864_v12 }
 0x95c   :  { %3822 = vrcp.f32 %v891_v16 }
 0x965   :  { %v3821_v17 = vpop.eup %3820 }
 0x966   :  { %v4280_v20 = vpop.eup %3822  ;;  %v871_v24 = vmul.f32 %v3821_v17, %v869_v23 }
 0x967   :  { %v898_v29 = vmul.f32 %v4280_v20, %v896_v28 }
 0x9c0   :  { %v874_v18 = vpop.permute.xlu1 %873 }
 0x9c1   :  { %v876_v19 = vmul.f32 %v3821_v17, %v874_v18 }
 0x9c3   :  { %878 = vrot.lane.b32.xlu1 %v876_v19, %s3962_s19 }
 0x9ca   :  { %v901_v21 = vpop.permute.xlu0 %900 }
 0x9cb   :  { %v903_v22 = vmul.f32 %v4280_v20, %v901_v21 }
 0x9cd   :  { %905 = vrot.lane.b32.xlu0 %v903_v22, %s3962_s19 }
 0xa35   :  { %v879_v25 = vpop.permute.xlu1 %878 }
 0xa36   :  { %v881_v26 = vadd.f32 %v879_v25, %v871_v24 }
 0xa38   :  { %3824 = vtanh.f32 %v881_v26 }
 0xa3f   :  { %v906_v30 = vpop.permute.xlu0 %905 }
 0xa40   :  { %v908_v31 = vadd.f32 %v906_v30, %v898_v29 }
 0xa42   :  { %v3825_v32 = vpop.eup %3824  ;;  %3826 = vtanh.f32 %v908_v31 }
 0xa43   :  { %884 = vrot.lane.b32.xlu1 %v3825_v32, %s3961_s2 }
 0xa47   :  { %703 = vrot.lane.b32.xlu1 %v696_v56, %s3961_s2  ;;  %v4352_v56 = vpack.c.bf16 %v942_v55, %v940_v54  ;;  %v1046_v54 = vld [vmem:[%s4839_s7 + $0x18] sm:$0xff] }
 0xa48   :  { %v4414_v55 = vpack.c.bf16 %v1046_v54, %v1045_v50 }
 0xa4b   :  { %261 = vrot.lane.b32.xlu1 %v4190_v27, %s3961_s2  ;;  %v927_v27 = vld [vmem:[%s4837_s6] sm:$0xff] }
 0xa4c   :  { %v3827_v33 = vpop.eup %3826  ;;  %v4309_v38 = vpack.c.bf16 %v929_v37, %v927_v27 }
 0xa4d   :  { %911 = vrot.lane.b32.xlu0 %v3827_v33, %s3961_s2 }
 0xa4e   :  { %3590 = vmatpush1.bf16.msra.mxu0 %v4309_v38 }
 0xa51   :  { %476 = vrot.lane.b32.xlu0 %v4237_v10, %s3962_s19  ;;  %v932_v10 = vld [vmem:[%s4837_s6 + $0x28] sm:$0xff] }
 0xa52   :  { %v4321_v42 = vpack.c.bf16 %v934_v39, %v932_v10 }
 0xa54   :  { %3592 = vmatprep.subr.bf16.mxu0 %v4321_v42 }
 0xa55   :  { %3594 = vmatpush1.bf16.msra.mxu0 %v4324_v44 }
 0xa56   :  { %3596 = vmatprep.subr.bf16.mxu0 %v4334_v48 }
 0xa59   :  { %3598 = vmatpush1.bf16.msra.mxu0 %v4342_v51 }
 0xa5a   :  { %3600 = vmatprep.subr.bf16.mxu0 %v4352_v56 }
 0xa5d   :  { %3602 = vmatpush1.bf16.msra.mxu0 %v4361_v60 }
 0xa5e   :  { %3615 = vmatprep.subr.bf16.mxu0 %v3963_v15 }
 0xab5   :  { %v885_v52 = vpop.permute.xlu1 %884 }
 0xab6   :  { %v887_v53 = vmul.f32 %v3821_v17, %v885_v52 }
 0xab8   :  { %916 = vrot.lane.b32.xlu1 %v887_v53, %s3962_s19  ;;  %v4407_v53 = vpack.c.bf16 %v1044_v49, %v1043_v47 }
 0xab9   :  { %v704_v61 = vpop.permute.xlu1 %703 }
 0xaba   :  { %3605 = vmatpush3.bf16.msra.mxu1 %v4407_v53 }
 0xabb   :  { %3606 = vmatprep.subr.bf16.mxu1 %v3963_v15 }
 0xabd   :  { %v262_v62 = vpop.permute.xlu1 %261 }
 0xabe   :  { %265 = vst.msk [vmem:[#allocation3 + $0x8] sm:$0xf0] %vm264_vm5, %v262_v62  ;;  %3608 = vmatpush3.bf16.msra.mxu1 %v4414_v55 }
 0xabf   :  { %v912_v63 = vpop.permute.xlu0 %911  ;;  %3609 = vmatprep.subr.bf16.mxu1 %v3963_v15 }
 0xac0   :  { %v914_v0 = vmul.f32 %v4280_v20, %v912_v63 }
 0xac2   :  { %921 = vrot.lane.b32.xlu0 %v914_v0, %s3961_s2 }
 0xac3   :  { %v477_v1 = vpop.permute.xlu0 %476 }
 0xac4   :  { %480 = vst.msk [vmem:[#allocation3] sm:$0xf0] %vm479_vm6, %v477_v1  ;;  %v1047_v1 = vld [vmem:[%s4840_s8] sm:$0xff] }
 0xac5   :  { %706 = vst.msk [vmem:[#allocation3] sm:$0xf0] %vm264_vm5, %v704_v61 }
 0xac6   :  { %482 = vrot.lane.b32.xlu0 %v4241_v13, %s3961_s2 }
 0xb2a   :  { %v917_v2 = vpop.permute.xlu1 %916 }
 0xb2b   :  { %919 = vst.msk [vmem:[#allocation3 + $0x8] sm:$0xf0] %vm479_vm6, %v917_v2  ;;  %v1048_v2 = vld [vmem:[%s4840_s8 + $0x8] sm:$0xff] }
 0xb34   :  { %v922_v4 = vpop.permute.xlu0 %921 }
 0xb35   :  { %924 = vst.msk [vmem:[#allocation3] sm:$0xf] %vm485_vm7, %v922_v4  ;;  %v4435_v4 = vpack.c.bf16 %v1048_v2, %v1047_v1 }
 0xb38   :  { %v483_v5 = vpop.permute.xlu0 %482 }
 0xb39   :  { %486 = vst.msk [vmem:[#allocation3 + $0x8] sm:$0xf] %vm485_vm7, %v483_v5  ;;  %v1049_v5 = vld [vmem:[%s4840_s8 + $0x10] sm:$0xff] }
 0xb3a   :  { %701 = vst.msk [vmem:[#allocation3 + $0x8] sm:$0xf] %vm258_vm3, %v4269_v58  ;;  %v952_v58 = vrot.slane %v943_v7, %v4152_v45 }
 0xb3c   :  { %v925_v6 = vld [vmem:[#allocation3] sm:$0xff] }
 0xb3d   :  { %3047 = vmatmul.mubr.msk.f32.vlgmr.msra.gmra.mrb[6].mxu0 %vm955_vm8, %v925_v6  ;;  %v1050_v6 = vld [vmem:[%s4840_s8 + $0x18] sm:$0xff] }
 0xb3e   :  { %1032 = vmatprep.mubr.f32.mxu0 %v3960_v3  ;;  %3617 = vmatpush3.bf16.msra.mxu0 %v4407_v53  ;;  %v4446_v7 = vpack.c.bf16 %v1050_v6, %v1049_v5 }
 0xb3f   :  { %3618 = vmatprep.subr.bf16.mxu0 %v3963_v15 }
 0xb41   :  { %v926_v13 = vld [vmem:[#allocation3 + $0x8] sm:$0xff] }
 0xb42   :  { %3048 = vmatmul.mubr.msk.f32.gmra.mrb[8].mxu0 %vm955_vm8, %v926_v13 }
 0xb43   :  { %3322 = vmatprep.mubr.msk.f32.mxu0 %vm3964_vm2, %v3960_v3  ;;  %3620 = vmatpush3.bf16.msra.mxu0 %v4414_v55 }
 0xb44   :  { %3627 = vmatprep.subr.bf16.mxu0 %v3963_v15 }
 0xc10   :  { %v1028_v9 = vpop.f32.mrb[6].mxu0 }
 0xc11   :  { %v1029_v11 = vadd.f32 %v1028_v9, %v948_v8  ;;  %v1030_v12 = vpop.f32.mrb[7].mxu0 }
 0xc12   :  { %v1031_v14 = vadd.f32 %v1030_v12, %v952_v58 }
 0xc13   :  { %1039 = vst [vmem:[#allocation2] sm:$0xff] %v1029_v11 }
 0xc14   :  { %1040 = vst [vmem:[#allocation2 + $0x8] sm:$0xff] %v1031_v14 }
 0xc15   :  { %v1034_v16 = vpop.f32.mrb[8].mxu0 }
 0xc16   :  { %v1035_v17 = vadd.f32 %v1034_v16, %v948_v8  ;;  %v1036_v18 = vpop.f32.mrb[9].mxu0 }
 0xc17   :  { %v1037_v19 = vadd.f32 %v1036_v18, %v952_v58 }
 0xc18   :  { %1041 = vst [vmem:[#allocation2 + $0x10] sm:$0xff] %v1035_v17 }
 0xc19   :  { %1042 = vst [vmem:[#allocation2 + $0x18] sm:$0xff] %v1037_v19 }
 0xc1a   :  { %v1051_v20 = vld [vmem:[#allocation2] sm:$0xf]  ;;  %v1111_v12 = vld [vmem:[#allocation2] sm:$0xf0] }
 0xc1b   :  { %3828 = vtanh.f32 %v1051_v20  ;;  %v3049_v24 = vmul.f32 -1.442695, %v1051_v20 }
 0xc20   :  { %v1052_v21 = vld [vmem:[#allocation2 + $0x18] sm:$0xf0]  ;;  %v1112_v16 = vld [vmem:[#allocation2 + $0x18] sm:$0xf] }
 0xc21   :  { %3830 = vtanh.f32 %v1052_v21  ;;  %v3050_v25 = vmul.f32 -1.442695, %v1052_v21 }
 0xc22   :  { %3832 = vpow2.f32 %v3049_v24 }
 0xc23   :  { %3834 = vpow2.f32 %v3050_v25 }
 0xc25   :  { %v3829_v22 = vpop.eup %3828 }
 0xc26   :  { %1062 = vrot.lane.b32.xlu0 %v3829_v22, %s3961_s2 }
 0xc2b   :  { %v3831_v23 = vpop.eup %3830 }
 0xc2c   :  { %1086 = vrot.lane.b32.xlu1 %v3831_v23, %s3961_s2  ;;  %v3833_v26 = vpop.eup %3832 }
 0xc2d   :  { %v1056_v28 = vadd.f32 1.0, %v3833_v26  ;;  %v3835_v29 = vpop.eup %3834 }
 0xc2e   :  { %v1080_v30 = vadd.f32 1.0, %v3835_v29 }
 0xc2f   :  { %3836 = vrcp.f32 %v1056_v28 }
 0xc30   :  { %3838 = vrcp.f32 %v1080_v30 }
 0xc39   :  { %v3837_v31 = vpop.eup %3836 }
 0xc3a   :  { %v3839_v34 = vpop.eup %3838  ;;  %v1060_v37 = vmul.f32 0.0, %v3837_v31 }
 0xc3b   :  { %v1084_v40 = vmul.f32 0.0, %v3839_v34 }
 0xc98   :  { %v1063_v32 = vpop.permute.xlu0 %1062 }
 0xc99   :  { %v1065_v33 = vmul.f32 %v3837_v31, %v1063_v32 }
 0xc9b   :  { %1067 = vrot.lane.b32.xlu0 %v1065_v33, %s3962_s19 }
 0xc9e   :  { %v1087_v35 = vpop.permute.xlu1 %1086 }
 0xc9f   :  { %v1089_v27 = vmul.f32 %v3839_v34, %v1087_v35 }
 0xca1   :  { %1091 = vrot.lane.b32.xlu1 %v1089_v27, %s3962_s19 }
 0xd0d   :  { %v1068_v10 = vpop.permute.xlu0 %1067 }
 0xd0e   :  { %v4392_v39 = vadd.f32 %v1068_v10, %v1060_v37 }
 0xd10   :  { %3840 = vtanh.f32 %v4392_v39  ;;  %v1273_v35 = vrot.slane %v4392_v39, 4 }
 0xd13   :  { %v1092_v41 = vpop.permute.xlu1 %1091 }
 0xd14   :  { %v4395_v46 = vadd.f32 %v1092_v41, %v1084_v40 }
 0xd16   :  { %3842 = vtanh.f32 %v4395_v46  ;;  %v1300_v40 = vrot.slane %v4395_v46, 4 }
 0xd1a   :  { %v3841_v52 = vpop.eup %3840 }
 0xd1b   :  { %1073 = vrot.lane.b32.xlu0 %v3841_v52, %s3961_s2 }
 0xd20   :  { %v3843_v57 = vpop.eup %3842 }
 0xd21   :  { %1097 = vrot.lane.b32.xlu1 %v3843_v57, %s3961_s2 }
 0xd8d   :  { %v1074_v59 = vpop.permute.xlu0 %1073 }
 0xd8e   :  { %v1076_v61 = vmul.f32 %v3837_v31, %v1074_v59 }
 0xd90   :  { %1102 = vrot.lane.b32.xlu0 %v1076_v61, %s3962_s19 }
 0xd93   :  { %v1098_v62 = vpop.permute.xlu1 %1097 }
 0xd94   :  { %v4425_v63 = vmul.f32 %v3839_v34, %v1098_v62 }
 0xd96   :  { %v1189_v0 = vrot.slane %v4425_v63, 4 }
 0xd98   :  { %1190 = vrot.lane.b32.xlu1 %v1189_v0, %s3962_s19  ;;  %v1329_v0 = vld [vmem:[#allocation2 + $0x10] sm:$0xf] }
 0xe02   :  { %v1103_v13 = vpop.permute.xlu0 %1102 }
 0xe03   :  { %1105 = vst.msk [vmem:[#allocation3] sm:$0xf] %vm258_vm3, %v1103_v13  ;;  %3301 = vmatmul.mubr.msk.f32.vlgmr.msra.gmra.mrb[10].mxu1 %vm268_vm4, %v1103_v13 }
 0xe04   :  { %3611 = vmatpush3.bf16.msra.mxu1 %v4435_v4  ;;  %3311 = vmatprep.mubr.msk.f32.mxu1 %vm3964_vm2, %v3960_v3 }
 0xe05   :  { %3612 = vmatprep.subr.bf16.mxu1 %v3963_v15 }
 0xe08   :  { %3614 = vmatpush3.bf16.msra.mxu1 %v4446_v7 }
 0xe09   :  { %3621 = vmatprep.subr.bf16.mxu1 %v3963_v15 }
 0xe0a   :  { %v1191_v8 = vpop.permute.xlu1 %1190 }
 0xe0b   :  { %3312 = vmatmul.mubr.msk.f32.vlgmr.msra.gmra.mrb[12].mxu1 %vm268_vm4, %v1191_v8 }
 0xe0c   :  { %3623 = vmatpush3.bf16.msra.mxu1 %v4435_v4  ;;  %3333 = vmatprep.mubr.msk.f32.mxu1 %vm3964_vm2, %v3960_v3 }
 0xe0d   :  { %3624 = vmatprep.subr.bf16.mxu1 %v3963_v15 }
 0xe10   :  { %3626 = vmatpush3.bf16.msra.mxu1 %v4446_v7 }
 0xe11   :  { %3633 = vmatprep.subr.bf16.mxu1 %v3963_v15 }
 0xed6   :  { %v1181_v58 = vpop.f32.mrb[10].mxu1 }
 0xed7   :  { %v1186_v9 = vrot.slane %v1181_v58, 4  ;;  %v3302_v11 = vpop.f32.mrb[11].mxu1  ;;  %v1330_v58 = vld [vmem:[#allocation2 + $0x8] sm:$0xf0] }
 0xed9   :  { %v1188_v14 = vadd.f32 %v1186_v9, %v1111_v12 }
 0xedb   :  { %3844 = vtanh.f32 %v1188_v14  ;;  %v3053_v22 = vmul.f32 -1.442695, %v1188_v14 }
 0xede   :  { %v1260_v17 = vpop.f32.mrb[12].mxu1 }
 0xedf   :  { %v1264_v18 = vadd.f32 %v1260_v17, %v1112_v16  ;;  %v3313_v19 = vpop.f32.mrb[13].mxu1 }
 0xee1   :  { %3846 = vtanh.f32 %v1264_v18  ;;  %v3054_v23 = vmul.f32 -1.442695, %v1264_v18 }
 0xee2   :  { %3848 = vpow2.f32 %v3053_v22 }
 0xee3   :  { %3850 = vpow2.f32 %v3054_v23 }
 0xee5   :  { %v3845_v20 = vpop.eup %3844 }
 0xee6   :  { %1277 = vrot.lane.b32.xlu1 %v3845_v20, %s3961_s2 }
 0xeeb   :  { %v3847_v21 = vpop.eup %3846 }
 0xeec   :  { %1304 = vrot.lane.b32.xlu0 %v3847_v21, %s3961_s2  ;;  %v3849_v24 = vpop.eup %3848 }
 0xeed   :  { %v1268_v25 = vadd.f32 1.0, %v3849_v24  ;;  %v3851_v26 = vpop.eup %3850 }
 0xeee   :  { %v1295_v28 = vadd.f32 1.0, %v3851_v26 }
 0xeef   :  { %3852 = vrcp.f32 %v1268_v25 }
 0xef0   :  { %3854 = vrcp.f32 %v1295_v28 }
 0xef9   :  { %v3853_v29 = vpop.eup %3852 }
 0xefa   :  { %v3855_v32 = vpop.eup %3854  ;;  %v1275_v27 = vmul.f32 %v3853_v29, %v1273_v35 }
 0xefb   :  { %v1302_v41 = vmul.f32 %v3855_v32, %v1300_v40 }
 0xf58   :  { %v1278_v30 = vpop.permute.xlu1 %1277 }
 0xf59   :  { %v1280_v31 = vmul.f32 %v3853_v29, %v1278_v30 }
 0xf5b   :  { %1282 = vrot.lane.b32.xlu1 %v1280_v31, %s3962_s19 }
 0xf5e   :  { %v1305_v33 = vpop.permute.xlu0 %1304 }
 0xf5f   :  { %v1307_v34 = vmul.f32 %v3855_v32, %v1305_v33 }
 0xf61   :  { %1309 = vrot.lane.b32.xlu0 %v1307_v34, %s3962_s19 }
 0xfcd   :  { %v1283_v37 = vpop.permute.xlu1 %1282 }
 0xfce   :  { %v4465_v10 = vadd.f32 %v1283_v37, %v1275_v27 }
 0xfd0   :  { %3856 = vtanh.f32 %v4465_v10  ;;  %v1493_v26 = vrot.slane %v4465_v10, 4 }
 0xfd3   :  { %v1310_v47 = vpop.permute.xlu0 %1309 }
 0xfd4   :  { %v4469_v49 = vadd.f32 %v1310_v47, %v1302_v41 }
 0xfd6   :  { %3858 = vtanh.f32 %v4469_v49  ;;  %v1520_v31 = vrot.slane %v4469_v49, 4 }
 0xfda   :  { %v3857_v50 = vpop.eup %3856 }
 0xfdb   :  { %1288 = vrot.lane.b32.xlu1 %v3857_v50, %s3961_s2 }
 0xfe0   :  { %v3859_v52 = vpop.eup %3858 }
 0xfe1   :  { %1315 = vrot.lane.b32.xlu0 %v3859_v52, %s3961_s2 }
0x104d   :  { %v1289_v39 = vpop.permute.xlu1 %1288 }
0x104e   :  { %v4474_v54 = vmul.f32 %v3853_v29, %v1289_v39 }
0x1050   :  { %v1331_v57 = vrot.slane %v4474_v54, 4 }
0x1052   :  { %1332 = vrot.lane.b32.xlu1 %v1331_v57, %s3962_s19 }
0x1053   :  { %v1316_v46 = vpop.permute.xlu0 %1315 }
0x1054   :  { %v4478_v59 = vmul.f32 %v3855_v32, %v1316_v46 }
0x1056   :  { %1407 = vrot.lane.b32.xlu0 %v4478_v59, %s3962_s19 }
0x10c4   :  { %v1333_v61 = vpop.permute.xlu1 %1332 }
0x10c5   :  { %3323 = vmatmul.mubr.msk.f32.vlgmr.msra.gmra.mrb[10].mxu0 %vm268_vm4, %v1333_v61 }
0x10c6   :  { %3629 = vmatpush3.bf16.msra.mxu0 %v4407_v53  ;;  %3344 = vmatprep.mubr.msk.f32.mxu0 %vm3964_vm2, %v3960_v3 }
0x10c7   :  { %3630 = vmatprep.subr.bf16.mxu0 %v3963_v15 }
0x10c8   :  { %v1408_v62 = vpop.permute.xlu0 %1407 }
0x10c9   :  { %3334 = vmatmul.mubr.msk.f32.vlgmr.msra.gmra.mrb[14].mxu1 %vm268_vm4, %v1408_v62 }
0x10ca   :  { %3632 = vmatpush3.bf16.msra.mxu0 %v4414_v55  ;;  %3635 = vmatpush3.bf16.msra.mxu1 %v4435_v4 }
0x10cb   :  { %3636 = vmatprep.subr.bf16.mxu1 %v3963_v15  ;;  %3355 = vmatprep.mubr.msk.f32.mxu1 %vm3964_vm2, %v3960_v3 }
0x10cc   :  { %3640 = vmatprep.subr.bf16.mxu0 %v4298_v36 }
0x10ce   :  { %3638 = vmatpush3.bf16.msra.mxu1 %v4446_v7 }
0x10cf   :  { %3655 = vmatprep.subr.bf16.mxu1 %v3963_v15 }
0x1198   :  { %v1402_v1 = vpop.f32.mrb[10].mxu0 }
0x1199   :  { %v1406_v2 = vadd.f32 %v1402_v1, %v1329_v0  ;;  %v3324_v5 = vpop.f32.mrb[11].mxu0 }
0x119b   :  { %3860 = vtanh.f32 %v1406_v2  ;;  %v3057_v36 = vmul.f32 -1.442695, %v1406_v2 }
0x119c   :  { %v1477_v6 = vpop.f32.mrb[14].mxu1 }
0x119d   :  { %v1482_v13 = vrot.slane %v1477_v6, 4  ;;  %v3335_v8 = vpop.f32.mrb[15].mxu1 }
0x119f   :  { %v1484_v9 = vadd.f32 %v1482_v13, %v1330_v58 }
0x11a1   :  { %3862 = vtanh.f32 %v1484_v9  ;;  %v3058_v14 = vmul.f32 -1.442695, %v1484_v9 }
0x11a2   :  { %3864 = vpow2.f32 %v3057_v36 }
0x11a3   :  { %3866 = vpow2.f32 %v3058_v14 }
0x11a5   :  { %v3861_v11 = vpop.eup %3860 }
0x11a6   :  { %1497 = vrot.lane.b32.xlu1 %v3861_v11, %s3961_s2 }
0x11ab   :  { %v3863_v12 = vpop.eup %3862 }
0x11ac   :  { %1524 = vrot.lane.b32.xlu0 %v3863_v12, %s3961_s2  ;;  %v3865_v16 = vpop.eup %3864 }
0x11ad   :  { %v1488_v17 = vadd.f32 1.0, %v3865_v16  ;;  %v3867_v18 = vpop.eup %3866 }
0x11ae   :  { %v1515_v19 = vadd.f32 1.0, %v3867_v18 }
0x11af   :  { %3868 = vrcp.f32 %v1488_v17 }
0x11b0   :  { %3870 = vrcp.f32 %v1515_v19 }
0x11b9   :  { %v3869_v20 = vpop.eup %3868 }
0x11ba   :  { %v3871_v23 = vpop.eup %3870  ;;  %v1495_v28 = vmul.f32 %v3869_v20, %v1493_v26 }
0x11bb   :  { %v1522_v32 = vmul.f32 %v3871_v23, %v1520_v31 }
0x1218   :  { %v1498_v21 = vpop.permute.xlu1 %1497 }
0x1219   :  { %v1500_v22 = vmul.f32 %v3869_v20, %v1498_v21 }
0x121b   :  { %1502 = vrot.lane.b32.xlu1 %v1500_v22, %s3962_s19 }
0x121e   :  { %v1525_v24 = vpop.permute.xlu0 %1524 }
0x121f   :  { %v1527_v25 = vmul.f32 %v3871_v23, %v1525_v24 }
0x1221   :  { %1529 = vrot.lane.b32.xlu0 %v1527_v25, %s3962_s19 }
0x128d   :  { %v1503_v29 = vpop.permute.xlu1 %1502 }
0x128e   :  { %v4501_v30 = vadd.f32 %v1503_v29, %v1495_v28 }
0x1290   :  { %3872 = vtanh.f32 %v4501_v30  ;;  %v1711_v12 = vrot.slane %v4501_v30, 4 }
0x1293   :  { %v1530_v33 = vpop.permute.xlu0 %1529 }
0x1294   :  { %v4505_v34 = vadd.f32 %v1530_v33, %v1522_v32  ;;  %v1785_v33 = vld [vmem:[%s4838_s9] sm:$0x3] }
0x1296   :  { %3874 = vtanh.f32 %v4505_v34  ;;  %v1738_v17 = vrot.slane %v4505_v34, 4  ;;  %v1790_v34 = vrot.slane %v1785_v33, %v4147_v43 }
0x129a   :  { %v3873_v35 = vpop.eup %3872 }
0x129b   :  { %1508 = vrot.lane.b32.xlu1 %v3873_v35, %s3961_s2  ;;  %v1794_v35 = vrot.slane %v1785_v33, %v4152_v45 }
0x12a0   :  { %v3875_v27 = vpop.eup %3874 }
0x12a1   :  { %1535 = vrot.lane.b32.xlu0 %v3875_v27, %s3961_s2 }
0x130d   :  { %v1509_v37 = vpop.permute.xlu1 %1508 }
0x130e   :  { %v1511_v10 = vmul.f32 %v3869_v20, %v1509_v37 }
0x1310   :  { %1540 = vrot.lane.b32.xlu1 %v1511_v10, %s3962_s19 }
0x1313   :  { %v1536_v40 = vpop.permute.xlu0 %1535 }
0x1314   :  { %v4511_v41 = vmul.f32 %v3871_v23, %v1536_v40 }
0x1316   :  { %v1627_v47 = vrot.slane %v4511_v41, 4 }
0x1318   :  { %1628 = vrot.lane.b32.xlu0 %v1627_v47, %s3962_s19 }
0x1382   :  { %v4515_v49 = vpop.permute.xlu1 %1540 }
0x1383   :  { %3345 = vmatmul.mubr.msk.f32.vlgmr.msra.gmra.mrb[12].mxu0 %vm268_vm4, %v4515_v49 }
0x1384   :  { %3642 = vmatpush1.bf16.msra.mxu0 %v4309_v38  ;;  %1867 = vmatprep.mubr.f32.mxu0 %v3960_v3 }
0x1385   :  { %3644 = vmatprep.subr.bf16.mxu0 %v4321_v42 }
0x1388   :  { %3646 = vmatpush1.bf16.msra.mxu0 %v4324_v44 }
0x1389   :  { %3648 = vmatprep.subr.bf16.mxu0 %v4334_v48  ;;  %v1549_v48 = vld [vmem:[#allocation2 + $0x10] sm:$0xf0] }
0x138a   :  { %v1629_v50 = vpop.permute.xlu0 %1628 }
0x138b   :  { %3356 = vmatmul.mubr.msk.f32.vlgmr.msra.gmra.mrb[16].mxu1 %vm268_vm4, %v1629_v50 }
0x138c   :  { %3650 = vmatpush1.bf16.msra.mxu0 %v4342_v51  ;;  %3657 = vmatpush3.bf16.msra.mxu1 %v4407_v53 }
0x138d   :  { %3652 = vmatprep.subr.bf16.mxu0 %v4352_v56  ;;  %3658 = vmatprep.subr.bf16.mxu1 %v3963_v15  ;;  %v1550_v56 = vld [vmem:[#allocation2 + $0x8] sm:$0xf] }
0x138e   :  { %3366 = vmatprep.mubr.msk.f32.mxu1 %vm3964_vm2, %v3960_v3 }
0x1390   :  { %3654 = vmatpush1.bf16.msra.mxu0 %v4361_v60  ;;  %3660 = vmatpush3.bf16.msra.mxu1 %v4414_v55 }
0x1391   :  { %3661 = vmatprep.subr.bf16.mxu1 %v3963_v15  ;;  %3667 = vmatprep.subr.bf16.mxu0 %v3963_v15 }
0x1456   :  { %v1619_v38 = vpop.f32.mrb[12].mxu0 }
0x1457   :  { %v1624_v42 = vrot.slane %v1619_v38, 4  ;;  %v3346_v44 = vpop.f32.mrb[13].mxu0 }
0x1459   :  { %v1626_v51 = vadd.f32 %v1624_v42, %v1549_v48 }
0x145b   :  { %3876 = vtanh.f32 %v1626_v51  ;;  %v3061_v61 = vmul.f32 -1.442695, %v1626_v51 }
0x145e   :  { %v1698_v52 = vpop.f32.mrb[16].mxu1 }
0x145f   :  { %v1702_v39 = vadd.f32 %v1698_v52, %v1550_v56  ;;  %v3357_v57 = vpop.f32.mrb[17].mxu1 }
0x1461   :  { %3878 = vtanh.f32 %v1702_v39  ;;  %v3062_v62 = vmul.f32 -1.442695, %v1702_v39 }
0x1462   :  { %3880 = vpow2.f32 %v3061_v61 }
0x1463   :  { %3882 = vpow2.f32 %v3062_v62 }
0x1465   :  { %v3877_v46 = vpop.eup %3876 }
0x1466   :  { %1715 = vrot.lane.b32.xlu1 %v3877_v46, %s3961_s2 }
0x146b   :  { %v3879_v60 = vpop.eup %3878 }
0x146c   :  { %1742 = vrot.lane.b32.xlu0 %v3879_v60, %s3961_s2  ;;  %v3881_v0 = vpop.eup %3880 }
0x146d   :  { %v1706_v1 = vadd.f32 1.0, %v3881_v0  ;;  %v3883_v2 = vpop.eup %3882 }
0x146e   :  { %v1733_v5 = vadd.f32 1.0, %v3883_v2 }
0x146f   :  { %3884 = vrcp.f32 %v1706_v1 }
0x1470   :  { %3886 = vrcp.f32 %v1733_v5 }
0x1479   :  { %v3885_v6 = vpop.eup %3884 }
0x147a   :  { %v3887_v58 = vpop.eup %3886  ;;  %v1713_v36 = vmul.f32 %v3885_v6, %v1711_v12 }
0x147b   :  { %v1740_v18 = vmul.f32 %v3887_v58, %v1738_v17 }
0x14d8   :  { %v1716_v13 = vpop.permute.xlu1 %1715 }
0x14d9   :  { %v1718_v8 = vmul.f32 %v3885_v6, %v1716_v13 }
0x14db   :  { %1720 = vrot.lane.b32.xlu1 %v1718_v8, %s3962_s19 }
0x14de   :  { %v1743_v9 = vpop.permute.xlu0 %1742 }
0x14df   :  { %v1745_v11 = vmul.f32 %v3887_v58, %v1743_v9 }
0x14e1   :  { %1747 = vrot.lane.b32.xlu0 %v1745_v11, %s3962_s19 }
0x154d   :  { %v1721_v14 = vpop.permute.xlu1 %1720 }
0x154e   :  { %v1723_v16 = vadd.f32 %v1721_v14, %v1713_v36 }
0x1550   :  { %3888 = vtanh.f32 %v1723_v16 }
0x1553   :  { %v1748_v19 = vpop.permute.xlu0 %1747 }
0x1554   :  { %v1750_v20 = vadd.f32 %v1748_v19, %v1740_v18 }
0x1556   :  { %3890 = vtanh.f32 %v1750_v20 }
0x155a   :  { %v3889_v21 = vpop.eup %3888 }
0x155b   :  { %1726 = vrot.lane.b32.xlu1 %v3889_v21, %s3961_s2 }
0x155f   :  { %1545 = vrot.lane.b32.xlu1 %v4511_v41, %s3961_s2 }
0x1560   :  { %v3891_v22 = vpop.eup %3890 }
0x1561   :  { %1753 = vrot.lane.b32.xlu0 %v3891_v22, %s3961_s2 }
0x1563   :  { %1107 = vrot.lane.b32.xlu1 %v4425_v63, %s3961_s2 }
0x1565   :  { %1320 = vrot.lane.b32.xlu0 %v4474_v54, %s3962_s19 }
0x15cd   :  { %v1727_v23 = vpop.permute.xlu1 %1726 }
0x15ce   :  { %v1729_v24 = vmul.f32 %v3885_v6, %v1727_v23 }
0x15d0   :  { %1758 = vrot.lane.b32.xlu1 %v1729_v24, %s3962_s19 }
0x15d1   :  { %v1546_v25 = vpop.permute.xlu1 %1545 }
0x15d3   :  { %v1754_v26 = vpop.permute.xlu0 %1753 }
0x15d4   :  { %v1756_v28 = vmul.f32 %v3887_v58, %v1754_v26 }
0x15d5   :  { %v1108_v29 = vpop.permute.xlu1 %1107 }
0x15d6   :  { %1110 = vst.msk [vmem:[#allocation3 + $0x8] sm:$0xf0] %vm264_vm5, %v1108_v29  ;;  %1763 = vrot.lane.b32.xlu0 %v1756_v28, %s3961_s2 }
0x15d7   :  { %v1321_v30 = vpop.permute.xlu0 %1320 }
0x15d8   :  { %1323 = vst.msk [vmem:[#allocation3] sm:$0xf0] %vm479_vm6, %v1321_v30 }
0x15d9   :  { %1548 = vst.msk [vmem:[#allocation3] sm:$0xf0] %vm264_vm5, %v1546_v25 }
0x15da   :  { %1325 = vrot.lane.b32.xlu0 %v4478_v59, %s3961_s2 }
0x1642   :  { %v1759_v63 = vpop.permute.xlu1 %1758 }
0x1643   :  { %1761 = vst.msk [vmem:[#allocation3 + $0x8] sm:$0xf0] %vm479_vm6, %v1759_v63 }
0x1648   :  { %v1764_v54 = vpop.permute.xlu0 %1763 }
0x1649   :  { %1766 = vst.msk [vmem:[#allocation3] sm:$0xf] %vm485_vm7, %v1764_v54 }
0x164c   :  { %v1326_v31 = vpop.permute.xlu0 %1325 }
0x164d   :  { %1328 = vst.msk [vmem:[#allocation3 + $0x8] sm:$0xf] %vm485_vm7, %v1326_v31 }
0x164e   :  { %1543 = vst.msk [vmem:[#allocation3 + $0x8] sm:$0xf] %vm258_vm3, %v4515_v49 }
0x1650   :  { %v1767_v32 = vld [vmem:[#allocation3] sm:$0xff] }
0x1651   :  { %3063 = vmatmul.mubr.msk.f32.vlgmr.msra.gmra.mrb[14].mxu0 %vm955_vm8, %v1767_v32 }
0x1652   :  { %1873 = vmatprep.mubr.f32.mxu0 %v3960_v3  ;;  %3669 = vmatpush3.bf16.msra.mxu0 %v4407_v53 }
0x1653   :  { %3670 = vmatprep.subr.bf16.mxu0 %v3963_v15 }
0x1655   :  { %v1768_v59 = vld [vmem:[#allocation3 + $0x8] sm:$0xff] }
0x1656   :  { %3064 = vmatmul.mubr.msk.f32.gmra.mrb[16].mxu0 %vm955_vm8, %v1768_v59 }
0x1657   :  { %3672 = vmatpush3.bf16.msra.mxu0 %v4414_v55  ;;  %3388 = vmatprep.mubr.msk.f32.mxu0 %vm3964_vm2, %v3960_v3 }
0x1658   :  { %3679 = vmatprep.subr.bf16.mxu0 %v3963_v15 }
0x1724   :  { %v1869_v27 = vpop.f32.mrb[14].mxu0 }
0x1725   :  { %v1870_v37 = vadd.f32 %v1869_v27, %v1790_v34  ;;  %v1871_v10 = vpop.f32.mrb[15].mxu0 }
0x1726   :  { %v1872_v40 = vadd.f32 %v1871_v10, %v1794_v35 }
0x1727   :  { %1880 = vst [vmem:[#allocation2] sm:$0xff] %v1870_v37 }
0x1728   :  { %1881 = vst [vmem:[#allocation2 + $0x8] sm:$0xff] %v1872_v40 }
0x1729   :  { %v1875_v41 = vpop.f32.mrb[16].mxu0 }
0x172a   :  { %v1876_v47 = vadd.f32 %v1875_v41, %v1790_v34  ;;  %v1877_v49 = vpop.f32.mrb[17].mxu0 }
0x172b   :  { %v1878_v50 = vadd.f32 %v1877_v49, %v1794_v35 }
0x172c   :  { %1882 = vst [vmem:[#allocation2 + $0x10] sm:$0xff] %v1876_v47 }
0x172d   :  { %1883 = vst [vmem:[#allocation2 + $0x18] sm:$0xff] %v1878_v50 }
0x172e   :  { %v1892_v38 = vld [vmem:[#allocation2] sm:$0xf]  ;;  %v1942_v22 = vld [vmem:[#allocation2] sm:$0xf0] }
0x172f   :  { %3892 = vtanh.f32 %v1892_v38  ;;  %v3065_v45 = vmul.f32 -1.442695, %v1892_v38 }
0x1734   :  { %v1893_v42 = vld [vmem:[#allocation2 + $0x18] sm:$0xf0]  ;;  %v1943_v24 = vld [vmem:[#allocation2 + $0x18] sm:$0xf] }
0x1735   :  { %3894 = vtanh.f32 %v1893_v42  ;;  %v3066_v48 = vmul.f32 -1.442695, %v1893_v42 }
0x1736   :  { %3896 = vpow2.f32 %v3065_v45 }
0x1737   :  { %3898 = vpow2.f32 %v3066_v48 }
0x1739   :  { %v3893_v44 = vpop.eup %3892 }
0x173a   :  { %1903 = vrot.lane.b32.xlu0 %v3893_v44, %s3961_s2 }
0x173f   :  { %v3895_v43 = vpop.eup %3894 }
0x1740   :  { %1927 = vrot.lane.b32.xlu1 %v3895_v43, %s3961_s2  ;;  %v3897_v51 = vpop.eup %3896 }
0x1741   :  { %v1897_v56 = vadd.f32 1.0, %v3897_v51  ;;  %v3899_v52 = vpop.eup %3898 }
0x1742   :  { %v1921_v39 = vadd.f32 1.0, %v3899_v52 }
0x1743   :  { %3900 = vrcp.f32 %v1897_v56 }
0x1744   :  { %3902 = vrcp.f32 %v1921_v39 }
0x174d   :  { %v3901_v57 = vpop.eup %3900 }
0x174e   :  { %v3903_v61 = vpop.eup %3902  ;;  %v1901_v1 = vmul.f32 0.0, %v3901_v57 }
0x174f   :  { %v1925_v6 = vmul.f32 0.0, %v3903_v61 }
0x17ac   :  { %v1904_v46 = vpop.permute.xlu0 %1903 }
0x17ad   :  { %v1906_v60 = vmul.f32 %v3901_v57, %v1904_v46 }
0x17af   :  { %1908 = vrot.lane.b32.xlu0 %v1906_v60, %s3962_s19 }
0x17b2   :  { %v1928_v62 = vpop.permute.xlu1 %1927 }
0x17b3   :  { %v1930_v0 = vmul.f32 %v3903_v61, %v1928_v62 }
0x17b5   :  { %1932 = vrot.lane.b32.xlu1 %v1930_v0, %s3962_s19 }
0x1821   :  { %v1909_v2 = vpop.permute.xlu0 %1908 }
0x1822   :  { %v4579_v5 = vadd.f32 %v1909_v2, %v1901_v1 }
0x1824   :  { %3904 = vtanh.f32 %v4579_v5  ;;  %v2108_v41 = vrot.slane %v4579_v5, 4 }
0x1827   :  { %v1933_v13 = vpop.permute.xlu1 %1932 }
0x1828   :  { %v4582_v8 = vadd.f32 %v1933_v13, %v1925_v6 }
0x182a   :  { %3906 = vtanh.f32 %v4582_v8  ;;  %v2135_v38 = vrot.slane %v4582_v8, 4 }
0x182e   :  { %v3905_v58 = vpop.eup %3904 }
0x182f   :  { %1914 = vrot.lane.b32.xlu0 %v3905_v58, %s3961_s2 }
0x1834   :  { %v3907_v9 = vpop.eup %3906 }
0x1835   :  { %1938 = vrot.lane.b32.xlu1 %v3907_v9, %s3961_s2 }
0x18a1   :  { %v1915_v11 = vpop.permute.xlu0 %1914 }
0x18a2   :  { %v1917_v12 = vmul.f32 %v3901_v57, %v1915_v11 }
0x18a4   :  { %1945 = vrot.lane.b32.xlu0 %v1917_v12, %s3962_s19 }
0x18a7   :  { %v1939_v36 = vpop.permute.xlu1 %1938 }
0x18a8   :  { %v1941_v14 = vmul.f32 %v3903_v61, %v1939_v36 }
0x18aa   :  { %v2024_v16 = vrot.slane %v1941_v14, 4 }
0x18ac   :  { %2025 = vrot.lane.b32.xlu1 %v2024_v16, %s3962_s19 }
0x1916   :  { %v1946_v17 = vpop.permute.xlu0 %1945 }
0x1917   :  { %3367 = vmatmul.mubr.msk.f32.vlgmr.msra.gmra.mrb[18].mxu1 %vm268_vm4, %v1946_v17 }
0x1918   :  { %3663 = vmatpush3.bf16.msra.mxu1 %v4435_v4  ;;  %3377 = vmatprep.mubr.msk.f32.mxu1 %vm3964_vm2, %v3960_v3 }
0x1919   :  { %3664 = vmatprep.subr.bf16.mxu1 %v3963_v15 }
0x191c   :  { %3666 = vmatpush3.bf16.msra.mxu1 %v4446_v7 }
0x191d   :  { %3673 = vmatprep.subr.bf16.mxu1 %v3963_v15 }
0x191e   :  { %v2026_v18 = vpop.permute.xlu1 %2025 }
0x191f   :  { %3378 = vmatmul.mubr.msk.f32.vlgmr.msra.gmra.mrb[20].mxu1 %vm268_vm4, %v2026_v18 }
0x1920   :  { %3675 = vmatpush3.bf16.msra.mxu1 %v4435_v4  ;;  %3399 = vmatprep.mubr.msk.f32.mxu1 %vm3964_vm2, %v3960_v3 }
0x1921   :  { %3676 = vmatprep.subr.bf16.mxu1 %v3963_v15 }
0x1924   :  { %3678 = vmatpush3.bf16.msra.mxu1 %v4446_v7 }
0x1925   :  { %3685 = vmatprep.subr.bf16.mxu1 %v3963_v15 }
0x19ea   :  { %v2015_v19 = vpop.f32.mrb[18].mxu1 }
0x19eb   :  { %v2020_v20 = vrot.slane %v2015_v19, 4  ;;  %v3368_v21 = vpop.f32.mrb[19].mxu1 }
0x19ed   :  { %v2022_v23 = vadd.f32 %v2020_v20, %v1942_v22 }
0x19ef   :  { %3908 = vtanh.f32 %v2022_v23  ;;  %v3069_v63 = vmul.f32 -1.442695, %v2022_v23 }
0x19f2   :  { %v2095_v25 = vpop.f32.mrb[20].mxu1 }
0x19f3   :  { %v2099_v26 = vadd.f32 %v2095_v25, %v1943_v24  ;;  %v3379_v28 = vpop.f32.mrb[21].mxu1 }
0x19f5   :  { %3910 = vtanh.f32 %v2099_v26  ;;  %v3070_v54 = vmul.f32 -1.442695, %v2099_v26 }
0x19f6   :  { %3912 = vpow2.f32 %v3069_v63 }
0x19f7   :  { %3914 = vpow2.f32 %v3070_v54 }
0x19f9   :  { %v3909_v29 = vpop.eup %3908 }
0x19fa   :  { %2112 = vrot.lane.b32.xlu1 %v3909_v29, %s3961_s2 }
0x19ff   :  { %v3911_v30 = vpop.eup %3910 }
0x1a00   :  { %2139 = vrot.lane.b32.xlu0 %v3911_v30, %s3961_s2  ;;  %v3913_v31 = vpop.eup %3912 }
0x1a01   :  { %v2103_v32 = vadd.f32 1.0, %v3913_v31  ;;  %v3915_v59 = vpop.eup %3914 }
0x1a02   :  { %v2130_v33 = vadd.f32 1.0, %v3915_v59 }
0x1a03   :  { %3916 = vrcp.f32 %v2103_v32 }
0x1a04   :  { %3918 = vrcp.f32 %v2130_v33 }
0x1a0d   :  { %v3917_v34 = vpop.eup %3916 }
0x1a0e   :  { %v3919_v37 = vpop.eup %3918  ;;  %v2110_v47 = vmul.f32 %v3917_v34, %v2108_v41  ;;  %v2367_v41 = vld [vmem:[#allocation2 + $0x8] sm:$0xf] }
0x1a0f   :  { %v2137_v42 = vmul.f32 %v3919_v37, %v2135_v38 }
0x1a6c   :  { %v2113_v35 = vpop.permute.xlu1 %2112 }
0x1a6d   :  { %v2115_v27 = vmul.f32 %v3917_v34, %v2113_v35 }
0x1a6f   :  { %2117 = vrot.lane.b32.xlu1 %v2115_v27, %s3962_s19 }
0x1a72   :  { %v2140_v10 = vpop.permute.xlu0 %2139 }
0x1a73   :  { %v2142_v40 = vmul.f32 %v3919_v37, %v2140_v10  ;;  %v2366_v10 = vld [vmem:[#allocation2 + $0x10] sm:$0xf0] }
0x1a75   :  { %2144 = vrot.lane.b32.xlu0 %v2142_v40, %s3962_s19 }
0x1ae1   :  { %v2118_v49 = vpop.permute.xlu1 %2117 }
0x1ae2   :  { %v4608_v50 = vadd.f32 %v2118_v49, %v2110_v47 }
0x1ae4   :  { %3920 = vtanh.f32 %v4608_v50  ;;  %v2320_v20 = vrot.slane %v4608_v50, 4 }
0x1ae7   :  { %v2145_v44 = vpop.permute.xlu0 %2144 }
0x1ae8   :  { %v4612_v43 = vadd.f32 %v2145_v44, %v2137_v42 }
0x1aea   :  { %3922 = vtanh.f32 %v4612_v43  ;;  %v2347_v24 = vrot.slane %v4612_v43, 4 }
0x1aee   :  { %v3921_v45 = vpop.eup %3920 }
0x1aef   :  { %2123 = vrot.lane.b32.xlu1 %v3921_v45, %s3961_s2 }
0x1af4   :  { %v3923_v48 = vpop.eup %3922 }
0x1af5   :  { %2150 = vrot.lane.b32.xlu0 %v3923_v48, %s3961_s2 }
0x1b61   :  { %v2124_v51 = vpop.permute.xlu1 %2123 }
0x1b62   :  { %v2126_v56 = vmul.f32 %v3917_v34, %v2124_v51 }
0x1b64   :  { %v2157_v52 = vrot.slane %v2126_v56, 4 }
0x1b66   :  { %2158 = vrot.lane.b32.xlu1 %v2157_v52, %s3962_s19 }
0x1b67   :  { %v2151_v39 = vpop.permute.xlu0 %2150 }
0x1b68   :  { %v2153_v57 = vmul.f32 %v3919_v37, %v2151_v39 }
0x1b6a   :  { %2234 = vrot.lane.b32.xlu0 %v2153_v57, %s3962_s19 }
0x1bd8   :  { %v2159_v46 = vpop.permute.xlu1 %2158 }
0x1bd9   :  { %3389 = vmatmul.mubr.msk.f32.vlgmr.msra.gmra.mrb[18].mxu0 %vm268_vm4, %v2159_v46 }
0x1bda   :  { %3681 = vmatpush3.bf16.msra.mxu0 %v4407_v53  ;;  %3410 = vmatprep.mubr.msk.f32.mxu0 %vm3964_vm2, %v3960_v3  ;;  %v2154_v53 = vld [vmem:[#allocation2 + $0x10] sm:$0xf] }
0x1bdb   :  { %3682 = vmatprep.subr.bf16.mxu0 %v3963_v15 }
0x1bdc   :  { %v2235_v60 = vpop.permute.xlu0 %2234 }
0x1bdd   :  { %3400 = vmatmul.mubr.msk.f32.vlgmr.msra.gmra.mrb[22].mxu1 %vm268_vm4, %v2235_v60 }
0x1bde   :  { %3684 = vmatpush3.bf16.msra.mxu0 %v4414_v55  ;;  %3687 = vmatpush3.bf16.msra.mxu1 %v4435_v4  ;;  %v2155_v4 = vld [vmem:[#allocation2 + $0x8] sm:$0xf0] }
0x1bdf   :  { %3688 = vmatprep.subr.bf16.mxu1 %v3963_v15  ;;  %3421 = vmatprep.mubr.msk.f32.mxu1 %vm3964_vm2, %v3960_v3 }
0x1be0   :  { %3691 = vmatprep.subr.bf16.mxu0 %v3963_v15 }
0x1be2   :  { %3690 = vmatpush3.bf16.msra.mxu1 %v4446_v7 }
0x1be3   :  { %3697 = vmatprep.subr.bf16.mxu1 %v3963_v15 }
0x1cac   :  { %v2228_v61 = vpop.f32.mrb[18].mxu0 }
0x1cad   :  { %v2232_v62 = vadd.f32 %v2228_v61, %v2154_v53  ;;  %v3390_v0 = vpop.f32.mrb[19].mxu0 }
0x1caf   :  { %3924 = vtanh.f32 %v2232_v62  ;;  %v3073_v7 = vmul.f32 -1.442695, %v2232_v62 }
0x1cb0   :  { %v2304_v1 = vpop.f32.mrb[22].mxu1 }
0x1cb1   :  { %v2309_v55 = vrot.slane %v2304_v1, 4  ;;  %v3401_v2 = vpop.f32.mrb[23].mxu1 }
0x1cb3   :  { %v2311_v5 = vadd.f32 %v2309_v55, %v2155_v4 }
0x1cb5   :  { %3926 = vtanh.f32 %v2311_v5  ;;  %v3074_v8 = vmul.f32 -1.442695, %v2311_v5 }
0x1cb6   :  { %3928 = vpow2.f32 %v3073_v7  ;;  %v2582_v7 = vld [vmem:[%s4842_s11] sm:$0xff] }
0x1cb7   :  { %3930 = vpow2.f32 %v3074_v8 }
0x1cb9   :  { %v3925_v6 = vpop.eup %3924 }
0x1cba   :  { %2324 = vrot.lane.b32.xlu1 %v3925_v6, %s3961_s2  ;;  %v2578_v6 = vld [vmem:[%s4841_s10] sm:$0xff] }
0x1cbf   :  { %v3927_v13 = vpop.eup %3926 }
0x1cc0   :  { %2351 = vrot.lane.b32.xlu0 %v3927_v13, %s3961_s2  ;;  %v3929_v58 = vpop.eup %3928  ;;  %v2579_v13 = vld [vmem:[%s4841_s10 + $0x8] sm:$0xff] }
0x1cc1   :  { %v2315_v9 = vadd.f32 1.0, %v3929_v58  ;;  %v3931_v11 = vpop.eup %3930  ;;  %v3698_v8 = vpack.c.bf16 %v2579_v13, %v2578_v6  ;;  %v2583_v58 = vld [vmem:[%s4842_s11 + $0x8] sm:$0xff]  ;;  %v2932_v13 = vld [vmem:[%s4846_s16 + $0x40] sm:$0xff] }
0x1cc2   :  { %v2342_v12 = vadd.f32 1.0, %v3931_v11  ;;  %v2581_v11 = vld [vmem:[%s4841_s10 + $0x18] sm:$0xff] }
0x1cc3   :  { %3932 = vrcp.f32 %v2315_v9  ;;  %v2580_v9 = vld [vmem:[%s4841_s10 + $0x10] sm:$0xff] }
0x1cc4   :  { %3934 = vrcp.f32 %v2342_v12  ;;  %v3692_v12 = vpack.c.bf16 %v2583_v58, %v2582_v7  ;;  %v2933_v7 = vld [vmem:[%s4846_s16 + $0x48] sm:$0xff]  ;;  %v2934_v58 = vld [vmem:[%s4846_s16 + $0x50] sm:$0xff] }
0x1ccd   :  { %v3933_v36 = vpop.eup %3932 }
0x1cce   :  { %v3935_v17 = vpop.eup %3934  ;;  %v2322_v21 = vmul.f32 %v3933_v36, %v2320_v20 }
0x1ccf   :  { %v2349_v25 = vmul.f32 %v3935_v17, %v2347_v24 }
0x1d2c   :  { %v2325_v14 = vpop.permute.xlu1 %2324 }
0x1d2d   :  { %v2327_v16 = vmul.f32 %v3933_v36, %v2325_v14  ;;  %v3701_v14 = vpack.c.bf16 %v2581_v11, %v2580_v9  ;;  %v2935_v9 = vld [vmem:[%s4846_s16 + $0x58] sm:$0xff] }
0x1d2e   :  { %v3750_v11 = vpack.c.bf16 %v2935_v9, %v2934_v58 }
0x1d2f   :  { %2329 = vrot.lane.b32.xlu1 %v2327_v16, %s3962_s19 }
0x1d32   :  { %v2352_v18 = vpop.permute.xlu0 %2351 }
0x1d33   :  { %v2354_v19 = vmul.f32 %v3935_v17, %v2352_v18  ;;  %v2585_v18 = vld [vmem:[%s4842_s11 + $0x18] sm:$0xff] }
0x1d35   :  { %2356 = vrot.lane.b32.xlu0 %v2354_v19, %s3962_s19 }
0x1da1   :  { %v2330_v22 = vpop.permute.xlu1 %2329 }
0x1da2   :  { %v2332_v23 = vadd.f32 %v2330_v22, %v2322_v21 }
0x1da4   :  { %3936 = vtanh.f32 %v2332_v23  ;;  %v2532_v61 = vrot.slane %v2332_v23, 4 }
0x1da7   :  { %v2357_v26 = vpop.permute.xlu0 %2356 }
0x1da8   :  { %v2359_v28 = vadd.f32 %v2357_v26, %v2349_v25  ;;  %v2830_v25 = vld [vmem:[%s4843_s14] sm:$0xff]  ;;  %v2831_v26 = vld [vmem:[%s4843_s14 + $0x8] sm:$0xff] }
0x1daa   :  { %3938 = vtanh.f32 %v2359_v28  ;;  %v2559_v55 = vrot.slane %v2359_v28, 4  ;;  %v3711_v28 = vpack.c.bf16 %v2831_v26, %v2830_v25 }
0x1dae   :  { %v3937_v29 = vpop.eup %3936 }
0x1daf   :  { %2335 = vrot.lane.b32.xlu1 %v3937_v29, %s3961_s2  ;;  %v2738_v29 = vld [vmem:[%s4844_s12] sm:$0xff] }
0x1db4   :  { %v3939_v30 = vpop.eup %3938 }
0x1db5   :  { %2362 = vrot.lane.b32.xlu0 %v3939_v30, %s3961_s2  ;;  %v2739_v30 = vld [vmem:[%s4844_s12 + $0x8] sm:$0xff] }
0x1e21   :  { %v2336_v63 = vpop.permute.xlu1 %2335 }
0x1e22   :  { %v2338_v54 = vmul.f32 %v3933_v36, %v2336_v63 }
0x1e24   :  { %2369 = vrot.lane.b32.xlu1 %v2338_v54, %s3962_s19  ;;  %v2832_v54 = vld [vmem:[%s4843_s14 + $0x10] sm:$0xff] }
0x1e27   :  { %v2363_v31 = vpop.permute.xlu0 %2362 }
0x1e28   :  { %v2365_v32 = vmul.f32 %v3935_v17, %v2363_v31  ;;  %v2584_v17 = vld [vmem:[%s4842_s11 + $0x10] sm:$0xff]  ;;  %v2833_v31 = vld [vmem:[%s4843_s14 + $0x18] sm:$0xff] }
0x1e29   :  { %v3695_v19 = vpack.c.bf16 %v2585_v18, %v2584_v17 }
0x1e2a   :  { %v2448_v59 = vrot.slane %v2365_v32, 4  ;;  %v3704_v32 = vpack.c.bf16 %v2739_v30, %v2738_v29  ;;  %v23_v30 = vstv %s4848_s17 }
0x1e2b   :  { %24 = vst [vmem:[#allocation4] sm:$0x1] %v23_v30 }
0x1e2c   :  { %2449 = vrot.lane.b32.xlu0 %v2448_v59, %s3962_s19  ;;  %v2740_v59 = vld [vmem:[%s4844_s12 + $0x10] sm:$0xff] }
0x1e96   :  { %v2370_v33 = vpop.permute.xlu1 %2369 }
0x1e97   :  { %3411 = vmatmul.mubr.msk.f32.vlgmr.msra.gmra.mrb[20].mxu0 %vm268_vm4, %v2370_v33  ;;  %v2741_v33 = vld [vmem:[%s4844_s12 + $0x18] sm:$0x7] }
0x1e98   :  { %3432 = vmatprep.mubr.msk.f32.mxu0 %vm3964_vm2, %v3960_v3  ;;  %3693 = vmatpush3.bf16.msra.mxu0 %v3692_v12  ;;  %v2936_v12 = vld [vmem:[%s4846_s16 + $0x60] sm:$0xff] }
0x1e99   :  { %3694 = vmatprep.subr.bf16.mxu0 %v3963_v15 }
0x1e9c   :  { %3696 = vmatpush3.bf16.msra.mxu0 %v3695_v19 }
0x1e9d   :  { %3703 = vmatprep.subr.bf16.mxu0 %v3963_v15 }
0x1e9e   :  { %v2450_v34 = vpop.permute.xlu0 %2449 }
0x1e9f   :  { %3422 = vmatmul.mubr.msk.f32.vlgmr.msra.gmra.mrb[24].mxu1 %vm268_vm4, %v2450_v34  ;;  %v3714_v34 = vpack.c.bf16 %v2833_v31, %v2832_v54 }
0x1ea0   :  { %3443 = vmatprep.mubr.msk.f32.mxu1 %vm3964_vm2, %v3960_v3  ;;  %3699 = vmatpush3.bf16.msra.mxu1 %v3698_v8  ;;  %v3747_v8 = vpack.c.bf16 %v2933_v7, %v2932_v13 }
0x1ea1   :  { %3700 = vmatprep.subr.bf16.mxu1 %v3963_v15 }
0x1ea4   :  { %3702 = vmatpush3.bf16.msra.mxu1 %v3701_v14 }
0x1ea5   :  { %3710 = vmatprep.subr.bf16.mxu1 %v3963_v15 }
0x1f6a   :  { %v2439_v35 = vpop.f32.mrb[20].mxu0 }
0x1f6b   :  { %v2444_v27 = vrot.slane %v2439_v35, 4  ;;  %v3412_v37 = vpop.f32.mrb[21].mxu0 }
0x1f6c   :  { %v2835_v37 = vld [vmem:[%s4843_s14 + $0x28] sm:$0xff] }
0x1f6d   :  { %v2446_v40 = vadd.f32 %v2444_v27, %v2366_v10  ;;  %v2834_v27 = vld [vmem:[%s4843_s14 + $0x20] sm:$0xff]  ;;  %v3707_v10 = vpack.c.bf16 %v2741_v33, %v2740_v59  ;;  %v3085_v33 = vld [vmem:[#allocation4] ss:$0 sm:$0xff] }
0x1f6f   :  { %3940 = vtanh.f32 %v2446_v40  ;;  %v3077_v44 = vmul.f32 -1.442695, %v2446_v40  ;;  %v3717_v40 = vpack.c.bf16 %v2835_v37, %v2834_v27 }
0x1f72   :  { %v2519_v47 = vpop.f32.mrb[24].mxu1 }
0x1f73   :  { %v2523_v49 = vadd.f32 %v2519_v47, %v2367_v41  ;;  %v3423_v50 = vpop.f32.mrb[25].mxu1  ;;  %v2836_v41 = vld [vmem:[%s4843_s14 + $0x30] sm:$0xff]  ;;  %v2837_v47 = vld [vmem:[%s4843_s14 + $0x38] sm:$0xff] }
0x1f74   :  { %v3720_v50 = vpack.c.bf16 %v2837_v47, %v2836_v41 }
0x1f75   :  { %3942 = vtanh.f32 %v2523_v49  ;;  %v3078_v43 = vmul.f32 -1.442695, %v2523_v49  ;;  %v2737_v49 = vld [vmem:[%s4845_s1] sm:$0xf] }
0x1f76   :  { %3944 = vpow2.f32 %v3077_v44 }
0x1f77   :  { %3946 = vpow2.f32 %v3078_v43  ;;  %v2840_v43 = vld [vmem:[%s4843_s14 + $0x50] sm:$0xff] }
0x1f79   :  { %v3941_v38 = vpop.eup %3940 }
0x1f7a   :  { %2536 = vrot.lane.b32.xlu1 %v3941_v38, %s3961_s2  ;;  %v2838_v38 = vld [vmem:[%s4843_s14 + $0x40] sm:$0xff] }
0x1f7f   :  { %v3943_v42 = vpop.eup %3942 }
0x1f80   :  { %2563 = vrot.lane.b32.xlu0 %v3943_v42, %s3961_s2  ;;  %v3945_v45 = vpop.eup %3944  ;;  %v2839_v42 = vld [vmem:[%s4843_s14 + $0x48] sm:$0xff] }
0x1f81   :  { %v2527_v48 = vadd.f32 1.0, %v3945_v45  ;;  %v3947_v51 = vpop.eup %3946  ;;  %v3723_v44 = vpack.c.bf16 %v2839_v42, %v2838_v38 }
0x1f82   :  { %v2554_v56 = vadd.f32 1.0, %v3947_v51  ;;  %v2843_v51 = vld [vmem:[%s4843_s14 + $0x68] sm:$0xff] }
0x1f83   :  { %3948 = vrcp.f32 %v2527_v48  ;;  %v2842_v48 = vld [vmem:[%s4843_s14 + $0x60] sm:$0xff] }
0x1f84   :  { %3950 = vrcp.f32 %v2554_v56  ;;  %v3729_v56 = vpack.c.bf16 %v2843_v51, %v2842_v48 }
0x1f8d   :  { %v3949_v52 = vpop.eup %3948 }
0x1f8e   :  { %v3951_v46 = vpop.eup %3950  ;;  %v2534_v62 = vmul.f32 %v3949_v52, %v2532_v61 }
0x1f8f   :  { %v2561_v2 = vmul.f32 %v3951_v46, %v2559_v55  ;;  %v2929_v55 = vld [vmem:[%s4846_s16 + $0x28] sm:$0xff] }
0x1fec   :  { %v2537_v39 = vpop.permute.xlu1 %2536 }
0x1fed   :  { %v2539_v57 = vmul.f32 %v3949_v52, %v2537_v39  ;;  %v2845_v39 = vld [vmem:[%s4843_s14 + $0x78] sm:$0xff] }
0x1fef   :  { %2541 = vrot.lane.b32.xlu1 %v2539_v57, %s3962_s19 }
0x1ff2   :  { %v2564_v60 = vpop.permute.xlu0 %2563 }
0x1ff3   :  { %v2566_v53 = vmul.f32 %v3951_v46, %v2564_v60  ;;  %v2925_v60 = vld [vmem:[%s4846_s16 + $0x8] sm:$0xff] }
0x1ff5   :  { %2568 = vrot.lane.b32.xlu0 %v2566_v53, %s3962_s19  ;;  %v2926_v53 = vld [vmem:[%s4846_s16 + $0x10] sm:$0xff] }
0x2061   :  { %v2542_v0 = vpop.permute.xlu1 %2541 }
0x2062   :  { %v2544_v1 = vadd.f32 %v2542_v0, %v2534_v62  ;;  %v2927_v62 = vld [vmem:[%s4846_s16 + $0x18] sm:$0xff] }
0x2063   :  { %v3738_v0 = vpack.c.bf16 %v2927_v62, %v2926_v53 }
0x2064   :  { %3952 = vtanh.f32 %v2544_v1  ;;  %v2928_v1 = vld [vmem:[%s4846_s16 + $0x20] sm:$0xff] }
0x2067   :  { %v2569_v4 = vpop.permute.xlu0 %2568 }
0x2068   :  { %v2571_v5 = vadd.f32 %v2569_v4, %v2561_v2  ;;  %v3741_v2 = vpack.c.bf16 %v2929_v55, %v2928_v1  ;;  %v2930_v4 = vld [vmem:[%s4846_s16 + $0x30] sm:$0xff] }
0x206a   :  { %3954 = vtanh.f32 %v2571_v5  ;;  %v2931_v5 = vld [vmem:[%s4846_s16 + $0x38] sm:$0xff] }
0x206b   :  { %v3744_v6 = vpack.c.bf16 %v2931_v5, %v2930_v4 }
0x206e   :  { %v3953_v36 = vpop.eup %3952 }
0x206f   :  { %2547 = vrot.lane.b32.xlu1 %v3953_v36, %s3961_s2  ;;  %v2937_v36 = vld [vmem:[%s4846_s16 + $0x68] sm:$0xff] }
0x2070   :  { %v3753_v14 = vpack.c.bf16 %v2937_v36, %v2936_v12 }
0x2074   :  { %v3955_v16 = vpop.eup %3954 }
0x2075   :  { %2574 = vrot.lane.b32.xlu0 %v3955_v16, %s3961_s2 }
0x20e1   :  { %v2548_v20 = vpop.permute.xlu1 %2547 }
0x20e2   :  { %v2550_v21 = vmul.f32 %v3949_v52, %v2548_v20  ;;  %v2844_v52 = vld [vmem:[%s4843_s14 + $0x70] sm:$0xff] }
0x20e3   :  { %v3732_v57 = vpack.c.bf16 %v2845_v39, %v2844_v52 }
0x20e4   :  { %v2662_v22 = vrot.slane %v2550_v21, 4 }
0x20e6   :  { %2663 = vrot.lane.b32.xlu1 %v2662_v22, %s3962_s19  ;;  %v3083_v22 = vld [vmem:[%s4847_s13] ss:$0 sm:$0xff] }
0x20e7   :  { %v2575_v23 = vpop.permute.xlu0 %2574 }
0x20e8   :  { %v2577_v24 = vmul.f32 %v3951_v46, %v2575_v23  ;;  %v2924_v46 = vld [vmem:[%s4846_s16] sm:$0xff] }
0x20e9   :  { %v3735_v61 = vpack.c.bf16 %v2925_v60, %v2924_v46 }
0x20ea   :  { %2587 = vrot.lane.b32.xlu0 %v2577_v24, %s3962_s19 }
0x2158   :  { %v2664_v63 = vpop.permute.xlu1 %2663 }
0x2159   :  { %3444 = vmatmul.mubr.msk.f32.vlgmr.msra.gmra.mrb[26].mxu1 %vm268_vm4, %v2664_v63  ;;  %v3084_v63 = vld [vmem:[%s4849_s15] ss:$0 sm:$0xff] }
0x215a   :  { %3712 = vmatpush3.bf16.msra.mxu1 %v3711_v28  ;;  %3489 = vmatprep.mubr.msk.f32.mxu1 %vm3964_vm2, %v3960_v3  ;;  %v2938_v28 = vld [vmem:[%s4846_s16 + $0x70] sm:$0xff] }
0x215b   :  { %3713 = vmatprep.subr.bf16.mxu1 %v3963_v15 }
0x215c   :  { %v2588_v35 = vpop.permute.xlu0 %2587 }
0x215d   :  { %3433 = vmatmul.mubr.msk.f32.vlgmr.msra.gmra.mrb[22].mxu0 %vm268_vm4, %v2588_v35 }
0x215e   :  { %3705 = vmatpush3.bf16.msra.mxu0 %v3704_v32  ;;  %3454 = vmatprep.mubr.msk.f32.mxu0 %vm3964_vm2, %v3960_v3 }
0x215f   :  { %3706 = vmatprep.subr.bf16.mxu0 %v3963_v15  ;;  %3715 = vmatpush3.bf16.msra.mxu1 %v3714_v34 }
0x2160   :  { %3716 = vmatprep.subr.bf16.mxu1 %v3963_v15 }
0x2162   :  { %3709 = vmatpush3.bf16.msk.msra.mxu0 %vm3708_vm11, %v3707_v10 }
0x2163   :  { %3718 = vmatpush3.bf16.msra.mxu1 %v3717_v40  ;;  %3734 = vmatprep.subr.bf16.mxu0 %v3963_v15 }
0x2164   :  { %3719 = vmatprep.subr.bf16.mxu1 %v3963_v15 }
0x2165   :  { %3455 = vmatmul.mubr.msk.f32.vlgmr.msra.gmra.mrb[24].mxu0 %vm2742_vm12, %v2737_v49 }
0x2166   :  { %3524 = vmatprep.mubr.msk.f32.mxu0 %vm3964_vm2, %v3960_v3  ;;  %v2841_v3 = vld [vmem:[%s4843_s14 + $0x58] sm:$0xff]  ;;  %3736 = vmatpush3.bf16.msra.mxu0 %v3735_v61 }
0x2167   :  { %3721 = vmatpush3.bf16.msra.mxu1 %v3720_v50  ;;  %v3726_v45 = vpack.c.bf16 %v2841_v3, %v2840_v43  ;;  %3737 = vmatprep.subr.bf16.mxu0 %v3963_v15 }
0x2168   :  { %3722 = vmatprep.subr.bf16.mxu1 %v3963_v15 }
0x216a   :  { %3739 = vmatpush3.bf16.msra.mxu0 %v3738_v0 }
0x216b   :  { %3724 = vmatpush3.bf16.msra.mxu1 %v3723_v44  ;;  %3740 = vmatprep.subr.bf16.mxu0 %v3963_v15 }
0x216c   :  { %3725 = vmatprep.subr.bf16.mxu1 %v3963_v15 }
0x216e   :  { %3742 = vmatpush3.bf16.msra.mxu0 %v3741_v2 }
0x216f   :  { %3727 = vmatpush3.bf16.msra.mxu1 %v3726_v45  ;;  %3743 = vmatprep.subr.bf16.mxu0 %v3963_v15 }
0x2170   :  { %3728 = vmatprep.subr.bf16.mxu1 %v3963_v15 }
0x2172   :  { %3745 = vmatpush3.bf16.msra.mxu0 %v3744_v6 }
0x2173   :  { %3730 = vmatpush3.bf16.msra.mxu1 %v3729_v56  ;;  %3746 = vmatprep.subr.bf16.mxu0 %v3963_v15 }
0x2174   :  { %3731 = vmatprep.subr.bf16.mxu1 %v3963_v15 }
0x2176   :  { %3748 = vmatpush3.bf16.msra.mxu0 %v3747_v8 }
0x2177   :  { %3733 = vmatpush3.bf16.msra.mxu1 %v3732_v57  ;;  %3749 = vmatprep.subr.bf16.mxu0 %v3963_v15 }
0x217a   :  { %3751 = vmatpush3.bf16.msra.mxu0 %v3750_v11 }
0x217b   :  { %3752 = vmatprep.subr.bf16.mxu0 %v3963_v15 }
0x217e   :  { %3754 = vmatpush3.bf16.msra.mxu0 %v3753_v14 }
0x217f   :  { %3755 = vmatprep.subr.bf16.mxu0 %v3963_v15  ;;  %v2939_v15 = vld [vmem:[%s4846_s16 + $0x78] sm:$0xff] }
0x2180   :  { %v3756_v29 = vpack.c.bf16 %v2939_v15, %v2938_v28 }
0x2182   :  { %3757 = vmatpush3.bf16.msra.mxu0 %v3756_v29 }
0x222c   :  { %v2733_v16 = vpop.f32.mrb[26].mxu1 }
0x222d   :  { %v3445_v17 = vpop.f32.mrb[27].mxu1 }
0x2230   :  { %v2657_v18 = vpop.f32.mrb[22].mxu0 }
0x2231   :  { %v2734_v19 = vadd.f32 %v2733_v16, %v2657_v18  ;;  %v3434_v20 = vpop.f32.mrb[23].mxu0 }
0x2238   :  { %v2816_v21 = vpop.f32.mrb[24].mxu0 }
0x2239   :  { %v2820_v23 = vadd.f32 %v2816_v21, %v2734_v19  ;;  %v3456_v24 = vpop.f32.mrb[25].mxu0 }
0x223b   :  { %v2828_v25 = vadd.f32 %v3083_v22, %v2820_v23 }
0x223d   :  { %v2829_v26 = vmax.f32 %v2828_v25, 0.0 }
0x223f   :  { %3490 = vmatmul.mubr.f32.vlgmr.msra.gmra.mrb[28].mxu1 %v2829_v26 }
0x2312   :  { %v2919_v54 = vpop.f32.mrb[28].mxu1 }
0x2313   :  { %v2920_v31 = vadd.f32 %v3084_v63, %v2919_v54  ;;  %v3491_v32 = vpop.f32.mrb[29].mxu1 }
0x2315   :  { %v2923_v59 = vmax.f32 %v2920_v31, 0.0 }
0x2317   :  { %3525 = vmatmul.mubr.f32.vlgmr.msra.gmra.mrb[26].mxu0 %v2923_v59 }
0x23ea   :  { %v3013_v34 = vpop.f32.mrb[26].mxu0 }
0x23eb   :  { %v3014_v35 = vadd.f32 %v3085_v33, %v3013_v34  ;;  %v3526_v27 = vpop.f32.mrb[27].mxu0 }
0x23ed   :  { %v3086_v37 = vmul.f32 -1.442695, %v3014_v35 }
0x23ef   :  { %3956 = vpow2.f32 %v3086_v37 }
0x23f9   :  { %v3957_v10 = vpop.eup %3956 }
0x23fa   :  { %v3020_v40 = vadd.f32 1.0, %v3957_v10 }
0x23fc   :  { %3958 = vrcp.f32 %v3020_v40 }
0x2406   :  { %v3959_v41 = vpop.eup %3958 }
0x2407   :  { %3024 = vst.msk [vmem:[%s4850_s18] sm:$0xf] %vm3023_vm13, %v3959_v41 }

</bundles_post_ra>
